<compile_context>
chip_gen: v5e
topology: v5e:2x2
jax: 0.10.0
libtpu: 0.0.40
codegen_flags: <defaults>
</compile_context>

<pallas_src>
import jax
import jax.numpy as jnp
from jax.experimental import pallas as pl
from jax.experimental.pallas import tpu as pltpu

EPS = 1e-5


# ----------------------------------------------------------------------------
# helpers
# ----------------------------------------------------------------------------
def _full_spec(shape):
    nd = len(shape)
    return pl.BlockSpec(shape, lambda *_: (0,) * nd)


# ----------------------------------------------------------------------------
# in-kernel building blocks (trace-time Python loops, values + VMEM scratch)
# ----------------------------------------------------------------------------
def _conv_taps(xp, K, L):
    """Tap-folded mini-im2col: xp (L+K-1, C) -> (L, K*C) via lane concat."""
    return jnp.concatenate([xp[k:k + L, :] for k in range(K)], axis=1)


def _strided_conv(y, w_flat, b, K):
    """nn.Conv1d(kernel=K, stride=2, padding=0) on one sample.

    y: (L, C) f32 value, w_flat: (K*C, Cout) bf16, b: (1, Cout) f32.
    The stride-2 row selection is a tiny 0/1 matmul (exact pick of bf16 rows),
    so no strided loads are required.
    """
    L, _ = y.shape
    Lf = L - K + 1                       # stride-1 valid positions
    Lo = (L - K) // 2 + 1                # stride-2 output length
    cols = _conv_taps(y.astype(jnp.bfloat16), K, Lf)            # (Lf, K*C)
    row = jax.lax.broadcasted_iota(jnp.int32, (Lo, Lf), 0)
    col = jax.lax.broadcasted_iota(jnp.int32, (Lo, Lf), 1)
    sel = (col == 2 * row).astype(jnp.bfloat16)                 # (Lo, Lf) 0/1
    cols_s = jnp.dot(sel, cols, preferred_element_type=jnp.float32)
    cols_s = cols_s.astype(jnp.bfloat16)                        # exact (0/1 pick)
    return jnp.dot(cols_s, w_flat, preferred_element_type=jnp.float32) + b


def _residual_block(N, L, K, xp_scr, yp_scr, pre_scr,
                    w1_ref, g1_ref, be1_ref, w2_ref, g2_ref, be2_ref,
                    ws_ref, bs_ref, emit):
    """out = relu( BN2(conv2(relu(BN1(conv1(x))))) + conv1x1(x) + b1x1 ).

    xp_scr : (N, L+2*pad, Cin) bf16  padded block input (halos already zero).
    yp_scr : (N, L+2*pad, C)   bf16  padded scratch for relu(BN1(conv1(x))).
    pre_scr: (N, >=L, >=C)     f32   staging for conv pre-activations.
    emit(n, out_f32): consumes the per-sample (L, C) block output.
    conv1/conv2 biases are omitted: training-mode BN cancels them exactly.
    """
    pad = K // 2
    C = g1_ref.shape[1]
    inv_m = 1.0 / float(N * L)

    def conv_and_stats(src_scr, w):
        s1 = jnp.zeros((1, C), jnp.float32)
        s2 = jnp.zeros((1, C), jnp.float32)
        for n in range(N):
            cols = _conv_taps(src_scr[n], K, L)                 # (L, K*Cin) bf16
            p = jnp.dot(cols, w, preferred_element_type=jnp.float32)
            s1 = s1 + jnp.sum(p, axis=0, keepdims=True)
            s2 = s2 + jnp.sum(p * p, axis=0, keepdims=True)
            pre_scr[n, :L, :C] = p                              # stage, no lists
        mean = s1 * inv_m
        var = jnp.maximum(s2 * inv_m - mean * mean, 0.0)
        return mean, var

    # ---- conv1 -> BN1 stats -> BN1 + ReLU into padded y scratch (interior) --
    mean1, var1 = conv_and_stats(xp_scr, w1_ref[...])
    scale1 = g1_ref[...] * jax.lax.rsqrt(var1 + EPS)            # gamma*rsqrt folded
    shift1 = be1_ref[...] - mean1 * scale1
    zh = jnp.zeros((pad, C), yp_scr.dtype)
    for n in range(N):
        yp_scr[n, 0:pad, :] = zh                                # halo rows only
        yp_scr[n, pad + L:2 * pad + L, :] = zh
        y = jnp.maximum(pre_scr[n, :L, :C] * scale1 + shift1, 0.0)
        yp_scr[n, pad:pad + L, :] = y.astype(yp_scr.dtype)

    # ---- conv2 -> BN2 stats ------------------------------------------------
    mean2, var2 = conv_and_stats(yp_scr, w2_ref[...])
    scale2 = g2_ref[...] * jax.lax.rsqrt(var2 + EPS)
    shift2 = be2_ref[...] - mean2 * scale2

    # ---- BN2 + 1x1 shortcut (computed at point of use) + add + ReLU --------
    ws = ws_ref[...]
    bs = bs_ref[...]
    for n in range(N):
        xin = xp_scr[n, pad:pad + L, :]                         # unpadded input (bf16)
        short = jnp.dot(xin, ws, preferred_element_type=jnp.float32) + bs
        out = jnp.maximum(pre_scr[n, :L, :C] * scale2 + shift2 + short, 0.0)
        emit(n, out)


# ----------------------------------------------------------------------------
# single fused kernel: rb1 -> drop1 -> rb2 -> drop2 -> rb3
# ----------------------------------------------------------------------------
def _resnet_fused_kernel(
    x_ref,
    # residual block 1
    w1a_ref, g1a_ref, be1a_ref, w2a_ref, g2a_ref, be2a_ref, wsa_ref, bsa_ref,
    # drop_dim_1d_1
    wd1_ref, bd1_ref,
    # residual block 2
    w1b_ref, g1b_ref, be1b_ref, w2b_ref, g2b_ref, be2b_ref, wsb_ref, bsb_ref,
    # drop_dim_1d_2
    wd2_ref, bd2_ref,
    # residual block 3
    w1c_ref, g1c_ref, be1c_ref, w2c_ref, g2c_ref, be2c_ref, wsc_ref, bsc_ref,
    # output
    o_ref,
    # VMEM scratch (bf16 activation staging, f32 pre-activations)
    x1p, y1p, x2p, y2p, x3p, y3p, pre_scr,
):
    N, L1, Cin = x_ref.shape
    C1 = g1a_ref.shape[1]
    C2 = g1b_ref.shape[1]
    C3 = g1c_ref.shape[1]
    K1 = w1a_ref.shape[0] // Cin
    K2 = w1b_ref.shape[0] // C1
    K3 = w1c_ref.shape[0] // C2
    Kd1 = wd1_ref.shape[0] // C1
    Kd2 = wd2_ref.shape[0] // C2
    p1, p2, p3 = K1 // 2, K2 // 2, K3 // 2
    L2 = (L1 - Kd1) // 2 + 1
    L3 = (L2 - Kd2) // 2 + 1

    # ---- stage the (bf16, channels-last) input into its padded buffer -------
    z1 = jnp.zeros((p1, Cin), x1p.dtype)
    for n in range(N):
        x1p[n, 0:p1, :] = z1
        x1p[n, p1 + L1:2 * p1 + L1, :] = z1
        x1p[n, p1:p1 + L1, :] = x_ref[n]

    wd1 = wd1_ref[...]
    bd1 = bd1_ref[...]
    wd2 = wd2_ref[...]
    bd2 = bd2_ref[...]

    # ---- residual block 1; drop_dim_1d_1 fused into its epilogue ------------
    z2 = jnp.zeros((p2, C1), x2p.dtype)

    def emit1(n, out):
        d = _strided_conv(out, wd1, bd1, Kd1)                   # (L2, C1) f32
        x2p[n, 0:p2, :] = z2
        x2p[n, p2 + L2:2 * p2 + L2, :] = z2
        x2p[n, p2:p2 + L2, :] = d.astype(x2p.dtype)

    _residual_block(N, L1, K1, x1p, y1p, pre_scr,
                    w1a_ref, g1a_ref, be1a_ref, w2a_ref, g2a_ref, be2a_ref,
                    wsa_ref, bsa_ref, emit1)

    # ---- residual block 2; drop_dim_1d_2 fused into its epilogue ------------
    z3 = jnp.zeros((p3, C2), x3p.dtype)

    def emit2(n, out):
        d = _strided_conv(out, wd2, bd2, Kd2)                   # (L3, C2) f32
        x3p[n, 0:p3, :] = z3
        x3p[n, p3 + L3:2 * p3 + L3, :] = z3
        x3p[n, p3:p3 + L3, :] = d.astype(x3p.dtype)

    _residual_block(N, L2, K2, x2p, y2p, pre_scr,
                    w1b_ref, g1b_ref, be1b_ref, w2b_ref, g2b_ref, be2b_ref,
                    wsb_ref, bsb_ref, emit2)

    # ---- residual block 3 -> final output -----------------------------------
    def emit3(n, out):
        o_ref[n] = out

    _residual_block(N, L3, K3, x3p, y3p, pre_scr,
                    w1c_ref, g1c_ref, be1c_ref, w2c_ref, g2c_ref, be2c_ref,
                    wsc_ref, bsc_ref, emit3)


# ----------------------------------------------------------------------------
# wrapper
# ----------------------------------------------------------------------------
def _rb_args(p):
    K, cin, cout = p["w1"].shape
    return [
        p["w1"].reshape(K * cin, cout).astype(jnp.bfloat16),   # tap-flattened conv1
        p["g1"].reshape(1, cout).astype(jnp.float32),
        p["be1"].reshape(1, cout).astype(jnp.float32),
        p["w2"].reshape(K * cout, cout).astype(jnp.bfloat16),  # tap-flattened conv2
        p["g2"].reshape(1, cout).astype(jnp.float32),
        p["be2"].reshape(1, cout).astype(jnp.float32),
        p["w3"].astype(jnp.bfloat16),                          # (cin, cout) 1x1 shortcut
        p["b3"].reshape(1, cout).astype(jnp.float32),
    ]


def _drop_args(w, b):
    K, c, cout = w.shape
    return [w.reshape(K * c, cout).astype(jnp.bfloat16),
            b.reshape(1, cout).astype(jnp.float32)]


def resnet_forward(x_ncl, params):
    # Single NCL -> NLC transpose + bf16 staging at entry; one fused kernel.
    x = jnp.transpose(x_ncl, (0, 2, 1)).astype(jnp.bfloat16)   # (N, L, Cin)
    N, L1, Cin = x.shape

    rb1, rb2, rb3 = params["rb1"], params["rb2"], params["rb3"]
    K1, _, C1 = rb1["w1"].shape
    K2, _, C2 = rb2["w1"].shape
    K3, _, C3 = rb3["w1"].shape
    Kd1 = params["d1_w"].shape[0]
    Kd2 = params["d2_w"].shape[0]
    p1, p2, p3 = K1 // 2, K2 // 2, K3 // 2
    L2 = (L1 - Kd1) // 2 + 1
    L3 = (L2 - Kd2) // 2 + 1
    Cmax = max(C1, C2, C3)

    args = ([x]
            + _rb_args(rb1) + _drop_args(params["d1_w"], params["d1_b"])
            + _rb_args(rb2) + _drop_args(params["d2_w"], params["d2_b"])
            + _rb_args(rb3))

    out = pl.pallas_call(
        _resnet_fused_kernel,
        out_shape=jax.ShapeDtypeStruct((N, L3, C3), jnp.float32),
        grid=(1,),
        in_specs=[_full_spec(a.shape) for a in args],
        out_specs=_full_spec((N, L3, C3)),
        scratch_shapes=[
            pltpu.VMEM((N, L1 + 2 * p1, Cin), jnp.bfloat16),   # x1p (padded input)
            pltpu.VMEM((N, L1 + 2 * p1, C1), jnp.bfloat16),    # y1p
            pltpu.VMEM((N, L2 + 2 * p2, C1), jnp.bfloat16),    # x2p (padded drop1 out)
            pltpu.VMEM((N, L2 + 2 * p2, C2), jnp.bfloat16),    # y2p
            pltpu.VMEM((N, L3 + 2 * p3, C2), jnp.bfloat16),    # x3p (padded drop2 out)
            pltpu.VMEM((N, L3 + 2 * p3, C3), jnp.bfloat16),    # y3p
            pltpu.VMEM((N, L1, Cmax), jnp.float32),            # shared pre-activation staging
        ],
        compiler_params=pltpu.CompilerParams(
            dimension_semantics=("arbitrary",),
            vmem_limit_bytes=32 * 1024 * 1024,
        ),
    )(*args)

    return jnp.transpose(out, (0, 2, 1))   # back to NCL at exit


# ----------------------------------------------------------------------------
# parameters
# ----------------------------------------------------------------------------
def _conv_params(key, cin, cout, k):
    kw, kb = jax.random.split(key)
    bound = 1.0 / jnp.sqrt(float(cin * k))
    w = jax.random.uniform(kw, (k, cin, cout), jnp.float32, -bound, bound)
    b = jax.random.uniform(kb, (cout,), jnp.float32, -bound, bound)
    return w, b


def _residual_block_params(key, cin, cout, k):
    # conv1/conv2 biases are omitted: with training-mode BatchNorm immediately
    # following each conv, a per-channel bias is exactly cancelled by the
    # batch-mean subtraction, so it has no effect on the forward output.
    k1, k2, k3 = jax.random.split(key, 3)
    w1, _ = _conv_params(k1, cin, cout, k)
    w2, _ = _conv_params(k2, cout, cout, k)
    w3, b3 = _conv_params(k3, cin, cout, 1)
    return dict(
        w1=w1, g1=jnp.ones((cout,), jnp.float32), be1=jnp.zeros((cout,), jnp.float32),
        w2=w2, g2=jnp.ones((cout,), jnp.float32), be2=jnp.zeros((cout,), jnp.float32),
        w3=w3[0], b3=b3,   # (Cin, Cout) 1x1 shortcut + its bias (kept: not BN'd)
    )


def init_resnet_params(key, in_channels, hidden_channels, window_length):
    ks = jax.random.split(key, 5)
    p = {}
    p["rb1"] = _residual_block_params(ks[0], in_channels, hidden_channels, window_length)
    p["d1_w"], p["d1_b"] = _conv_params(ks[1], hidden_channels, hidden_channels, window_length)
    p["rb2"] = _residual_block_params(ks[2], hidden_channels, hidden_channels * 2, 3)
    p["d2_w"], p["d2_b"] = _conv_params(ks[3], hidden_channels * 2, hidden_channels * 2, window_length)
    p["rb3"] = _residual_block_params(ks[4], hidden_channels * 2, hidden_channels * 4, 3)
    return p


# ----------------------------------------------------------------------------
if __name__ == "__main__":
    key = jax.random.PRNGKey(0)
    k_x, k_p = jax.random.split(key)

    # Small shapes consistent with the module (in_channels, hidden, window).
    batch, in_channels, hidden_channels, window_length, seq_len = 2, 8, 16, 5, 32

    x = jax.random.normal(k_x, (batch, in_channels, seq_len), jnp.float32)  # NCL
    params = init_resnet_params(k_p, in_channels, hidden_channels, window_length)

    fwd = jax.jit(resnet_forward)
    out = jax.block_until_ready(fwd(x, params))

    # 32 -> rb1: 32 -> drop1: 14 -> rb2: 14 -> drop2: 5 -> rb3: 5  => (2, 64, 5)
    assert out.shape == (batch, hidden_channels * 4, 5), out.shape
    assert bool(jnp.isfinite(out).all())
    print("KERNEL_OK")
</pallas_src>

<mosaic_0001>
module attributes {stable_mosaic.version = 11 : i64} {
  func.func @_resnet_fused_kernel(%arg0: i32, %arg1: memref<2x32x8xbf16, #tpu.memory_space<vmem>>, %arg2: memref<40x16xbf16, #tpu.memory_space<vmem>>, %arg3: memref<1x16xf32, #tpu.memory_space<vmem>>, %arg4: memref<1x16xf32, #tpu.memory_space<vmem>>, %arg5: memref<80x16xbf16, #tpu.memory_space<vmem>>, %arg6: memref<1x16xf32, #tpu.memory_space<vmem>>, %arg7: memref<1x16xf32, #tpu.memory_space<vmem>>, %arg8: memref<8x16xbf16, #tpu.memory_space<vmem>>, %arg9: memref<1x16xf32, #tpu.memory_space<vmem>>, %arg10: memref<80x16xbf16, #tpu.memory_space<vmem>>, %arg11: memref<1x16xf32, #tpu.memory_space<vmem>>, %arg12: memref<48x32xbf16, #tpu.memory_space<vmem>>, %arg13: memref<1x32xf32, #tpu.memory_space<vmem>>, %arg14: memref<1x32xf32, #tpu.memory_space<vmem>>, %arg15: memref<96x32xbf16, #tpu.memory_space<vmem>>, %arg16: memref<1x32xf32, #tpu.memory_space<vmem>>, %arg17: memref<1x32xf32, #tpu.memory_space<vmem>>, %arg18: memref<16x32xbf16, #tpu.memory_space<vmem>>, %arg19: memref<1x32xf32, #tpu.memory_space<vmem>>, %arg20: memref<160x32xbf16, #tpu.memory_space<vmem>>, %arg21: memref<1x32xf32, #tpu.memory_space<vmem>>, %arg22: memref<96x64xbf16, #tpu.memory_space<vmem>>, %arg23: memref<1x64xf32, #tpu.memory_space<vmem>>, %arg24: memref<1x64xf32, #tpu.memory_space<vmem>>, %arg25: memref<192x64xbf16, #tpu.memory_space<vmem>>, %arg26: memref<1x64xf32, #tpu.memory_space<vmem>>, %arg27: memref<1x64xf32, #tpu.memory_space<vmem>>, %arg28: memref<32x64xbf16, #tpu.memory_space<vmem>>, %arg29: memref<1x64xf32, #tpu.memory_space<vmem>>, %arg30: memref<2x5x64xf32, #tpu.memory_space<vmem>>, %arg31: memref<2x36x8xbf16, #tpu.memory_space<vmem>>, %arg32: memref<2x36x16xbf16, #tpu.memory_space<vmem>>, %arg33: memref<2x16x16xbf16, #tpu.memory_space<vmem>>, %arg34: memref<2x16x32xbf16, #tpu.memory_space<vmem>>, %arg35: memref<2x7x32xbf16, #tpu.memory_space<vmem>>, %arg36: memref<2x7x64xbf16, #tpu.memory_space<vmem>>, %arg37: memref<2x32x64xf32, #tpu.memory_space<vmem>>) attributes {dimension_semantics = [#tpu.dimension_semantics<arbitrary>], iteration_bounds = array<i64: 1>, scalar_prefetch = 0 : i64, scratch_operands = 7 : i64, tpu.core_type = #tpu.core_type<tc>, window_params = [{pipeline_mode = #tpu.pipeline_mode<synchronous>, transform_indices = @transform_0, window_bounds = array<i64: 2, 32, 8>}, {pipeline_mode = #tpu.pipeline_mode<synchronous>, transform_indices = @transform_1, window_bounds = array<i64: 40, 16>}, {pipeline_mode = #tpu.pipeline_mode<synchronous>, transform_indices = @transform_2, window_bounds = array<i64: 1, 16>}, {pipeline_mode = #tpu.pipeline_mode<synchronous>, transform_indices = @transform_3, window_bounds = array<i64: 1, 16>}, {pipeline_mode = #tpu.pipeline_mode<synchronous>, transform_indices = @transform_4, window_bounds = array<i64: 80, 16>}, {pipeline_mode = #tpu.pipeline_mode<synchronous>, transform_indices = @transform_5, window_bounds = array<i64: 1, 16>}, {pipeline_mode = #tpu.pipeline_mode<synchronous>, transform_indices = @transform_6, window_bounds = array<i64: 1, 16>}, {pipeline_mode = #tpu.pipeline_mode<synchronous>, transform_indices = @transform_7, window_bounds = array<i64: 8, 16>}, {pipeline_mode = #tpu.pipeline_mode<synchronous>, transform_indices = @transform_8, window_bounds = array<i64: 1, 16>}, {pipeline_mode = #tpu.pipeline_mode<synchronous>, transform_indices = @transform_9, window_bounds = array<i64: 80, 16>}, {pipeline_mode = #tpu.pipeline_mode<synchronous>, transform_indices = @transform_10, window_bounds = array<i64: 1, 16>}, {pipeline_mode = #tpu.pipeline_mode<synchronous>, transform_indices = @transform_11, window_bounds = array<i64: 48, 32>}, {pipeline_mode = #tpu.pipeline_mode<synchronous>, transform_indices = @transform_12, window_bounds = array<i64: 1, 32>}, {pipeline_mode = #tpu.pipeline_mode<synchronous>, transform_indices = @transform_13, window_bounds = array<i64: 1, 32>}, {pipeline_mode = #tpu.pipeline_mode<synchronous>, transform_indices = @transform_14, window_bounds = array<i64: 96, 32>}, {pipeline_mode = #tpu.pipeline_mode<synchronous>, transform_indices = @transform_15, window_bounds = array<i64: 1, 32>}, {pipeline_mode = #tpu.pipeline_mode<synchronous>, transform_indices = @transform_16, window_bounds = array<i64: 1, 32>}, {pipeline_mode = #tpu.pipeline_mode<synchronous>, transform_indices = @transform_17, window_bounds = array<i64: 16, 32>}, {pipeline_mode = #tpu.pipeline_mode<synchronous>, transform_indices = @transform_18, window_bounds = array<i64: 1, 32>}, {pipeline_mode = #tpu.pipeline_mode<synchronous>, transform_indices = @transform_19, window_bounds = array<i64: 160, 32>}, {pipeline_mode = #tpu.pipeline_mode<synchronous>, transform_indices = @transform_20, window_bounds = array<i64: 1, 32>}, {pipeline_mode = #tpu.pipeline_mode<synchronous>, transform_indices = @transform_21, window_bounds = array<i64: 96, 64>}, {pipeline_mode = #tpu.pipeline_mode<synchronous>, transform_indices = @transform_22, window_bounds = array<i64: 1, 64>}, {pipeline_mode = #tpu.pipeline_mode<synchronous>, transform_indices = @transform_23, window_bounds = array<i64: 1, 64>}, {pipeline_mode = #tpu.pipeline_mode<synchronous>, transform_indices = @transform_24, window_bounds = array<i64: 192, 64>}, {pipeline_mode = #tpu.pipeline_mode<synchronous>, transform_indices = @transform_25, window_bounds = array<i64: 1, 64>}, {pipeline_mode = #tpu.pipeline_mode<synchronous>, transform_indices = @transform_26, window_bounds = array<i64: 1, 64>}, {pipeline_mode = #tpu.pipeline_mode<synchronous>, transform_indices = @transform_27, window_bounds = array<i64: 32, 64>}, {pipeline_mode = #tpu.pipeline_mode<synchronous>, transform_indices = @transform_28, window_bounds = array<i64: 1, 64>}, {pipeline_mode = #tpu.pipeline_mode<synchronous>, transform_indices = @transform_29, window_bounds = array<i64: 2, 5, 64>}]} {
    %cst = arith.constant 0.000000e+00 : bf16
    %0 = vector.broadcast %cst : bf16 to vector<2x8xbf16>
    %c0 = arith.constant 0 : index
    %c0_0 = arith.constant 0 : index
    %c0_1 = arith.constant 0 : index
    %1 = vector.load %arg31[%c0, %c0_0, %c0_1] : memref<2x36x8xbf16, #tpu.memory_space<vmem>>, vector<1x2x8xbf16>
    %2 = vector.shape_cast %1 : vector<1x2x8xbf16> to vector<2x8xbf16>
    %3 = vector.shape_cast %0 : vector<2x8xbf16> to vector<1x2x8xbf16>
    tpu.vector_store %arg31[%c0, %c0_0, %c0_1], %3 {strides = array<i32>} : memref<2x36x8xbf16, #tpu.memory_space<vmem>>, vector<1x2x8xbf16>,
    %c0_2 = arith.constant 0 : index
    %c34 = arith.constant 34 : index
    %c0_3 = arith.constant 0 : index
    %4 = vector.load %arg31[%c0_2, %c34, %c0_3] : memref<2x36x8xbf16, #tpu.memory_space<vmem>>, vector<1x2x8xbf16>
    %5 = vector.shape_cast %4 : vector<1x2x8xbf16> to vector<2x8xbf16>
    %6 = vector.shape_cast %0 : vector<2x8xbf16> to vector<1x2x8xbf16>
    tpu.vector_store %arg31[%c0_2, %c34, %c0_3], %6 {strides = array<i32>} : memref<2x36x8xbf16, #tpu.memory_space<vmem>>, vector<1x2x8xbf16>,
    %c0_4 = arith.constant 0 : index
    %c0_5 = arith.constant 0 : index
    %c0_6 = arith.constant 0 : index
    %7 = vector.load %arg1[%c0_4, %c0_5, %c0_6] : memref<2x32x8xbf16, #tpu.memory_space<vmem>>, vector<1x32x8xbf16>
    %8 = vector.shape_cast %7 : vector<1x32x8xbf16> to vector<32x8xbf16>
    %c0_7 = arith.constant 0 : index
    %c2 = arith.constant 2 : index
    %c0_8 = arith.constant 0 : index
    %9 = vector.load %arg31[%c0_7, %c2, %c0_8] : memref<2x36x8xbf16, #tpu.memory_space<vmem>>, vector<1x32x8xbf16>
    %10 = vector.shape_cast %9 : vector<1x32x8xbf16> to vector<32x8xbf16>
    %11 = vector.shape_cast %8 : vector<32x8xbf16> to vector<1x32x8xbf16>
    tpu.vector_store %arg31[%c0_7, %c2, %c0_8], %11 {strides = array<i32>} : memref<2x36x8xbf16, #tpu.memory_space<vmem>>, vector<1x32x8xbf16>,
    %c1 = arith.constant 1 : index
    %c0_9 = arith.constant 0 : index
    %c0_10 = arith.constant 0 : index
    %12 = vector.load %arg31[%c1, %c0_9, %c0_10] : memref<2x36x8xbf16, #tpu.memory_space<vmem>>, vector<1x2x8xbf16>
    %13 = vector.shape_cast %12 : vector<1x2x8xbf16> to vector<2x8xbf16>
    %14 = vector.shape_cast %0 : vector<2x8xbf16> to vector<1x2x8xbf16>
    tpu.vector_store %arg31[%c1, %c0_9, %c0_10], %14 {strides = array<i32>} : memref<2x36x8xbf16, #tpu.memory_space<vmem>>, vector<1x2x8xbf16>,
    %c1_11 = arith.constant 1 : index
    %c34_12 = arith.constant 34 : index
    %c0_13 = arith.constant 0 : index
    %15 = vector.load %arg31[%c1_11, %c34_12, %c0_13] : memref<2x36x8xbf16, #tpu.memory_space<vmem>>, vector<1x2x8xbf16>
    %16 = vector.shape_cast %15 : vector<1x2x8xbf16> to vector<2x8xbf16>
    %17 = vector.shape_cast %0 : vector<2x8xbf16> to vector<1x2x8xbf16>
    tpu.vector_store %arg31[%c1_11, %c34_12, %c0_13], %17 {strides = array<i32>} : memref<2x36x8xbf16, #tpu.memory_space<vmem>>, vector<1x2x8xbf16>,
    %c1_14 = arith.constant 1 : index
    %c0_15 = arith.constant 0 : index
    %c0_16 = arith.constant 0 : index
    %18 = vector.load %arg1[%c1_14, %c0_15, %c0_16] : memref<2x32x8xbf16, #tpu.memory_space<vmem>>, vector<1x32x8xbf16>
    %19 = vector.shape_cast %18 : vector<1x32x8xbf16> to vector<32x8xbf16>
    %c1_17 = arith.constant 1 : index
    %c2_18 = arith.constant 2 : index
    %c0_19 = arith.constant 0 : index
    %20 = vector.load %arg31[%c1_17, %c2_18, %c0_19] : memref<2x36x8xbf16, #tpu.memory_space<vmem>>, vector<1x32x8xbf16>
    %21 = vector.shape_cast %20 : vector<1x32x8xbf16> to vector<32x8xbf16>
    %22 = vector.shape_cast %19 : vector<32x8xbf16> to vector<1x32x8xbf16>
    tpu.vector_store %arg31[%c1_17, %c2_18, %c0_19], %22 {strides = array<i32>} : memref<2x36x8xbf16, #tpu.memory_space<vmem>>, vector<1x32x8xbf16>,
    %c0_20 = arith.constant 0 : index
    %c0_21 = arith.constant 0 : index
    %23 = vector.load %arg10[%c0_20, %c0_21] : memref<80x16xbf16, #tpu.memory_space<vmem>>, vector<80x16xbf16>
    %c0_22 = arith.constant 0 : index
    %c0_23 = arith.constant 0 : index
    %24 = vector.load %arg11[%c0_22, %c0_23] : memref<1x16xf32, #tpu.memory_space<vmem>>, vector<1x16xf32>
    %c0_24 = arith.constant 0 : index
    %c0_25 = arith.constant 0 : index
    %25 = vector.load %arg20[%c0_24, %c0_25] : memref<160x32xbf16, #tpu.memory_space<vmem>>, vector<160x32xbf16>
    %c0_26 = arith.constant 0 : index
    %c0_27 = arith.constant 0 : index
    %26 = vector.load %arg21[%c0_26, %c0_27] : memref<1x32xf32, #tpu.memory_space<vmem>>, vector<1x32xf32>
    %cst_28 = arith.constant 0.000000e+00 : bf16
    %27 = vector.broadcast %cst_28 : bf16 to vector<1x16xbf16>
    %c0_29 = arith.constant 0 : index
    %c0_30 = arith.constant 0 : index
    %28 = vector.load %arg2[%c0_29, %c0_30] : memref<40x16xbf16, #tpu.memory_space<vmem>>, vector<40x16xbf16>
    %cst_31 = arith.constant 0.000000e+00 : f32
    %29 = vector.broadcast %cst_31 : f32 to vector<1x16xf32>
    %cst_32 = arith.constant 0.000000e+00 : f32
    %30 = vector.broadcast %cst_32 : f32 to vector<1x16xf32>
    %c0_33 = arith.constant 0 : index
    %c0_34 = arith.constant 0 : index
    %c0_35 = arith.constant 0 : index
    %31 = vector.load %arg31[%c0_33, %c0_34, %c0_35] : memref<2x36x8xbf16, #tpu.memory_space<vmem>>, vector<1x36x8xbf16>
    %32 = vector.shape_cast %31 : vector<1x36x8xbf16> to vector<36x8xbf16>
    %33 = vector.extract_strided_slice %32 {offsets = [0, 0], sizes = [32, 8], strides = [1, 1]} : vector<36x8xbf16> to vector<32x8xbf16>
    %34 = vector.extract_strided_slice %32 {offsets = [1, 0], sizes = [32, 8], strides = [1, 1]} : vector<36x8xbf16> to vector<32x8xbf16>
    %35 = vector.extract_strided_slice %32 {offsets = [2, 0], sizes = [32, 8], strides = [1, 1]} : vector<36x8xbf16> to vector<32x8xbf16>
    %36 = vector.extract_strided_slice %32 {offsets = [3, 0], sizes = [32, 8], strides = [1, 1]} : vector<36x8xbf16> to vector<32x8xbf16>
    %37 = vector.extract_strided_slice %32 {offsets = [4, 0], sizes = [32, 8], strides = [1, 1]} : vector<36x8xbf16> to vector<32x8xbf16>
    %38 = tpu.concatenate %33, %34, %35, %36, %37 in 1 : vector<32x8xbf16>, vector<32x8xbf16>, vector<32x8xbf16>, vector<32x8xbf16>, vector<32x8xbf16> -> vector<32x40xbf16>
    %cst_36 = arith.constant dense<0.000000e+00> : vector<32x16xf32>
    %39 = tpu.matmul %38, %28, %cst_36 {dimension_numbers = #tpu.dot_dimension_numbers<[1], [0], [0], [1], [0, 0, 1, 1], [], []>} : vector<32x40xbf16>, vector<40x16xbf16>, vector<32x16xf32> -> vector<32x16xf32>
    %cst_37 = arith.constant dense<0.000000e+00> : vector<16xf32>
    %40 = vector.multi_reduction <add>, %39, %cst_37 [0] : vector<32x16xf32> to vector<16xf32>
    %41 = vector.shape_cast %40 : vector<16xf32> to vector<1x16xf32>
    %42 = arith.addf %29, %41 : vector<1x16xf32>
    %43 = arith.mulf %39, %39 : vector<32x16xf32>
    %cst_38 = arith.constant dense<0.000000e+00> : vector<16xf32>
    %44 = vector.multi_reduction <add>, %43, %cst_38 [0] : vector<32x16xf32> to vector<16xf32>
    %45 = vector.shape_cast %44 : vector<16xf32> to vector<1x16xf32>
    %46 = arith.addf %30, %45 : vector<1x16xf32>
    %c0_39 = arith.constant 0 : index
    %c0_40 = arith.constant 0 : index
    %c0_41 = arith.constant 0 : index
    %47 = vector.load %arg37[%c0_39, %c0_40, %c0_41] : memref<2x32x64xf32, #tpu.memory_space<vmem>>, vector<1x32x16xf32>
    %48 = vector.shape_cast %47 : vector<1x32x16xf32> to vector<32x16xf32>
    %49 = vector.shape_cast %39 : vector<32x16xf32> to vector<1x32x16xf32>
    tpu.vector_store %arg37[%c0_39, %c0_40, %c0_41], %49 {strides = array<i32>} : memref<2x32x64xf32, #tpu.memory_space<vmem>>, vector<1x32x16xf32>,
    %c1_42 = arith.constant 1 : index
    %c0_43 = arith.constant 0 : index
    %c0_44 = arith.constant 0 : index
    %50 = vector.load %arg31[%c1_42, %c0_43, %c0_44] : memref<2x36x8xbf16, #tpu.memory_space<vmem>>, vector<1x36x8xbf16>
    %51 = vector.shape_cast %50 : vector<1x36x8xbf16> to vector<36x8xbf16>
    %52 = vector.extract_strided_slice %51 {offsets = [0, 0], sizes = [32, 8], strides = [1, 1]} : vector<36x8xbf16> to vector<32x8xbf16>
    %53 = vector.extract_strided_slice %51 {offsets = [1, 0], sizes = [32, 8], strides = [1, 1]} : vector<36x8xbf16> to vector<32x8xbf16>
    %54 = vector.extract_strided_slice %51 {offsets = [2, 0], sizes = [32, 8], strides = [1, 1]} : vector<36x8xbf16> to vector<32x8xbf16>
    %55 = vector.extract_strided_slice %51 {offsets = [3, 0], sizes = [32, 8], strides = [1, 1]} : vector<36x8xbf16> to vector<32x8xbf16>
    %56 = vector.extract_strided_slice %51 {offsets = [4, 0], sizes = [32, 8], strides = [1, 1]} : vector<36x8xbf16> to vector<32x8xbf16>
    %57 = tpu.concatenate %52, %53, %54, %55, %56 in 1 : vector<32x8xbf16>, vector<32x8xbf16>, vector<32x8xbf16>, vector<32x8xbf16>, vector<32x8xbf16> -> vector<32x40xbf16>
    %cst_45 = arith.constant dense<0.000000e+00> : vector<32x16xf32>
    %58 = tpu.matmul %57, %28, %cst_45 {dimension_numbers = #tpu.dot_dimension_numbers<[1], [0], [0], [1], [0, 0, 1, 1], [], []>} : vector<32x40xbf16>, vector<40x16xbf16>, vector<32x16xf32> -> vector<32x16xf32>
    %cst_46 = arith.constant dense<0.000000e+00> : vector<16xf32>
    %59 = vector.multi_reduction <add>, %58, %cst_46 [0] : vector<32x16xf32> to vector<16xf32>
    %60 = vector.shape_cast %59 : vector<16xf32> to vector<1x16xf32>
    %61 = arith.addf %42, %60 : vector<1x16xf32>
    %62 = arith.mulf %58, %58 : vector<32x16xf32>
    %cst_47 = arith.constant dense<0.000000e+00> : vector<16xf32>
    %63 = vector.multi_reduction <add>, %62, %cst_47 [0] : vector<32x16xf32> to vector<16xf32>
    %64 = vector.shape_cast %63 : vector<16xf32> to vector<1x16xf32>
    %65 = arith.addf %46, %64 : vector<1x16xf32>
    %c1_48 = arith.constant 1 : index
    %c0_49 = arith.constant 0 : index
    %c0_50 = arith.constant 0 : index
    %66 = vector.load %arg37[%c1_48, %c0_49, %c0_50] : memref<2x32x64xf32, #tpu.memory_space<vmem>>, vector<1x32x16xf32>
    %67 = vector.shape_cast %66 : vector<1x32x16xf32> to vector<32x16xf32>
    %68 = vector.shape_cast %58 : vector<32x16xf32> to vector<1x32x16xf32>
    tpu.vector_store %arg37[%c1_48, %c0_49, %c0_50], %68 {strides = array<i32>} : memref<2x32x64xf32, #tpu.memory_space<vmem>>, vector<1x32x16xf32>,
    %cst_51 = arith.constant 1.562500e-02 : f32
    %69 = vector.broadcast %cst_51 : f32 to vector<1x16xf32>
    %70 = arith.mulf %61, %69 : vector<1x16xf32>
    %cst_52 = arith.constant 1.562500e-02 : f32
    %71 = vector.broadcast %cst_52 : f32 to vector<1x16xf32>
    %72 = arith.mulf %65, %71 : vector<1x16xf32>
    %73 = arith.mulf %70, %70 : vector<1x16xf32>
    %74 = arith.subf %72, %73 : vector<1x16xf32>
    %cst_53 = arith.constant 0.000000e+00 : f32
    %75 = vector.broadcast %cst_53 : f32 to vector<1x16xf32>
    %76 = arith.maximumf %74, %75 : vector<1x16xf32>
    %c0_54 = arith.constant 0 : index
    %c0_55 = arith.constant 0 : index
    %77 = vector.load %arg3[%c0_54, %c0_55] : memref<1x16xf32, #tpu.memory_space<vmem>>, vector<1x16xf32>
    %cst_56 = arith.constant 9.99999974E-6 : f32
    %78 = vector.broadcast %cst_56 : f32 to vector<1x16xf32>
    %79 = arith.addf %76, %78 : vector<1x16xf32>
    %80 = math.rsqrt %79 : vector<1x16xf32>
    %81 = arith.mulf %77, %80 : vector<1x16xf32>
    %c0_57 = arith.constant 0 : index
    %c0_58 = arith.constant 0 : index
    %82 = vector.load %arg4[%c0_57, %c0_58] : memref<1x16xf32, #tpu.memory_space<vmem>>, vector<1x16xf32>
    %83 = arith.mulf %70, %81 : vector<1x16xf32>
    %84 = arith.subf %82, %83 : vector<1x16xf32>
    %cst_59 = arith.constant 0.000000e+00 : bf16
    %85 = vector.broadcast %cst_59 : bf16 to vector<2x16xbf16>
    %c0_60 = arith.constant 0 : index
    %c0_61 = arith.constant 0 : index
    %c0_62 = arith.constant 0 : index
    %86 = vector.load %arg32[%c0_60, %c0_61, %c0_62] : memref<2x36x16xbf16, #tpu.memory_space<vmem>>, vector<1x2x16xbf16>
    %87 = vector.shape_cast %86 : vector<1x2x16xbf16> to vector<2x16xbf16>
    %88 = vector.shape_cast %85 : vector<2x16xbf16> to vector<1x2x16xbf16>
    tpu.vector_store %arg32[%c0_60, %c0_61, %c0_62], %88 {strides = array<i32>} : memref<2x36x16xbf16, #tpu.memory_space<vmem>>, vector<1x2x16xbf16>,
    %c0_63 = arith.constant 0 : index
    %c34_64 = arith.constant 34 : index
    %c0_65 = arith.constant 0 : index
    %89 = vector.load %arg32[%c0_63, %c34_64, %c0_65] : memref<2x36x16xbf16, #tpu.memory_space<vmem>>, vector<1x2x16xbf16>
    %90 = vector.shape_cast %89 : vector<1x2x16xbf16> to vector<2x16xbf16>
    %91 = vector.shape_cast %85 : vector<2x16xbf16> to vector<1x2x16xbf16>
    tpu.vector_store %arg32[%c0_63, %c34_64, %c0_65], %91 {strides = array<i32>} : memref<2x36x16xbf16, #tpu.memory_space<vmem>>, vector<1x2x16xbf16>,
    %c0_66 = arith.constant 0 : index
    %c0_67 = arith.constant 0 : index
    %c0_68 = arith.constant 0 : index
    %92 = vector.load %arg37[%c0_66, %c0_67, %c0_68] : memref<2x32x64xf32, #tpu.memory_space<vmem>>, vector<1x32x16xf32>
    %93 = vector.shape_cast %92 : vector<1x32x16xf32> to vector<32x16xf32>
    %94 = vector.broadcast %81 : vector<1x16xf32> to vector<32x16xf32>
    %95 = arith.mulf %93, %94 : vector<32x16xf32>
    %96 = vector.broadcast %84 : vector<1x16xf32> to vector<32x16xf32>
    %97 = arith.addf %95, %96 : vector<32x16xf32>
    %cst_69 = arith.constant 0.000000e+00 : f32
    %98 = vector.broadcast %cst_69 : f32 to vector<32x16xf32>
    %99 = arith.maximumf %97, %98 : vector<32x16xf32>
    %100 = arith.truncf %99 : vector<32x16xf32> to vector<32x16xbf16>
    %c0_70 = arith.constant 0 : index
    %c2_71 = arith.constant 2 : index
    %c0_72 = arith.constant 0 : index
    %101 = vector.load %arg32[%c0_70, %c2_71, %c0_72] : memref<2x36x16xbf16, #tpu.memory_space<vmem>>, vector<1x32x16xbf16>
    %102 = vector.shape_cast %101 : vector<1x32x16xbf16> to vector<32x16xbf16>
    %103 = vector.shape_cast %100 : vector<32x16xbf16> to vector<1x32x16xbf16>
    tpu.vector_store %arg32[%c0_70, %c2_71, %c0_72], %103 {strides = array<i32>} : memref<2x36x16xbf16, #tpu.memory_space<vmem>>, vector<1x32x16xbf16>,
    %c1_73 = arith.constant 1 : index
    %c0_74 = arith.constant 0 : index
    %c0_75 = arith.constant 0 : index
    %104 = vector.load %arg32[%c1_73, %c0_74, %c0_75] : memref<2x36x16xbf16, #tpu.memory_space<vmem>>, vector<1x2x16xbf16>
    %105 = vector.shape_cast %104 : vector<1x2x16xbf16> to vector<2x16xbf16>
    %106 = vector.shape_cast %85 : vector<2x16xbf16> to vector<1x2x16xbf16>
    tpu.vector_store %arg32[%c1_73, %c0_74, %c0_75], %106 {strides = array<i32>} : memref<2x36x16xbf16, #tpu.memory_space<vmem>>, vector<1x2x16xbf16>,
    %c1_76 = arith.constant 1 : index
    %c34_77 = arith.constant 34 : index
    %c0_78 = arith.constant 0 : index
    %107 = vector.load %arg32[%c1_76, %c34_77, %c0_78] : memref<2x36x16xbf16, #tpu.memory_space<vmem>>, vector<1x2x16xbf16>
    %108 = vector.shape_cast %107 : vector<1x2x16xbf16> to vector<2x16xbf16>
    %109 = vector.shape_cast %85 : vector<2x16xbf16> to vector<1x2x16xbf16>
    tpu.vector_store %arg32[%c1_76, %c34_77, %c0_78], %109 {strides = array<i32>} : memref<2x36x16xbf16, #tpu.memory_space<vmem>>, vector<1x2x16xbf16>,
    %c1_79 = arith.constant 1 : index
    %c0_80 = arith.constant 0 : index
    %c0_81 = arith.constant 0 : index
    %110 = vector.load %arg37[%c1_79, %c0_80, %c0_81] : memref<2x32x64xf32, #tpu.memory_space<vmem>>, vector<1x32x16xf32>
    %111 = vector.shape_cast %110 : vector<1x32x16xf32> to vector<32x16xf32>
    %112 = vector.broadcast %81 : vector<1x16xf32> to vector<32x16xf32>
    %113 = arith.mulf %111, %112 : vector<32x16xf32>
    %114 = vector.broadcast %84 : vector<1x16xf32> to vector<32x16xf32>
    %115 = arith.addf %113, %114 : vector<32x16xf32>
    %cst_82 = arith.constant 0.000000e+00 : f32
    %116 = vector.broadcast %cst_82 : f32 to vector<32x16xf32>
    %117 = arith.maximumf %115, %116 : vector<32x16xf32>
    %118 = arith.truncf %117 : vector<32x16xf32> to vector<32x16xbf16>
    %c1_83 = arith.constant 1 : index
    %c2_84 = arith.constant 2 : index
    %c0_85 = arith.constant 0 : index
    %119 = vector.load %arg32[%c1_83, %c2_84, %c0_85] : memref<2x36x16xbf16, #tpu.memory_space<vmem>>, vector<1x32x16xbf16>
    %120 = vector.shape_cast %119 : vector<1x32x16xbf16> to vector<32x16xbf16>
    %121 = vector.shape_cast %118 : vector<32x16xbf16> to vector<1x32x16xbf16>
    tpu.vector_store %arg32[%c1_83, %c2_84, %c0_85], %121 {strides = array<i32>} : memref<2x36x16xbf16, #tpu.memory_space<vmem>>, vector<1x32x16xbf16>,
    %c0_86 = arith.constant 0 : index
    %c0_87 = arith.constant 0 : index
    %122 = vector.load %arg5[%c0_86, %c0_87] : memref<80x16xbf16, #tpu.memory_space<vmem>>, vector<80x16xbf16>
    %cst_88 = arith.constant 0.000000e+00 : f32
    %123 = vector.broadcast %cst_88 : f32 to vector<1x16xf32>
    %cst_89 = arith.constant 0.000000e+00 : f32
    %124 = vector.broadcast %cst_89 : f32 to vector<1x16xf32>
    %c0_90 = arith.constant 0 : index
    %c0_91 = arith.constant 0 : index
    %c0_92 = arith.constant 0 : index
    %125 = vector.load %arg32[%c0_90, %c0_91, %c0_92] : memref<2x36x16xbf16, #tpu.memory_space<vmem>>, vector<1x36x16xbf16>
    %126 = vector.shape_cast %125 : vector<1x36x16xbf16> to vector<36x16xbf16>
    %127 = vector.extract_strided_slice %126 {offsets = [0, 0], sizes = [32, 16], strides = [1, 1]} : vector<36x16xbf16> to vector<32x16xbf16>
    %128 = vector.extract_strided_slice %126 {offsets = [1, 0], sizes = [32, 16], strides = [1, 1]} : vector<36x16xbf16> to vector<32x16xbf16>
    %129 = vector.extract_strided_slice %126 {offsets = [2, 0], sizes = [32, 16], strides = [1, 1]} : vector<36x16xbf16> to vector<32x16xbf16>
    %130 = vector.extract_strided_slice %126 {offsets = [3, 0], sizes = [32, 16], strides = [1, 1]} : vector<36x16xbf16> to vector<32x16xbf16>
    %131 = vector.extract_strided_slice %126 {offsets = [4, 0], sizes = [32, 16], strides = [1, 1]} : vector<36x16xbf16> to vector<32x16xbf16>
    %132 = tpu.concatenate %127, %128, %129, %130, %131 in 1 : vector<32x16xbf16>, vector<32x16xbf16>, vector<32x16xbf16>, vector<32x16xbf16>, vector<32x16xbf16> -> vector<32x80xbf16>
    %cst_93 = arith.constant dense<0.000000e+00> : vector<32x16xf32>
    %133 = tpu.matmul %132, %122, %cst_93 {dimension_numbers = #tpu.dot_dimension_numbers<[1], [0], [0], [1], [0, 0, 1, 1], [], []>} : vector<32x80xbf16>, vector<80x16xbf16>, vector<32x16xf32> -> vector<32x16xf32>
    %cst_94 = arith.constant dense<0.000000e+00> : vector<16xf32>
    %134 = vector.multi_reduction <add>, %133, %cst_94 [0] : vector<32x16xf32> to vector<16xf32>
    %135 = vector.shape_cast %134 : vector<16xf32> to vector<1x16xf32>
    %136 = arith.addf %123, %135 : vector<1x16xf32>
    %137 = arith.mulf %133, %133 : vector<32x16xf32>
    %cst_95 = arith.constant dense<0.000000e+00> : vector<16xf32>
    %138 = vector.multi_reduction <add>, %137, %cst_95 [0] : vector<32x16xf32> to vector<16xf32>
    %139 = vector.shape_cast %138 : vector<16xf32> to vector<1x16xf32>
    %140 = arith.addf %124, %139 : vector<1x16xf32>
    %c0_96 = arith.constant 0 : index
    %c0_97 = arith.constant 0 : index
    %c0_98 = arith.constant 0 : index
    %141 = vector.load %arg37[%c0_96, %c0_97, %c0_98] : memref<2x32x64xf32, #tpu.memory_space<vmem>>, vector<1x32x16xf32>
    %142 = vector.shape_cast %141 : vector<1x32x16xf32> to vector<32x16xf32>
    %143 = vector.shape_cast %133 : vector<32x16xf32> to vector<1x32x16xf32>
    tpu.vector_store %arg37[%c0_96, %c0_97, %c0_98], %143 {strides = array<i32>} : memref<2x32x64xf32, #tpu.memory_space<vmem>>, vector<1x32x16xf32>,
    %c1_99 = arith.constant 1 : index
    %c0_100 = arith.constant 0 : index
    %c0_101 = arith.constant 0 : index
    %144 = vector.load %arg32[%c1_99, %c0_100, %c0_101] : memref<2x36x16xbf16, #tpu.memory_space<vmem>>, vector<1x36x16xbf16>
    %145 = vector.shape_cast %144 : vector<1x36x16xbf16> to vector<36x16xbf16>
    %146 = vector.extract_strided_slice %145 {offsets = [0, 0], sizes = [32, 16], strides = [1, 1]} : vector<36x16xbf16> to vector<32x16xbf16>
    %147 = vector.extract_strided_slice %145 {offsets = [1, 0], sizes = [32, 16], strides = [1, 1]} : vector<36x16xbf16> to vector<32x16xbf16>
    %148 = vector.extract_strided_slice %145 {offsets = [2, 0], sizes = [32, 16], strides = [1, 1]} : vector<36x16xbf16> to vector<32x16xbf16>
    %149 = vector.extract_strided_slice %145 {offsets = [3, 0], sizes = [32, 16], strides = [1, 1]} : vector<36x16xbf16> to vector<32x16xbf16>
    %150 = vector.extract_strided_slice %145 {offsets = [4, 0], sizes = [32, 16], strides = [1, 1]} : vector<36x16xbf16> to vector<32x16xbf16>
    %151 = tpu.concatenate %146, %147, %148, %149, %150 in 1 : vector<32x16xbf16>, vector<32x16xbf16>, vector<32x16xbf16>, vector<32x16xbf16>, vector<32x16xbf16> -> vector<32x80xbf16>
    %cst_102 = arith.constant dense<0.000000e+00> : vector<32x16xf32>
    %152 = tpu.matmul %151, %122, %cst_102 {dimension_numbers = #tpu.dot_dimension_numbers<[1], [0], [0], [1], [0, 0, 1, 1], [], []>} : vector<32x80xbf16>, vector<80x16xbf16>, vector<32x16xf32> -> vector<32x16xf32>
    %cst_103 = arith.constant dense<0.000000e+00> : vector<16xf32>
    %153 = vector.multi_reduction <add>, %152, %cst_103 [0] : vector<32x16xf32> to vector<16xf32>
    %154 = vector.shape_cast %153 : vector<16xf32> to vector<1x16xf32>
    %155 = arith.addf %136, %154 : vector<1x16xf32>
    %156 = arith.mulf %152, %152 : vector<32x16xf32>
    %cst_104 = arith.constant dense<0.000000e+00> : vector<16xf32>
    %157 = vector.multi_reduction <add>, %156, %cst_104 [0] : vector<32x16xf32> to vector<16xf32>
    %158 = vector.shape_cast %157 : vector<16xf32> to vector<1x16xf32>
    %159 = arith.addf %140, %158 : vector<1x16xf32>
    %c1_105 = arith.constant 1 : index
    %c0_106 = arith.constant 0 : index
    %c0_107 = arith.constant 0 : index
    %160 = vector.load %arg37[%c1_105, %c0_106, %c0_107] : memref<2x32x64xf32, #tpu.memory_space<vmem>>, vector<1x32x16xf32>
    %161 = vector.shape_cast %160 : vector<1x32x16xf32> to vector<32x16xf32>
    %162 = vector.shape_cast %152 : vector<32x16xf32> to vector<1x32x16xf32>
    tpu.vector_store %arg37[%c1_105, %c0_106, %c0_107], %162 {strides = array<i32>} : memref<2x32x64xf32, #tpu.memory_space<vmem>>, vector<1x32x16xf32>,
    %cst_108 = arith.constant 1.562500e-02 : f32
    %163 = vector.broadcast %cst_108 : f32 to vector<1x16xf32>
    %164 = arith.mulf %155, %163 : vector<1x16xf32>
    %cst_109 = arith.constant 1.562500e-02 : f32
    %165 = vector.broadcast %cst_109 : f32 to vector<1x16xf32>
    %166 = arith.mulf %159, %165 : vector<1x16xf32>
    %167 = arith.mulf %164, %164 : vector<1x16xf32>
    %168 = arith.subf %166, %167 : vector<1x16xf32>
    %cst_110 = arith.constant 0.000000e+00 : f32
    %169 = vector.broadcast %cst_110 : f32 to vector<1x16xf32>
    %170 = arith.maximumf %168, %169 : vector<1x16xf32>
    %c0_111 = arith.constant 0 : index
    %c0_112 = arith.constant 0 : index
    %171 = vector.load %arg6[%c0_111, %c0_112] : memref<1x16xf32, #tpu.memory_space<vmem>>, vector<1x16xf32>
    %cst_113 = arith.constant 9.99999974E-6 : f32
    %172 = vector.broadcast %cst_113 : f32 to vector<1x16xf32>
    %173 = arith.addf %170, %172 : vector<1x16xf32>
    %174 = math.rsqrt %173 : vector<1x16xf32>
    %175 = arith.mulf %171, %174 : vector<1x16xf32>
    %c0_114 = arith.constant 0 : index
    %c0_115 = arith.constant 0 : index
    %176 = vector.load %arg7[%c0_114, %c0_115] : memref<1x16xf32, #tpu.memory_space<vmem>>, vector<1x16xf32>
    %177 = arith.mulf %164, %175 : vector<1x16xf32>
    %178 = arith.subf %176, %177 : vector<1x16xf32>
    %c0_116 = arith.constant 0 : index
    %c0_117 = arith.constant 0 : index
    %179 = vector.load %arg8[%c0_116, %c0_117] : memref<8x16xbf16, #tpu.memory_space<vmem>>, vector<8x16xbf16>
    %c0_118 = arith.constant 0 : index
    %c0_119 = arith.constant 0 : index
    %180 = vector.load %arg9[%c0_118, %c0_119] : memref<1x16xf32, #tpu.memory_space<vmem>>, vector<1x16xf32>
    %c0_120 = arith.constant 0 : index
    %c2_121 = arith.constant 2 : index
    %c0_122 = arith.constant 0 : index
    %181 = vector.load %arg31[%c0_120, %c2_121, %c0_122] : memref<2x36x8xbf16, #tpu.memory_space<vmem>>, vector<1x32x8xbf16>
    %182 = vector.shape_cast %181 : vector<1x32x8xbf16> to vector<32x8xbf16>
    %cst_123 = arith.constant dense<0.000000e+00> : vector<32x16xf32>
    %183 = tpu.matmul %182, %179, %cst_123 {dimension_numbers = #tpu.dot_dimension_numbers<[1], [0], [0], [1], [0, 0, 1, 1], [], []>} : vector<32x8xbf16>, vector<8x16xbf16>, vector<32x16xf32> -> vector<32x16xf32>
    %184 = vector.broadcast %180 : vector<1x16xf32> to vector<32x16xf32>
    %185 = arith.addf %183, %184 : vector<32x16xf32>
    %c0_124 = arith.constant 0 : index
    %c0_125 = arith.constant 0 : index
    %c0_126 = arith.constant 0 : index
    %186 = vector.load %arg37[%c0_124, %c0_125, %c0_126] : memref<2x32x64xf32, #tpu.memory_space<vmem>>, vector<1x32x16xf32>
    %187 = vector.shape_cast %186 : vector<1x32x16xf32> to vector<32x16xf32>
    %188 = vector.broadcast %175 : vector<1x16xf32> to vector<32x16xf32>
    %189 = arith.mulf %187, %188 : vector<32x16xf32>
    %190 = vector.broadcast %178 : vector<1x16xf32> to vector<32x16xf32>
    %191 = arith.addf %189, %190 : vector<32x16xf32>
    %192 = arith.addf %191, %185 : vector<32x16xf32>
    %cst_127 = arith.constant 0.000000e+00 : f32
    %193 = vector.broadcast %cst_127 : f32 to vector<32x16xf32>
    %194 = arith.maximumf %192, %193 : vector<32x16xf32>
    %195 = arith.truncf %194 : vector<32x16xf32> to vector<32x16xbf16>
    %196 = vector.extract_strided_slice %195 {offsets = [0, 0], sizes = [28, 16], strides = [1, 1]} : vector<32x16xbf16> to vector<28x16xbf16>
    %197 = vector.extract_strided_slice %195 {offsets = [1, 0], sizes = [28, 16], strides = [1, 1]} : vector<32x16xbf16> to vector<28x16xbf16>
    %198 = vector.extract_strided_slice %195 {offsets = [2, 0], sizes = [28, 16], strides = [1, 1]} : vector<32x16xbf16> to vector<28x16xbf16>
    %199 = vector.extract_strided_slice %195 {offsets = [3, 0], sizes = [28, 16], strides = [1, 1]} : vector<32x16xbf16> to vector<28x16xbf16>
    %200 = vector.extract_strided_slice %195 {offsets = [4, 0], sizes = [28, 16], strides = [1, 1]} : vector<32x16xbf16> to vector<28x16xbf16>
    %201 = tpu.concatenate %196, %197, %198, %199, %200 in 1 : vector<28x16xbf16>, vector<28x16xbf16>, vector<28x16xbf16>, vector<28x16xbf16>, vector<28x16xbf16> -> vector<28x80xbf16>
    %202 = tpu.iota {dimensions = array<i32: 0>} : vector<14x28xi32>
    %203 = tpu.iota {dimensions = array<i32: 1>} : vector<14x28xi32>
    %c2_i32 = arith.constant 2 : i32
    %204 = vector.broadcast %c2_i32 : i32 to vector<14x28xi32>
    %205 = arith.muli %204, %202 : vector<14x28xi32>
    %206 = arith.cmpi eq, %203, %205 : vector<14x28xi32>
    %207 = arith.extui %206 : vector<14x28xi1> to vector<14x28xi32>
    %208 = arith.sitofp %207 : vector<14x28xi32> to vector<14x28xf32>
    %209 = arith.truncf %208 : vector<14x28xf32> to vector<14x28xbf16>
    %cst_128 = arith.constant dense<0.000000e+00> : vector<14x80xf32>
    %210 = tpu.matmul %209, %201, %cst_128 {dimension_numbers = #tpu.dot_dimension_numbers<[1], [0], [0], [1], [0, 0, 1, 1], [], []>} : vector<14x28xbf16>, vector<28x80xbf16>, vector<14x80xf32> -> vector<14x80xf32>
    %211 = arith.truncf %210 : vector<14x80xf32> to vector<14x80xbf16>
    %cst_129 = arith.constant dense<0.000000e+00> : vector<14x16xf32>
    %212 = tpu.matmul %211, %23, %cst_129 {dimension_numbers = #tpu.dot_dimension_numbers<[1], [0], [0], [1], [0, 0, 1, 1], [], []>} : vector<14x80xbf16>, vector<80x16xbf16>, vector<14x16xf32> -> vector<14x16xf32>
    %213 = vector.broadcast %24 : vector<1x16xf32> to vector<14x16xf32>
    %214 = arith.addf %212, %213 : vector<14x16xf32>
    %c0_130 = arith.constant 0 : index
    %c0_131 = arith.constant 0 : index
    %c0_132 = arith.constant 0 : index
    %215 = vector.load %arg33[%c0_130, %c0_131, %c0_132] : memref<2x16x16xbf16, #tpu.memory_space<vmem>>, vector<1x1x16xbf16>
    %216 = vector.shape_cast %215 : vector<1x1x16xbf16> to vector<1x16xbf16>
    %217 = vector.shape_cast %27 : vector<1x16xbf16> to vector<1x1x16xbf16>
    tpu.vector_store %arg33[%c0_130, %c0_131, %c0_132], %217 {strides = array<i32>} : memref<2x16x16xbf16, #tpu.memory_space<vmem>>, vector<1x1x16xbf16>,
    %c0_133 = arith.constant 0 : index
    %c15 = arith.constant 15 : index
    %c0_134 = arith.constant 0 : index
    %218 = vector.load %arg33[%c0_133, %c15, %c0_134] : memref<2x16x16xbf16, #tpu.memory_space<vmem>>, vector<1x1x16xbf16>
    %219 = vector.shape_cast %218 : vector<1x1x16xbf16> to vector<1x16xbf16>
    %220 = vector.shape_cast %27 : vector<1x16xbf16> to vector<1x1x16xbf16>
    tpu.vector_store %arg33[%c0_133, %c15, %c0_134], %220 {strides = array<i32>} : memref<2x16x16xbf16, #tpu.memory_space<vmem>>, vector<1x1x16xbf16>,
    %221 = arith.truncf %214 : vector<14x16xf32> to vector<14x16xbf16>
    %c0_135 = arith.constant 0 : index
    %c1_136 = arith.constant 1 : index
    %c0_137 = arith.constant 0 : index
    %222 = vector.load %arg33[%c0_135, %c1_136, %c0_137] : memref<2x16x16xbf16, #tpu.memory_space<vmem>>, vector<1x14x16xbf16>
    %223 = vector.shape_cast %222 : vector<1x14x16xbf16> to vector<14x16xbf16>
    %224 = vector.shape_cast %221 : vector<14x16xbf16> to vector<1x14x16xbf16>
    tpu.vector_store %arg33[%c0_135, %c1_136, %c0_137], %224 {strides = array<i32>} : memref<2x16x16xbf16, #tpu.memory_space<vmem>>, vector<1x14x16xbf16>,
    %c1_138 = arith.constant 1 : index
    %c2_139 = arith.constant 2 : index
    %c0_140 = arith.constant 0 : index
    %225 = vector.load %arg31[%c1_138, %c2_139, %c0_140] : memref<2x36x8xbf16, #tpu.memory_space<vmem>>, vector<1x32x8xbf16>
    %226 = vector.shape_cast %225 : vector<1x32x8xbf16> to vector<32x8xbf16>
    %cst_141 = arith.constant dense<0.000000e+00> : vector<32x16xf32>
    %227 = tpu.matmul %226, %179, %cst_141 {dimension_numbers = #tpu.dot_dimension_numbers<[1], [0], [0], [1], [0, 0, 1, 1], [], []>} : vector<32x8xbf16>, vector<8x16xbf16>, vector<32x16xf32> -> vector<32x16xf32>
    %228 = vector.broadcast %180 : vector<1x16xf32> to vector<32x16xf32>
    %229 = arith.addf %227, %228 : vector<32x16xf32>
    %c1_142 = arith.constant 1 : index
    %c0_143 = arith.constant 0 : index
    %c0_144 = arith.constant 0 : index
    %230 = vector.load %arg37[%c1_142, %c0_143, %c0_144] : memref<2x32x64xf32, #tpu.memory_space<vmem>>, vector<1x32x16xf32>
    %231 = vector.shape_cast %230 : vector<1x32x16xf32> to vector<32x16xf32>
    %232 = vector.broadcast %175 : vector<1x16xf32> to vector<32x16xf32>
    %233 = arith.mulf %231, %232 : vector<32x16xf32>
    %234 = vector.broadcast %178 : vector<1x16xf32> to vector<32x16xf32>
    %235 = arith.addf %233, %234 : vector<32x16xf32>
    %236 = arith.addf %235, %229 : vector<32x16xf32>
    %cst_145 = arith.constant 0.000000e+00 : f32
    %237 = vector.broadcast %cst_145 : f32 to vector<32x16xf32>
    %238 = arith.maximumf %236, %237 : vector<32x16xf32>
    %239 = arith.truncf %238 : vector<32x16xf32> to vector<32x16xbf16>
    %240 = vector.extract_strided_slice %239 {offsets = [0, 0], sizes = [28, 16], strides = [1, 1]} : vector<32x16xbf16> to vector<28x16xbf16>
    %241 = vector.extract_strided_slice %239 {offsets = [1, 0], sizes = [28, 16], strides = [1, 1]} : vector<32x16xbf16> to vector<28x16xbf16>
    %242 = vector.extract_strided_slice %239 {offsets = [2, 0], sizes = [28, 16], strides = [1, 1]} : vector<32x16xbf16> to vector<28x16xbf16>
    %243 = vector.extract_strided_slice %239 {offsets = [3, 0], sizes = [28, 16], strides = [1, 1]} : vector<32x16xbf16> to vector<28x16xbf16>
    %244 = vector.extract_strided_slice %239 {offsets = [4, 0], sizes = [28, 16], strides = [1, 1]} : vector<32x16xbf16> to vector<28x16xbf16>
    %245 = tpu.concatenate %240, %241, %242, %243, %244 in 1 : vector<28x16xbf16>, vector<28x16xbf16>, vector<28x16xbf16>, vector<28x16xbf16>, vector<28x16xbf16> -> vector<28x80xbf16>
    %246 = tpu.iota {dimensions = array<i32: 0>} : vector<14x28xi32>
    %247 = tpu.iota {dimensions = array<i32: 1>} : vector<14x28xi32>
    %c2_i32_146 = arith.constant 2 : i32
    %248 = vector.broadcast %c2_i32_146 : i32 to vector<14x28xi32>
    %249 = arith.muli %248, %246 : vector<14x28xi32>
    %250 = arith.cmpi eq, %247, %249 : vector<14x28xi32>
    %251 = arith.extui %250 : vector<14x28xi1> to vector<14x28xi32>
    %252 = arith.sitofp %251 : vector<14x28xi32> to vector<14x28xf32>
    %253 = arith.truncf %252 : vector<14x28xf32> to vector<14x28xbf16>
    %cst_147 = arith.constant dense<0.000000e+00> : vector<14x80xf32>
    %254 = tpu.matmul %253, %245, %cst_147 {dimension_numbers = #tpu.dot_dimension_numbers<[1], [0], [0], [1], [0, 0, 1, 1], [], []>} : vector<14x28xbf16>, vector<28x80xbf16>, vector<14x80xf32> -> vector<14x80xf32>
    %255 = arith.truncf %254 : vector<14x80xf32> to vector<14x80xbf16>
    %cst_148 = arith.constant dense<0.000000e+00> : vector<14x16xf32>
    %256 = tpu.matmul %255, %23, %cst_148 {dimension_numbers = #tpu.dot_dimension_numbers<[1], [0], [0], [1], [0, 0, 1, 1], [], []>} : vector<14x80xbf16>, vector<80x16xbf16>, vector<14x16xf32> -> vector<14x16xf32>
    %257 = vector.broadcast %24 : vector<1x16xf32> to vector<14x16xf32>
    %258 = arith.addf %256, %257 : vector<14x16xf32>
    %c1_149 = arith.constant 1 : index
    %c0_150 = arith.constant 0 : index
    %c0_151 = arith.constant 0 : index
    %259 = vector.load %arg33[%c1_149, %c0_150, %c0_151] : memref<2x16x16xbf16, #tpu.memory_space<vmem>>, vector<1x1x16xbf16>
    %260 = vector.shape_cast %259 : vector<1x1x16xbf16> to vector<1x16xbf16>
    %261 = vector.shape_cast %27 : vector<1x16xbf16> to vector<1x1x16xbf16>
    tpu.vector_store %arg33[%c1_149, %c0_150, %c0_151], %261 {strides = array<i32>} : memref<2x16x16xbf16, #tpu.memory_space<vmem>>, vector<1x1x16xbf16>,
    %c1_152 = arith.constant 1 : index
    %c15_153 = arith.constant 15 : index
    %c0_154 = arith.constant 0 : index
    %262 = vector.load %arg33[%c1_152, %c15_153, %c0_154] : memref<2x16x16xbf16, #tpu.memory_space<vmem>>, vector<1x1x16xbf16>
    %263 = vector.shape_cast %262 : vector<1x1x16xbf16> to vector<1x16xbf16>
    %264 = vector.shape_cast %27 : vector<1x16xbf16> to vector<1x1x16xbf16>
    tpu.vector_store %arg33[%c1_152, %c15_153, %c0_154], %264 {strides = array<i32>} : memref<2x16x16xbf16, #tpu.memory_space<vmem>>, vector<1x1x16xbf16>,
    %265 = arith.truncf %258 : vector<14x16xf32> to vector<14x16xbf16>
    %c1_155 = arith.constant 1 : index
    %c1_156 = arith.constant 1 : index
    %c0_157 = arith.constant 0 : index
    %266 = vector.load %arg33[%c1_155, %c1_156, %c0_157] : memref<2x16x16xbf16, #tpu.memory_space<vmem>>, vector<1x14x16xbf16>
    %267 = vector.shape_cast %266 : vector<1x14x16xbf16> to vector<14x16xbf16>
    %268 = vector.shape_cast %265 : vector<14x16xbf16> to vector<1x14x16xbf16>
    tpu.vector_store %arg33[%c1_155, %c1_156, %c0_157], %268 {strides = array<i32>} : memref<2x16x16xbf16, #tpu.memory_space<vmem>>, vector<1x14x16xbf16>,
    %cst_158 = arith.constant 0.000000e+00 : bf16
    %269 = vector.broadcast %cst_158 : bf16 to vector<1x32xbf16>
    %c0_159 = arith.constant 0 : index
    %c0_160 = arith.constant 0 : index
    %270 = vector.load %arg12[%c0_159, %c0_160] : memref<48x32xbf16, #tpu.memory_space<vmem>>, vector<48x32xbf16>
    %cst_161 = arith.constant 0.000000e+00 : f32
    %271 = vector.broadcast %cst_161 : f32 to vector<1x32xf32>
    %cst_162 = arith.constant 0.000000e+00 : f32
    %272 = vector.broadcast %cst_162 : f32 to vector<1x32xf32>
    %c0_163 = arith.constant 0 : index
    %c0_164 = arith.constant 0 : index
    %c0_165 = arith.constant 0 : index
    %273 = vector.load %arg33[%c0_163, %c0_164, %c0_165] : memref<2x16x16xbf16, #tpu.memory_space<vmem>>, vector<1x16x16xbf16>
    %274 = vector.shape_cast %273 : vector<1x16x16xbf16> to vector<16x16xbf16>
    %275 = vector.extract_strided_slice %274 {offsets = [0, 0], sizes = [14, 16], strides = [1, 1]} : vector<16x16xbf16> to vector<14x16xbf16>
    %276 = vector.extract_strided_slice %274 {offsets = [1, 0], sizes = [14, 16], strides = [1, 1]} : vector<16x16xbf16> to vector<14x16xbf16>
    %277 = vector.extract_strided_slice %274 {offsets = [2, 0], sizes = [14, 16], strides = [1, 1]} : vector<16x16xbf16> to vector<14x16xbf16>
    %278 = tpu.concatenate %275, %276, %277 in 1 : vector<14x16xbf16>, vector<14x16xbf16>, vector<14x16xbf16> -> vector<14x48xbf16>
    %cst_166 = arith.constant dense<0.000000e+00> : vector<14x32xf32>
    %279 = tpu.matmul %278, %270, %cst_166 {dimension_numbers = #tpu.dot_dimension_numbers<[1], [0], [0], [1], [0, 0, 1, 1], [], []>} : vector<14x48xbf16>, vector<48x32xbf16>, vector<14x32xf32> -> vector<14x32xf32>
    %cst_167 = arith.constant dense<0.000000e+00> : vector<32xf32>
    %280 = vector.multi_reduction <add>, %279, %cst_167 [0] : vector<14x32xf32> to vector<32xf32>
    %281 = vector.shape_cast %280 : vector<32xf32> to vector<1x32xf32>
    %282 = arith.addf %271, %281 : vector<1x32xf32>
    %283 = arith.mulf %279, %279 : vector<14x32xf32>
    %cst_168 = arith.constant dense<0.000000e+00> : vector<32xf32>
    %284 = vector.multi_reduction <add>, %283, %cst_168 [0] : vector<14x32xf32> to vector<32xf32>
    %285 = vector.shape_cast %284 : vector<32xf32> to vector<1x32xf32>
    %286 = arith.addf %272, %285 : vector<1x32xf32>
    %c0_169 = arith.constant 0 : index
    %c0_170 = arith.constant 0 : index
    %c0_171 = arith.constant 0 : index
    %287 = vector.load %arg37[%c0_169, %c0_170, %c0_171] : memref<2x32x64xf32, #tpu.memory_space<vmem>>, vector<1x14x32xf32>
    %288 = vector.shape_cast %287 : vector<1x14x32xf32> to vector<14x32xf32>
    %289 = vector.shape_cast %279 : vector<14x32xf32> to vector<1x14x32xf32>
    tpu.vector_store %arg37[%c0_169, %c0_170, %c0_171], %289 {strides = array<i32>} : memref<2x32x64xf32, #tpu.memory_space<vmem>>, vector<1x14x32xf32>,
    %c1_172 = arith.constant 1 : index
    %c0_173 = arith.constant 0 : index
    %c0_174 = arith.constant 0 : index
    %290 = vector.load %arg33[%c1_172, %c0_173, %c0_174] : memref<2x16x16xbf16, #tpu.memory_space<vmem>>, vector<1x16x16xbf16>
    %291 = vector.shape_cast %290 : vector<1x16x16xbf16> to vector<16x16xbf16>
    %292 = vector.extract_strided_slice %291 {offsets = [0, 0], sizes = [14, 16], strides = [1, 1]} : vector<16x16xbf16> to vector<14x16xbf16>
    %293 = vector.extract_strided_slice %291 {offsets = [1, 0], sizes = [14, 16], strides = [1, 1]} : vector<16x16xbf16> to vector<14x16xbf16>
    %294 = vector.extract_strided_slice %291 {offsets = [2, 0], sizes = [14, 16], strides = [1, 1]} : vector<16x16xbf16> to vector<14x16xbf16>
    %295 = tpu.concatenate %292, %293, %294 in 1 : vector<14x16xbf16>, vector<14x16xbf16>, vector<14x16xbf16> -> vector<14x48xbf16>
    %cst_175 = arith.constant dense<0.000000e+00> : vector<14x32xf32>
    %296 = tpu.matmul %295, %270, %cst_175 {dimension_numbers = #tpu.dot_dimension_numbers<[1], [0], [0], [1], [0, 0, 1, 1], [], []>} : vector<14x48xbf16>, vector<48x32xbf16>, vector<14x32xf32> -> vector<14x32xf32>
    %cst_176 = arith.constant dense<0.000000e+00> : vector<32xf32>
    %297 = vector.multi_reduction <add>, %296, %cst_176 [0] : vector<14x32xf32> to vector<32xf32>
    %298 = vector.shape_cast %297 : vector<32xf32> to vector<1x32xf32>
    %299 = arith.addf %282, %298 : vector<1x32xf32>
    %300 = arith.mulf %296, %296 : vector<14x32xf32>
    %cst_177 = arith.constant dense<0.000000e+00> : vector<32xf32>
    %301 = vector.multi_reduction <add>, %300, %cst_177 [0] : vector<14x32xf32> to vector<32xf32>
    %302 = vector.shape_cast %301 : vector<32xf32> to vector<1x32xf32>
    %303 = arith.addf %286, %302 : vector<1x32xf32>
    %c1_178 = arith.constant 1 : index
    %c0_179 = arith.constant 0 : index
    %c0_180 = arith.constant 0 : index
    %304 = vector.load %arg37[%c1_178, %c0_179, %c0_180] : memref<2x32x64xf32, #tpu.memory_space<vmem>>, vector<1x14x32xf32>
    %305 = vector.shape_cast %304 : vector<1x14x32xf32> to vector<14x32xf32>
    %306 = vector.shape_cast %296 : vector<14x32xf32> to vector<1x14x32xf32>
    tpu.vector_store %arg37[%c1_178, %c0_179, %c0_180], %306 {strides = array<i32>} : memref<2x32x64xf32, #tpu.memory_space<vmem>>, vector<1x14x32xf32>,
    %cst_181 = arith.constant 0.0357142873 : f32
    %307 = vector.broadcast %cst_181 : f32 to vector<1x32xf32>
    %308 = arith.mulf %299, %307 : vector<1x32xf32>
    %cst_182 = arith.constant 0.0357142873 : f32
    %309 = vector.broadcast %cst_182 : f32 to vector<1x32xf32>
    %310 = arith.mulf %303, %309 : vector<1x32xf32>
    %311 = arith.mulf %308, %308 : vector<1x32xf32>
    %312 = arith.subf %310, %311 : vector<1x32xf32>
    %cst_183 = arith.constant 0.000000e+00 : f32
    %313 = vector.broadcast %cst_183 : f32 to vector<1x32xf32>
    %314 = arith.maximumf %312, %313 : vector<1x32xf32>
    %c0_184 = arith.constant 0 : index
    %c0_185 = arith.constant 0 : index
    %315 = vector.load %arg13[%c0_184, %c0_185] : memref<1x32xf32, #tpu.memory_space<vmem>>, vector<1x32xf32>
    %cst_186 = arith.constant 9.99999974E-6 : f32
    %316 = vector.broadcast %cst_186 : f32 to vector<1x32xf32>
    %317 = arith.addf %314, %316 : vector<1x32xf32>
    %318 = math.rsqrt %317 : vector<1x32xf32>
    %319 = arith.mulf %315, %318 : vector<1x32xf32>
    %c0_187 = arith.constant 0 : index
    %c0_188 = arith.constant 0 : index
    %320 = vector.load %arg14[%c0_187, %c0_188] : memref<1x32xf32, #tpu.memory_space<vmem>>, vector<1x32xf32>
    %321 = arith.mulf %308, %319 : vector<1x32xf32>
    %322 = arith.subf %320, %321 : vector<1x32xf32>
    %cst_189 = arith.constant 0.000000e+00 : bf16
    %323 = vector.broadcast %cst_189 : bf16 to vector<1x32xbf16>
    %c0_190 = arith.constant 0 : index
    %c0_191 = arith.constant 0 : index
    %c0_192 = arith.constant 0 : index
    %324 = vector.load %arg34[%c0_190, %c0_191, %c0_192] : memref<2x16x32xbf16, #tpu.memory_space<vmem>>, vector<1x1x32xbf16>
    %325 = vector.shape_cast %324 : vector<1x1x32xbf16> to vector<1x32xbf16>
    %326 = vector.shape_cast %323 : vector<1x32xbf16> to vector<1x1x32xbf16>
    tpu.vector_store %arg34[%c0_190, %c0_191, %c0_192], %326 {strides = array<i32>} : memref<2x16x32xbf16, #tpu.memory_space<vmem>>, vector<1x1x32xbf16>,
    %c0_193 = arith.constant 0 : index
    %c15_194 = arith.constant 15 : index
    %c0_195 = arith.constant 0 : index
    %327 = vector.load %arg34[%c0_193, %c15_194, %c0_195] : memref<2x16x32xbf16, #tpu.memory_space<vmem>>, vector<1x1x32xbf16>
    %328 = vector.shape_cast %327 : vector<1x1x32xbf16> to vector<1x32xbf16>
    %329 = vector.shape_cast %323 : vector<1x32xbf16> to vector<1x1x32xbf16>
    tpu.vector_store %arg34[%c0_193, %c15_194, %c0_195], %329 {strides = array<i32>} : memref<2x16x32xbf16, #tpu.memory_space<vmem>>, vector<1x1x32xbf16>,
    %c0_196 = arith.constant 0 : index
    %c0_197 = arith.constant 0 : index
    %c0_198 = arith.constant 0 : index
    %330 = vector.load %arg37[%c0_196, %c0_197, %c0_198] : memref<2x32x64xf32, #tpu.memory_space<vmem>>, vector<1x14x32xf32>
    %331 = vector.shape_cast %330 : vector<1x14x32xf32> to vector<14x32xf32>
    %332 = vector.broadcast %319 : vector<1x32xf32> to vector<14x32xf32>
    %333 = arith.mulf %331, %332 : vector<14x32xf32>
    %334 = vector.broadcast %322 : vector<1x32xf32> to vector<14x32xf32>
    %335 = arith.addf %333, %334 : vector<14x32xf32>
    %cst_199 = arith.constant 0.000000e+00 : f32
    %336 = vector.broadcast %cst_199 : f32 to vector<14x32xf32>
    %337 = arith.maximumf %335, %336 : vector<14x32xf32>
    %338 = arith.truncf %337 : vector<14x32xf32> to vector<14x32xbf16>
    %c0_200 = arith.constant 0 : index
    %c1_201 = arith.constant 1 : index
    %c0_202 = arith.constant 0 : index
    %339 = vector.load %arg34[%c0_200, %c1_201, %c0_202] : memref<2x16x32xbf16, #tpu.memory_space<vmem>>, vector<1x14x32xbf16>
    %340 = vector.shape_cast %339 : vector<1x14x32xbf16> to vector<14x32xbf16>
    %341 = vector.shape_cast %338 : vector<14x32xbf16> to vector<1x14x32xbf16>
    tpu.vector_store %arg34[%c0_200, %c1_201, %c0_202], %341 {strides = array<i32>} : memref<2x16x32xbf16, #tpu.memory_space<vmem>>, vector<1x14x32xbf16>,
    %c1_203 = arith.constant 1 : index
    %c0_204 = arith.constant 0 : index
    %c0_205 = arith.constant 0 : index
    %342 = vector.load %arg34[%c1_203, %c0_204, %c0_205] : memref<2x16x32xbf16, #tpu.memory_space<vmem>>, vector<1x1x32xbf16>
    %343 = vector.shape_cast %342 : vector<1x1x32xbf16> to vector<1x32xbf16>
    %344 = vector.shape_cast %323 : vector<1x32xbf16> to vector<1x1x32xbf16>
    tpu.vector_store %arg34[%c1_203, %c0_204, %c0_205], %344 {strides = array<i32>} : memref<2x16x32xbf16, #tpu.memory_space<vmem>>, vector<1x1x32xbf16>,
    %c1_206 = arith.constant 1 : index
    %c15_207 = arith.constant 15 : index
    %c0_208 = arith.constant 0 : index
    %345 = vector.load %arg34[%c1_206, %c15_207, %c0_208] : memref<2x16x32xbf16, #tpu.memory_space<vmem>>, vector<1x1x32xbf16>
    %346 = vector.shape_cast %345 : vector<1x1x32xbf16> to vector<1x32xbf16>
    %347 = vector.shape_cast %323 : vector<1x32xbf16> to vector<1x1x32xbf16>
    tpu.vector_store %arg34[%c1_206, %c15_207, %c0_208], %347 {strides = array<i32>} : memref<2x16x32xbf16, #tpu.memory_space<vmem>>, vector<1x1x32xbf16>,
    %c1_209 = arith.constant 1 : index
    %c0_210 = arith.constant 0 : index
    %c0_211 = arith.constant 0 : index
    %348 = vector.load %arg37[%c1_209, %c0_210, %c0_211] : memref<2x32x64xf32, #tpu.memory_space<vmem>>, vector<1x14x32xf32>
    %349 = vector.shape_cast %348 : vector<1x14x32xf32> to vector<14x32xf32>
    %350 = vector.broadcast %319 : vector<1x32xf32> to vector<14x32xf32>
    %351 = arith.mulf %349, %350 : vector<14x32xf32>
    %352 = vector.broadcast %322 : vector<1x32xf32> to vector<14x32xf32>
    %353 = arith.addf %351, %352 : vector<14x32xf32>
    %cst_212 = arith.constant 0.000000e+00 : f32
    %354 = vector.broadcast %cst_212 : f32 to vector<14x32xf32>
    %355 = arith.maximumf %353, %354 : vector<14x32xf32>
    %356 = arith.truncf %355 : vector<14x32xf32> to vector<14x32xbf16>
    %c1_213 = arith.constant 1 : index
    %c1_214 = arith.constant 1 : index
    %c0_215 = arith.constant 0 : index
    %357 = vector.load %arg34[%c1_213, %c1_214, %c0_215] : memref<2x16x32xbf16, #tpu.memory_space<vmem>>, vector<1x14x32xbf16>
    %358 = vector.shape_cast %357 : vector<1x14x32xbf16> to vector<14x32xbf16>
    %359 = vector.shape_cast %356 : vector<14x32xbf16> to vector<1x14x32xbf16>
    tpu.vector_store %arg34[%c1_213, %c1_214, %c0_215], %359 {strides = array<i32>} : memref<2x16x32xbf16, #tpu.memory_space<vmem>>, vector<1x14x32xbf16>,
    %c0_216 = arith.constant 0 : index
    %c0_217 = arith.constant 0 : index
    %360 = vector.load %arg15[%c0_216, %c0_217] : memref<96x32xbf16, #tpu.memory_space<vmem>>, vector<96x32xbf16>
    %cst_218 = arith.constant 0.000000e+00 : f32
    %361 = vector.broadcast %cst_218 : f32 to vector<1x32xf32>
    %cst_219 = arith.constant 0.000000e+00 : f32
    %362 = vector.broadcast %cst_219 : f32 to vector<1x32xf32>
    %c0_220 = arith.constant 0 : index
    %c0_221 = arith.constant 0 : index
    %c0_222 = arith.constant 0 : index
    %363 = vector.load %arg34[%c0_220, %c0_221, %c0_222] : memref<2x16x32xbf16, #tpu.memory_space<vmem>>, vector<1x16x32xbf16>
    %364 = vector.shape_cast %363 : vector<1x16x32xbf16> to vector<16x32xbf16>
    %365 = vector.extract_strided_slice %364 {offsets = [0, 0], sizes = [14, 32], strides = [1, 1]} : vector<16x32xbf16> to vector<14x32xbf16>
    %366 = vector.extract_strided_slice %364 {offsets = [1, 0], sizes = [14, 32], strides = [1, 1]} : vector<16x32xbf16> to vector<14x32xbf16>
    %367 = vector.extract_strided_slice %364 {offsets = [2, 0], sizes = [14, 32], strides = [1, 1]} : vector<16x32xbf16> to vector<14x32xbf16>
    %368 = tpu.concatenate %365, %366, %367 in 1 : vector<14x32xbf16>, vector<14x32xbf16>, vector<14x32xbf16> -> vector<14x96xbf16>
    %cst_223 = arith.constant dense<0.000000e+00> : vector<14x32xf32>
    %369 = tpu.matmul %368, %360, %cst_223 {dimension_numbers = #tpu.dot_dimension_numbers<[1], [0], [0], [1], [0, 0, 1, 1], [], []>} : vector<14x96xbf16>, vector<96x32xbf16>, vector<14x32xf32> -> vector<14x32xf32>
    %cst_224 = arith.constant dense<0.000000e+00> : vector<32xf32>
    %370 = vector.multi_reduction <add>, %369, %cst_224 [0] : vector<14x32xf32> to vector<32xf32>
    %371 = vector.shape_cast %370 : vector<32xf32> to vector<1x32xf32>
    %372 = arith.addf %361, %371 : vector<1x32xf32>
    %373 = arith.mulf %369, %369 : vector<14x32xf32>
    %cst_225 = arith.constant dense<0.000000e+00> : vector<32xf32>
    %374 = vector.multi_reduction <add>, %373, %cst_225 [0] : vector<14x32xf32> to vector<32xf32>
    %375 = vector.shape_cast %374 : vector<32xf32> to vector<1x32xf32>
    %376 = arith.addf %362, %375 : vector<1x32xf32>
    %c0_226 = arith.constant 0 : index
    %c0_227 = arith.constant 0 : index
    %c0_228 = arith.constant 0 : index
    %377 = vector.load %arg37[%c0_226, %c0_227, %c0_228] : memref<2x32x64xf32, #tpu.memory_space<vmem>>, vector<1x14x32xf32>
    %378 = vector.shape_cast %377 : vector<1x14x32xf32> to vector<14x32xf32>
    %379 = vector.shape_cast %369 : vector<14x32xf32> to vector<1x14x32xf32>
    tpu.vector_store %arg37[%c0_226, %c0_227, %c0_228], %379 {strides = array<i32>} : memref<2x32x64xf32, #tpu.memory_space<vmem>>, vector<1x14x32xf32>,
    %c1_229 = arith.constant 1 : index
    %c0_230 = arith.constant 0 : index
    %c0_231 = arith.constant 0 : index
    %380 = vector.load %arg34[%c1_229, %c0_230, %c0_231] : memref<2x16x32xbf16, #tpu.memory_space<vmem>>, vector<1x16x32xbf16>
    %381 = vector.shape_cast %380 : vector<1x16x32xbf16> to vector<16x32xbf16>
    %382 = vector.extract_strided_slice %381 {offsets = [0, 0], sizes = [14, 32], strides = [1, 1]} : vector<16x32xbf16> to vector<14x32xbf16>
    %383 = vector.extract_strided_slice %381 {offsets = [1, 0], sizes = [14, 32], strides = [1, 1]} : vector<16x32xbf16> to vector<14x32xbf16>
    %384 = vector.extract_strided_slice %381 {offsets = [2, 0], sizes = [14, 32], strides = [1, 1]} : vector<16x32xbf16> to vector<14x32xbf16>
    %385 = tpu.concatenate %382, %383, %384 in 1 : vector<14x32xbf16>, vector<14x32xbf16>, vector<14x32xbf16> -> vector<14x96xbf16>
    %cst_232 = arith.constant dense<0.000000e+00> : vector<14x32xf32>
    %386 = tpu.matmul %385, %360, %cst_232 {dimension_numbers = #tpu.dot_dimension_numbers<[1], [0], [0], [1], [0, 0, 1, 1], [], []>} : vector<14x96xbf16>, vector<96x32xbf16>, vector<14x32xf32> -> vector<14x32xf32>
    %cst_233 = arith.constant dense<0.000000e+00> : vector<32xf32>
    %387 = vector.multi_reduction <add>, %386, %cst_233 [0] : vector<14x32xf32> to vector<32xf32>
    %388 = vector.shape_cast %387 : vector<32xf32> to vector<1x32xf32>
    %389 = arith.addf %372, %388 : vector<1x32xf32>
    %390 = arith.mulf %386, %386 : vector<14x32xf32>
    %cst_234 = arith.constant dense<0.000000e+00> : vector<32xf32>
    %391 = vector.multi_reduction <add>, %390, %cst_234 [0] : vector<14x32xf32> to vector<32xf32>
    %392 = vector.shape_cast %391 : vector<32xf32> to vector<1x32xf32>
    %393 = arith.addf %376, %392 : vector<1x32xf32>
    %c1_235 = arith.constant 1 : index
    %c0_236 = arith.constant 0 : index
    %c0_237 = arith.constant 0 : index
    %394 = vector.load %arg37[%c1_235, %c0_236, %c0_237] : memref<2x32x64xf32, #tpu.memory_space<vmem>>, vector<1x14x32xf32>
    %395 = vector.shape_cast %394 : vector<1x14x32xf32> to vector<14x32xf32>
    %396 = vector.shape_cast %386 : vector<14x32xf32> to vector<1x14x32xf32>
    tpu.vector_store %arg37[%c1_235, %c0_236, %c0_237], %396 {strides = array<i32>} : memref<2x32x64xf32, #tpu.memory_space<vmem>>, vector<1x14x32xf32>,
    %cst_238 = arith.constant 0.0357142873 : f32
    %397 = vector.broadcast %cst_238 : f32 to vector<1x32xf32>
    %398 = arith.mulf %389, %397 : vector<1x32xf32>
    %cst_239 = arith.constant 0.0357142873 : f32
    %399 = vector.broadcast %cst_239 : f32 to vector<1x32xf32>
    %400 = arith.mulf %393, %399 : vector<1x32xf32>
    %401 = arith.mulf %398, %398 : vector<1x32xf32>
    %402 = arith.subf %400, %401 : vector<1x32xf32>
    %cst_240 = arith.constant 0.000000e+00 : f32
    %403 = vector.broadcast %cst_240 : f32 to vector<1x32xf32>
    %404 = arith.maximumf %402, %403 : vector<1x32xf32>
    %c0_241 = arith.constant 0 : index
    %c0_242 = arith.constant 0 : index
    %405 = vector.load %arg16[%c0_241, %c0_242] : memref<1x32xf32, #tpu.memory_space<vmem>>, vector<1x32xf32>
    %cst_243 = arith.constant 9.99999974E-6 : f32
    %406 = vector.broadcast %cst_243 : f32 to vector<1x32xf32>
    %407 = arith.addf %404, %406 : vector<1x32xf32>
    %408 = math.rsqrt %407 : vector<1x32xf32>
    %409 = arith.mulf %405, %408 : vector<1x32xf32>
    %c0_244 = arith.constant 0 : index
    %c0_245 = arith.constant 0 : index
    %410 = vector.load %arg17[%c0_244, %c0_245] : memref<1x32xf32, #tpu.memory_space<vmem>>, vector<1x32xf32>
    %411 = arith.mulf %398, %409 : vector<1x32xf32>
    %412 = arith.subf %410, %411 : vector<1x32xf32>
    %c0_246 = arith.constant 0 : index
    %c0_247 = arith.constant 0 : index
    %413 = vector.load %arg18[%c0_246, %c0_247] : memref<16x32xbf16, #tpu.memory_space<vmem>>, vector<16x32xbf16>
    %c0_248 = arith.constant 0 : index
    %c0_249 = arith.constant 0 : index
    %414 = vector.load %arg19[%c0_248, %c0_249] : memref<1x32xf32, #tpu.memory_space<vmem>>, vector<1x32xf32>
    %c0_250 = arith.constant 0 : index
    %c1_251 = arith.constant 1 : index
    %c0_252 = arith.constant 0 : index
    %415 = vector.load %arg33[%c0_250, %c1_251, %c0_252] : memref<2x16x16xbf16, #tpu.memory_space<vmem>>, vector<1x14x16xbf16>
    %416 = vector.shape_cast %415 : vector<1x14x16xbf16> to vector<14x16xbf16>
    %cst_253 = arith.constant dense<0.000000e+00> : vector<14x32xf32>
    %417 = tpu.matmul %416, %413, %cst_253 {dimension_numbers = #tpu.dot_dimension_numbers<[1], [0], [0], [1], [0, 0, 1, 1], [], []>} : vector<14x16xbf16>, vector<16x32xbf16>, vector<14x32xf32> -> vector<14x32xf32>
    %418 = vector.broadcast %414 : vector<1x32xf32> to vector<14x32xf32>
    %419 = arith.addf %417, %418 : vector<14x32xf32>
    %c0_254 = arith.constant 0 : index
    %c0_255 = arith.constant 0 : index
    %c0_256 = arith.constant 0 : index
    %420 = vector.load %arg37[%c0_254, %c0_255, %c0_256] : memref<2x32x64xf32, #tpu.memory_space<vmem>>, vector<1x14x32xf32>
    %421 = vector.shape_cast %420 : vector<1x14x32xf32> to vector<14x32xf32>
    %422 = vector.broadcast %409 : vector<1x32xf32> to vector<14x32xf32>
    %423 = arith.mulf %421, %422 : vector<14x32xf32>
    %424 = vector.broadcast %412 : vector<1x32xf32> to vector<14x32xf32>
    %425 = arith.addf %423, %424 : vector<14x32xf32>
    %426 = arith.addf %425, %419 : vector<14x32xf32>
    %cst_257 = arith.constant 0.000000e+00 : f32
    %427 = vector.broadcast %cst_257 : f32 to vector<14x32xf32>
    %428 = arith.maximumf %426, %427 : vector<14x32xf32>
    %429 = arith.truncf %428 : vector<14x32xf32> to vector<14x32xbf16>
    %430 = vector.extract_strided_slice %429 {offsets = [0, 0], sizes = [10, 32], strides = [1, 1]} : vector<14x32xbf16> to vector<10x32xbf16>
    %431 = vector.extract_strided_slice %429 {offsets = [1, 0], sizes = [10, 32], strides = [1, 1]} : vector<14x32xbf16> to vector<10x32xbf16>
    %432 = vector.extract_strided_slice %429 {offsets = [2, 0], sizes = [10, 32], strides = [1, 1]} : vector<14x32xbf16> to vector<10x32xbf16>
    %433 = vector.extract_strided_slice %429 {offsets = [3, 0], sizes = [10, 32], strides = [1, 1]} : vector<14x32xbf16> to vector<10x32xbf16>
    %434 = vector.extract_strided_slice %429 {offsets = [4, 0], sizes = [10, 32], strides = [1, 1]} : vector<14x32xbf16> to vector<10x32xbf16>
    %435 = tpu.concatenate %430, %431, %432, %433, %434 in 1 : vector<10x32xbf16>, vector<10x32xbf16>, vector<10x32xbf16>, vector<10x32xbf16>, vector<10x32xbf16> -> vector<10x160xbf16>
    %436 = tpu.iota {dimensions = array<i32: 0>} : vector<5x10xi32>
    %437 = tpu.iota {dimensions = array<i32: 1>} : vector<5x10xi32>
    %c2_i32_258 = arith.constant 2 : i32
    %438 = vector.broadcast %c2_i32_258 : i32 to vector<5x10xi32>
    %439 = arith.muli %438, %436 : vector<5x10xi32>
    %440 = arith.cmpi eq, %437, %439 : vector<5x10xi32>
    %441 = arith.extui %440 : vector<5x10xi1> to vector<5x10xi32>
    %442 = arith.sitofp %441 : vector<5x10xi32> to vector<5x10xf32>
    %443 = arith.truncf %442 : vector<5x10xf32> to vector<5x10xbf16>
    %cst_259 = arith.constant dense<0.000000e+00> : vector<5x160xf32>
    %444 = tpu.matmul %443, %435, %cst_259 {dimension_numbers = #tpu.dot_dimension_numbers<[1], [0], [0], [1], [0, 0, 1, 1], [], []>} : vector<5x10xbf16>, vector<10x160xbf16>, vector<5x160xf32> -> vector<5x160xf32>
    %445 = arith.truncf %444 : vector<5x160xf32> to vector<5x160xbf16>
    %cst_260 = arith.constant dense<0.000000e+00> : vector<5x32xf32>
    %446 = tpu.matmul %445, %25, %cst_260 {dimension_numbers = #tpu.dot_dimension_numbers<[1], [0], [0], [1], [0, 0, 1, 1], [], []>} : vector<5x160xbf16>, vector<160x32xbf16>, vector<5x32xf32> -> vector<5x32xf32>
    %447 = vector.broadcast %26 : vector<1x32xf32> to vector<5x32xf32>
    %448 = arith.addf %446, %447 : vector<5x32xf32>
    %c0_261 = arith.constant 0 : index
    %c0_262 = arith.constant 0 : index
    %c0_263 = arith.constant 0 : index
    %449 = vector.load %arg35[%c0_261, %c0_262, %c0_263] : memref<2x7x32xbf16, #tpu.memory_space<vmem>>, vector<1x1x32xbf16>
    %450 = vector.shape_cast %449 : vector<1x1x32xbf16> to vector<1x32xbf16>
    %451 = vector.shape_cast %269 : vector<1x32xbf16> to vector<1x1x32xbf16>
    tpu.vector_store %arg35[%c0_261, %c0_262, %c0_263], %451 {strides = array<i32>} : memref<2x7x32xbf16, #tpu.memory_space<vmem>>, vector<1x1x32xbf16>,
    %c0_264 = arith.constant 0 : index
    %c6 = arith.constant 6 : index
    %c0_265 = arith.constant 0 : index
    %452 = vector.load %arg35[%c0_264, %c6, %c0_265] : memref<2x7x32xbf16, #tpu.memory_space<vmem>>, vector<1x1x32xbf16>
    %453 = vector.shape_cast %452 : vector<1x1x32xbf16> to vector<1x32xbf16>
    %454 = vector.shape_cast %269 : vector<1x32xbf16> to vector<1x1x32xbf16>
    tpu.vector_store %arg35[%c0_264, %c6, %c0_265], %454 {strides = array<i32>} : memref<2x7x32xbf16, #tpu.memory_space<vmem>>, vector<1x1x32xbf16>,
    %455 = arith.truncf %448 : vector<5x32xf32> to vector<5x32xbf16>
    %c0_266 = arith.constant 0 : index
    %c1_267 = arith.constant 1 : index
    %c0_268 = arith.constant 0 : index
    %456 = vector.load %arg35[%c0_266, %c1_267, %c0_268] : memref<2x7x32xbf16, #tpu.memory_space<vmem>>, vector<1x5x32xbf16>
    %457 = vector.shape_cast %456 : vector<1x5x32xbf16> to vector<5x32xbf16>
    %458 = vector.shape_cast %455 : vector<5x32xbf16> to vector<1x5x32xbf16>
    tpu.vector_store %arg35[%c0_266, %c1_267, %c0_268], %458 {strides = array<i32>} : memref<2x7x32xbf16, #tpu.memory_space<vmem>>, vector<1x5x32xbf16>,
    %c1_269 = arith.constant 1 : index
    %c1_270 = arith.constant 1 : index
    %c0_271 = arith.constant 0 : index
    %459 = vector.load %arg33[%c1_269, %c1_270, %c0_271] : memref<2x16x16xbf16, #tpu.memory_space<vmem>>, vector<1x14x16xbf16>
    %460 = vector.shape_cast %459 : vector<1x14x16xbf16> to vector<14x16xbf16>
    %cst_272 = arith.constant dense<0.000000e+00> : vector<14x32xf32>
    %461 = tpu.matmul %460, %413, %cst_272 {dimension_numbers = #tpu.dot_dimension_numbers<[1], [0], [0], [1], [0, 0, 1, 1], [], []>} : vector<14x16xbf16>, vector<16x32xbf16>, vector<14x32xf32> -> vector<14x32xf32>
    %462 = vector.broadcast %414 : vector<1x32xf32> to vector<14x32xf32>
    %463 = arith.addf %461, %462 : vector<14x32xf32>
    %c1_273 = arith.constant 1 : index
    %c0_274 = arith.constant 0 : index
    %c0_275 = arith.constant 0 : index
    %464 = vector.load %arg37[%c1_273, %c0_274, %c0_275] : memref<2x32x64xf32, #tpu.memory_space<vmem>>, vector<1x14x32xf32>
    %465 = vector.shape_cast %464 : vector<1x14x32xf32> to vector<14x32xf32>
    %466 = vector.broadcast %409 : vector<1x32xf32> to vector<14x32xf32>
    %467 = arith.mulf %465, %466 : vector<14x32xf32>
    %468 = vector.broadcast %412 : vector<1x32xf32> to vector<14x32xf32>
    %469 = arith.addf %467, %468 : vector<14x32xf32>
    %470 = arith.addf %469, %463 : vector<14x32xf32>
    %cst_276 = arith.constant 0.000000e+00 : f32
    %471 = vector.broadcast %cst_276 : f32 to vector<14x32xf32>
    %472 = arith.maximumf %470, %471 : vector<14x32xf32>
    %473 = arith.truncf %472 : vector<14x32xf32> to vector<14x32xbf16>
    %474 = vector.extract_strided_slice %473 {offsets = [0, 0], sizes = [10, 32], strides = [1, 1]} : vector<14x32xbf16> to vector<10x32xbf16>
    %475 = vector.extract_strided_slice %473 {offsets = [1, 0], sizes = [10, 32], strides = [1, 1]} : vector<14x32xbf16> to vector<10x32xbf16>
    %476 = vector.extract_strided_slice %473 {offsets = [2, 0], sizes = [10, 32], strides = [1, 1]} : vector<14x32xbf16> to vector<10x32xbf16>
    %477 = vector.extract_strided_slice %473 {offsets = [3, 0], sizes = [10, 32], strides = [1, 1]} : vector<14x32xbf16> to vector<10x32xbf16>
    %478 = vector.extract_strided_slice %473 {offsets = [4, 0], sizes = [10, 32], strides = [1, 1]} : vector<14x32xbf16> to vector<10x32xbf16>
    %479 = tpu.concatenate %474, %475, %476, %477, %478 in 1 : vector<10x32xbf16>, vector<10x32xbf16>, vector<10x32xbf16>, vector<10x32xbf16>, vector<10x32xbf16> -> vector<10x160xbf16>
    %480 = tpu.iota {dimensions = array<i32: 0>} : vector<5x10xi32>
    %481 = tpu.iota {dimensions = array<i32: 1>} : vector<5x10xi32>
    %c2_i32_277 = arith.constant 2 : i32
    %482 = vector.broadcast %c2_i32_277 : i32 to vector<5x10xi32>
    %483 = arith.muli %482, %480 : vector<5x10xi32>
    %484 = arith.cmpi eq, %481, %483 : vector<5x10xi32>
    %485 = arith.extui %484 : vector<5x10xi1> to vector<5x10xi32>
    %486 = arith.sitofp %485 : vector<5x10xi32> to vector<5x10xf32>
    %487 = arith.truncf %486 : vector<5x10xf32> to vector<5x10xbf16>
    %cst_278 = arith.constant dense<0.000000e+00> : vector<5x160xf32>
    %488 = tpu.matmul %487, %479, %cst_278 {dimension_numbers = #tpu.dot_dimension_numbers<[1], [0], [0], [1], [0, 0, 1, 1], [], []>} : vector<5x10xbf16>, vector<10x160xbf16>, vector<5x160xf32> -> vector<5x160xf32>
    %489 = arith.truncf %488 : vector<5x160xf32> to vector<5x160xbf16>
    %cst_279 = arith.constant dense<0.000000e+00> : vector<5x32xf32>
    %490 = tpu.matmul %489, %25, %cst_279 {dimension_numbers = #tpu.dot_dimension_numbers<[1], [0], [0], [1], [0, 0, 1, 1], [], []>} : vector<5x160xbf16>, vector<160x32xbf16>, vector<5x32xf32> -> vector<5x32xf32>
    %491 = vector.broadcast %26 : vector<1x32xf32> to vector<5x32xf32>
    %492 = arith.addf %490, %491 : vector<5x32xf32>
    %c1_280 = arith.constant 1 : index
    %c0_281 = arith.constant 0 : index
    %c0_282 = arith.constant 0 : index
    %493 = vector.load %arg35[%c1_280, %c0_281, %c0_282] : memref<2x7x32xbf16, #tpu.memory_space<vmem>>, vector<1x1x32xbf16>
    %494 = vector.shape_cast %493 : vector<1x1x32xbf16> to vector<1x32xbf16>
    %495 = vector.shape_cast %269 : vector<1x32xbf16> to vector<1x1x32xbf16>
    tpu.vector_store %arg35[%c1_280, %c0_281, %c0_282], %495 {strides = array<i32>} : memref<2x7x32xbf16, #tpu.memory_space<vmem>>, vector<1x1x32xbf16>,
    %c1_283 = arith.constant 1 : index
    %c6_284 = arith.constant 6 : index
    %c0_285 = arith.constant 0 : index
    %496 = vector.load %arg35[%c1_283, %c6_284, %c0_285] : memref<2x7x32xbf16, #tpu.memory_space<vmem>>, vector<1x1x32xbf16>
    %497 = vector.shape_cast %496 : vector<1x1x32xbf16> to vector<1x32xbf16>
    %498 = vector.shape_cast %269 : vector<1x32xbf16> to vector<1x1x32xbf16>
    tpu.vector_store %arg35[%c1_283, %c6_284, %c0_285], %498 {strides = array<i32>} : memref<2x7x32xbf16, #tpu.memory_space<vmem>>, vector<1x1x32xbf16>,
    %499 = arith.truncf %492 : vector<5x32xf32> to vector<5x32xbf16>
    %c1_286 = arith.constant 1 : index
    %c1_287 = arith.constant 1 : index
    %c0_288 = arith.constant 0 : index
    %500 = vector.load %arg35[%c1_286, %c1_287, %c0_288] : memref<2x7x32xbf16, #tpu.memory_space<vmem>>, vector<1x5x32xbf16>
    %501 = vector.shape_cast %500 : vector<1x5x32xbf16> to vector<5x32xbf16>
    %502 = vector.shape_cast %499 : vector<5x32xbf16> to vector<1x5x32xbf16>
    tpu.vector_store %arg35[%c1_286, %c1_287, %c0_288], %502 {strides = array<i32>} : memref<2x7x32xbf16, #tpu.memory_space<vmem>>, vector<1x5x32xbf16>,
    %c0_289 = arith.constant 0 : index
    %c0_290 = arith.constant 0 : index
    %503 = vector.load %arg22[%c0_289, %c0_290] : memref<96x64xbf16, #tpu.memory_space<vmem>>, vector<96x64xbf16>
    %cst_291 = arith.constant 0.000000e+00 : f32
    %504 = vector.broadcast %cst_291 : f32 to vector<1x64xf32>
    %cst_292 = arith.constant 0.000000e+00 : f32
    %505 = vector.broadcast %cst_292 : f32 to vector<1x64xf32>
    %c0_293 = arith.constant 0 : index
    %c0_294 = arith.constant 0 : index
    %c0_295 = arith.constant 0 : index
    %506 = vector.load %arg35[%c0_293, %c0_294, %c0_295] : memref<2x7x32xbf16, #tpu.memory_space<vmem>>, vector<1x7x32xbf16>
    %507 = vector.shape_cast %506 : vector<1x7x32xbf16> to vector<7x32xbf16>
    %508 = vector.extract_strided_slice %507 {offsets = [0, 0], sizes = [5, 32], strides = [1, 1]} : vector<7x32xbf16> to vector<5x32xbf16>
    %509 = vector.extract_strided_slice %507 {offsets = [1, 0], sizes = [5, 32], strides = [1, 1]} : vector<7x32xbf16> to vector<5x32xbf16>
    %510 = vector.extract_strided_slice %507 {offsets = [2, 0], sizes = [5, 32], strides = [1, 1]} : vector<7x32xbf16> to vector<5x32xbf16>
    %511 = tpu.concatenate %508, %509, %510 in 1 : vector<5x32xbf16>, vector<5x32xbf16>, vector<5x32xbf16> -> vector<5x96xbf16>
    %cst_296 = arith.constant dense<0.000000e+00> : vector<5x64xf32>
    %512 = tpu.matmul %511, %503, %cst_296 {dimension_numbers = #tpu.dot_dimension_numbers<[1], [0], [0], [1], [0, 0, 1, 1], [], []>} : vector<5x96xbf16>, vector<96x64xbf16>, vector<5x64xf32> -> vector<5x64xf32>
    %cst_297 = arith.constant dense<0.000000e+00> : vector<64xf32>
    %513 = vector.multi_reduction <add>, %512, %cst_297 [0] : vector<5x64xf32> to vector<64xf32>
    %514 = vector.shape_cast %513 : vector<64xf32> to vector<1x64xf32>
    %515 = arith.addf %504, %514 : vector<1x64xf32>
    %516 = arith.mulf %512, %512 : vector<5x64xf32>
    %cst_298 = arith.constant dense<0.000000e+00> : vector<64xf32>
    %517 = vector.multi_reduction <add>, %516, %cst_298 [0] : vector<5x64xf32> to vector<64xf32>
    %518 = vector.shape_cast %517 : vector<64xf32> to vector<1x64xf32>
    %519 = arith.addf %505, %518 : vector<1x64xf32>
    %c0_299 = arith.constant 0 : index
    %c0_300 = arith.constant 0 : index
    %c0_301 = arith.constant 0 : index
    %520 = vector.load %arg37[%c0_299, %c0_300, %c0_301] : memref<2x32x64xf32, #tpu.memory_space<vmem>>, vector<1x5x64xf32>
    %521 = vector.shape_cast %520 : vector<1x5x64xf32> to vector<5x64xf32>
    %522 = vector.shape_cast %512 : vector<5x64xf32> to vector<1x5x64xf32>
    tpu.vector_store %arg37[%c0_299, %c0_300, %c0_301], %522 {strides = array<i32>} : memref<2x32x64xf32, #tpu.memory_space<vmem>>, vector<1x5x64xf32>,
    %c1_302 = arith.constant 1 : index
    %c0_303 = arith.constant 0 : index
    %c0_304 = arith.constant 0 : index
    %523 = vector.load %arg35[%c1_302, %c0_303, %c0_304] : memref<2x7x32xbf16, #tpu.memory_space<vmem>>, vector<1x7x32xbf16>
    %524 = vector.shape_cast %523 : vector<1x7x32xbf16> to vector<7x32xbf16>
    %525 = vector.extract_strided_slice %524 {offsets = [0, 0], sizes = [5, 32], strides = [1, 1]} : vector<7x32xbf16> to vector<5x32xbf16>
    %526 = vector.extract_strided_slice %524 {offsets = [1, 0], sizes = [5, 32], strides = [1, 1]} : vector<7x32xbf16> to vector<5x32xbf16>
    %527 = vector.extract_strided_slice %524 {offsets = [2, 0], sizes = [5, 32], strides = [1, 1]} : vector<7x32xbf16> to vector<5x32xbf16>
    %528 = tpu.concatenate %525, %526, %527 in 1 : vector<5x32xbf16>, vector<5x32xbf16>, vector<5x32xbf16> -> vector<5x96xbf16>
    %cst_305 = arith.constant dense<0.000000e+00> : vector<5x64xf32>
    %529 = tpu.matmul %528, %503, %cst_305 {dimension_numbers = #tpu.dot_dimension_numbers<[1], [0], [0], [1], [0, 0, 1, 1], [], []>} : vector<5x96xbf16>, vector<96x64xbf16>, vector<5x64xf32> -> vector<5x64xf32>
    %cst_306 = arith.constant dense<0.000000e+00> : vector<64xf32>
    %530 = vector.multi_reduction <add>, %529, %cst_306 [0] : vector<5x64xf32> to vector<64xf32>
    %531 = vector.shape_cast %530 : vector<64xf32> to vector<1x64xf32>
    %532 = arith.addf %515, %531 : vector<1x64xf32>
    %533 = arith.mulf %529, %529 : vector<5x64xf32>
    %cst_307 = arith.constant dense<0.000000e+00> : vector<64xf32>
    %534 = vector.multi_reduction <add>, %533, %cst_307 [0] : vector<5x64xf32> to vector<64xf32>
    %535 = vector.shape_cast %534 : vector<64xf32> to vector<1x64xf32>
    %536 = arith.addf %519, %535 : vector<1x64xf32>
    %c1_308 = arith.constant 1 : index
    %c0_309 = arith.constant 0 : index
    %c0_310 = arith.constant 0 : index
    %537 = vector.load %arg37[%c1_308, %c0_309, %c0_310] : memref<2x32x64xf32, #tpu.memory_space<vmem>>, vector<1x5x64xf32>
    %538 = vector.shape_cast %537 : vector<1x5x64xf32> to vector<5x64xf32>
    %539 = vector.shape_cast %529 : vector<5x64xf32> to vector<1x5x64xf32>
    tpu.vector_store %arg37[%c1_308, %c0_309, %c0_310], %539 {strides = array<i32>} : memref<2x32x64xf32, #tpu.memory_space<vmem>>, vector<1x5x64xf32>,
    %cst_311 = arith.constant 1.000000e-01 : f32
    %540 = vector.broadcast %cst_311 : f32 to vector<1x64xf32>
    %541 = arith.mulf %532, %540 : vector<1x64xf32>
    %cst_312 = arith.constant 1.000000e-01 : f32
    %542 = vector.broadcast %cst_312 : f32 to vector<1x64xf32>
    %543 = arith.mulf %536, %542 : vector<1x64xf32>
    %544 = arith.mulf %541, %541 : vector<1x64xf32>
    %545 = arith.subf %543, %544 : vector<1x64xf32>
    %cst_313 = arith.constant 0.000000e+00 : f32
    %546 = vector.broadcast %cst_313 : f32 to vector<1x64xf32>
    %547 = arith.maximumf %545, %546 : vector<1x64xf32>
    %c0_314 = arith.constant 0 : index
    %c0_315 = arith.constant 0 : index
    %548 = vector.load %arg23[%c0_314, %c0_315] : memref<1x64xf32, #tpu.memory_space<vmem>>, vector<1x64xf32>
    %cst_316 = arith.constant 9.99999974E-6 : f32
    %549 = vector.broadcast %cst_316 : f32 to vector<1x64xf32>
    %550 = arith.addf %547, %549 : vector<1x64xf32>
    %551 = math.rsqrt %550 : vector<1x64xf32>
    %552 = arith.mulf %548, %551 : vector<1x64xf32>
    %c0_317 = arith.constant 0 : index
    %c0_318 = arith.constant 0 : index
    %553 = vector.load %arg24[%c0_317, %c0_318] : memref<1x64xf32, #tpu.memory_space<vmem>>, vector<1x64xf32>
    %554 = arith.mulf %541, %552 : vector<1x64xf32>
    %555 = arith.subf %553, %554 : vector<1x64xf32>
    %cst_319 = arith.constant 0.000000e+00 : bf16
    %556 = vector.broadcast %cst_319 : bf16 to vector<1x64xbf16>
    %c0_320 = arith.constant 0 : index
    %c0_321 = arith.constant 0 : index
    %c0_322 = arith.constant 0 : index
    %557 = vector.load %arg36[%c0_320, %c0_321, %c0_322] : memref<2x7x64xbf16, #tpu.memory_space<vmem>>, vector<1x1x64xbf16>
    %558 = vector.shape_cast %557 : vector<1x1x64xbf16> to vector<1x64xbf16>
    %559 = vector.shape_cast %556 : vector<1x64xbf16> to vector<1x1x64xbf16>
    tpu.vector_store %arg36[%c0_320, %c0_321, %c0_322], %559 {strides = array<i32>} : memref<2x7x64xbf16, #tpu.memory_space<vmem>>, vector<1x1x64xbf16>,
    %c0_323 = arith.constant 0 : index
    %c6_324 = arith.constant 6 : index
    %c0_325 = arith.constant 0 : index
    %560 = vector.load %arg36[%c0_323, %c6_324, %c0_325] : memref<2x7x64xbf16, #tpu.memory_space<vmem>>, vector<1x1x64xbf16>
    %561 = vector.shape_cast %560 : vector<1x1x64xbf16> to vector<1x64xbf16>
    %562 = vector.shape_cast %556 : vector<1x64xbf16> to vector<1x1x64xbf16>
    tpu.vector_store %arg36[%c0_323, %c6_324, %c0_325], %562 {strides = array<i32>} : memref<2x7x64xbf16, #tpu.memory_space<vmem>>, vector<1x1x64xbf16>,
    %c0_326 = arith.constant 0 : index
    %c0_327 = arith.constant 0 : index
    %c0_328 = arith.constant 0 : index
    %563 = vector.load %arg37[%c0_326, %c0_327, %c0_328] : memref<2x32x64xf32, #tpu.memory_space<vmem>>, vector<1x5x64xf32>
    %564 = vector.shape_cast %563 : vector<1x5x64xf32> to vector<5x64xf32>
    %565 = vector.broadcast %552 : vector<1x64xf32> to vector<5x64xf32>
    %566 = arith.mulf %564, %565 : vector<5x64xf32>
    %567 = vector.broadcast %555 : vector<1x64xf32> to vector<5x64xf32>
    %568 = arith.addf %566, %567 : vector<5x64xf32>
    %cst_329 = arith.constant 0.000000e+00 : f32
    %569 = vector.broadcast %cst_329 : f32 to vector<5x64xf32>
    %570 = arith.maximumf %568, %569 : vector<5x64xf32>
    %571 = arith.truncf %570 : vector<5x64xf32> to vector<5x64xbf16>
    %c0_330 = arith.constant 0 : index
    %c1_331 = arith.constant 1 : index
    %c0_332 = arith.constant 0 : index
    %572 = vector.load %arg36[%c0_330, %c1_331, %c0_332] : memref<2x7x64xbf16, #tpu.memory_space<vmem>>, vector<1x5x64xbf16>
    %573 = vector.shape_cast %572 : vector<1x5x64xbf16> to vector<5x64xbf16>
    %574 = vector.shape_cast %571 : vector<5x64xbf16> to vector<1x5x64xbf16>
    tpu.vector_store %arg36[%c0_330, %c1_331, %c0_332], %574 {strides = array<i32>} : memref<2x7x64xbf16, #tpu.memory_space<vmem>>, vector<1x5x64xbf16>,
    %c1_333 = arith.constant 1 : index
    %c0_334 = arith.constant 0 : index
    %c0_335 = arith.constant 0 : index
    %575 = vector.load %arg36[%c1_333, %c0_334, %c0_335] : memref<2x7x64xbf16, #tpu.memory_space<vmem>>, vector<1x1x64xbf16>
    %576 = vector.shape_cast %575 : vector<1x1x64xbf16> to vector<1x64xbf16>
    %577 = vector.shape_cast %556 : vector<1x64xbf16> to vector<1x1x64xbf16>
    tpu.vector_store %arg36[%c1_333, %c0_334, %c0_335], %577 {strides = array<i32>} : memref<2x7x64xbf16, #tpu.memory_space<vmem>>, vector<1x1x64xbf16>,
    %c1_336 = arith.constant 1 : index
    %c6_337 = arith.constant 6 : index
    %c0_338 = arith.constant 0 : index
    %578 = vector.load %arg36[%c1_336, %c6_337, %c0_338] : memref<2x7x64xbf16, #tpu.memory_space<vmem>>, vector<1x1x64xbf16>
    %579 = vector.shape_cast %578 : vector<1x1x64xbf16> to vector<1x64xbf16>
    %580 = vector.shape_cast %556 : vector<1x64xbf16> to vector<1x1x64xbf16>
    tpu.vector_store %arg36[%c1_336, %c6_337, %c0_338], %580 {strides = array<i32>} : memref<2x7x64xbf16, #tpu.memory_space<vmem>>, vector<1x1x64xbf16>,
    %c1_339 = arith.constant 1 : index
    %c0_340 = arith.constant 0 : index
    %c0_341 = arith.constant 0 : index
    %581 = vector.load %arg37[%c1_339, %c0_340, %c0_341] : memref<2x32x64xf32, #tpu.memory_space<vmem>>, vector<1x5x64xf32>
    %582 = vector.shape_cast %581 : vector<1x5x64xf32> to vector<5x64xf32>
    %583 = vector.broadcast %552 : vector<1x64xf32> to vector<5x64xf32>
    %584 = arith.mulf %582, %583 : vector<5x64xf32>
    %585 = vector.broadcast %555 : vector<1x64xf32> to vector<5x64xf32>
    %586 = arith.addf %584, %585 : vector<5x64xf32>
    %cst_342 = arith.constant 0.000000e+00 : f32
    %587 = vector.broadcast %cst_342 : f32 to vector<5x64xf32>
    %588 = arith.maximumf %586, %587 : vector<5x64xf32>
    %589 = arith.truncf %588 : vector<5x64xf32> to vector<5x64xbf16>
    %c1_343 = arith.constant 1 : index
    %c1_344 = arith.constant 1 : index
    %c0_345 = arith.constant 0 : index
    %590 = vector.load %arg36[%c1_343, %c1_344, %c0_345] : memref<2x7x64xbf16, #tpu.memory_space<vmem>>, vector<1x5x64xbf16>
    %591 = vector.shape_cast %590 : vector<1x5x64xbf16> to vector<5x64xbf16>
    %592 = vector.shape_cast %589 : vector<5x64xbf16> to vector<1x5x64xbf16>
    tpu.vector_store %arg36[%c1_343, %c1_344, %c0_345], %592 {strides = array<i32>} : memref<2x7x64xbf16, #tpu.memory_space<vmem>>, vector<1x5x64xbf16>,
    %c0_346 = arith.constant 0 : index
    %c0_347 = arith.constant 0 : index
    %593 = vector.load %arg25[%c0_346, %c0_347] : memref<192x64xbf16, #tpu.memory_space<vmem>>, vector<192x64xbf16>
    %cst_348 = arith.constant 0.000000e+00 : f32
    %594 = vector.broadcast %cst_348 : f32 to vector<1x64xf32>
    %cst_349 = arith.constant 0.000000e+00 : f32
    %595 = vector.broadcast %cst_349 : f32 to vector<1x64xf32>
    %c0_350 = arith.constant 0 : index
    %c0_351 = arith.constant 0 : index
    %c0_352 = arith.constant 0 : index
    %596 = vector.load %arg36[%c0_350, %c0_351, %c0_352] : memref<2x7x64xbf16, #tpu.memory_space<vmem>>, vector<1x7x64xbf16>
    %597 = vector.shape_cast %596 : vector<1x7x64xbf16> to vector<7x64xbf16>
    %598 = vector.extract_strided_slice %597 {offsets = [0, 0], sizes = [5, 64], strides = [1, 1]} : vector<7x64xbf16> to vector<5x64xbf16>
    %599 = vector.extract_strided_slice %597 {offsets = [1, 0], sizes = [5, 64], strides = [1, 1]} : vector<7x64xbf16> to vector<5x64xbf16>
    %600 = vector.extract_strided_slice %597 {offsets = [2, 0], sizes = [5, 64], strides = [1, 1]} : vector<7x64xbf16> to vector<5x64xbf16>
    %601 = tpu.concatenate %598, %599, %600 in 1 : vector<5x64xbf16>, vector<5x64xbf16>, vector<5x64xbf16> -> vector<5x192xbf16>
    %cst_353 = arith.constant dense<0.000000e+00> : vector<5x64xf32>
    %602 = tpu.matmul %601, %593, %cst_353 {dimension_numbers = #tpu.dot_dimension_numbers<[1], [0], [0], [1], [0, 0, 1, 1], [], []>} : vector<5x192xbf16>, vector<192x64xbf16>, vector<5x64xf32> -> vector<5x64xf32>
    %cst_354 = arith.constant dense<0.000000e+00> : vector<64xf32>
    %603 = vector.multi_reduction <add>, %602, %cst_354 [0] : vector<5x64xf32> to vector<64xf32>
    %604 = vector.shape_cast %603 : vector<64xf32> to vector<1x64xf32>
    %605 = arith.addf %594, %604 : vector<1x64xf32>
    %606 = arith.mulf %602, %602 : vector<5x64xf32>
    %cst_355 = arith.constant dense<0.000000e+00> : vector<64xf32>
    %607 = vector.multi_reduction <add>, %606, %cst_355 [0] : vector<5x64xf32> to vector<64xf32>
    %608 = vector.shape_cast %607 : vector<64xf32> to vector<1x64xf32>
    %609 = arith.addf %595, %608 : vector<1x64xf32>
    %c0_356 = arith.constant 0 : index
    %c0_357 = arith.constant 0 : index
    %c0_358 = arith.constant 0 : index
    %610 = vector.load %arg37[%c0_356, %c0_357, %c0_358] : memref<2x32x64xf32, #tpu.memory_space<vmem>>, vector<1x5x64xf32>
    %611 = vector.shape_cast %610 : vector<1x5x64xf32> to vector<5x64xf32>
    %612 = vector.shape_cast %602 : vector<5x64xf32> to vector<1x5x64xf32>
    tpu.vector_store %arg37[%c0_356, %c0_357, %c0_358], %612 {strides = array<i32>} : memref<2x32x64xf32, #tpu.memory_space<vmem>>, vector<1x5x64xf32>,
    %c1_359 = arith.constant 1 : index
    %c0_360 = arith.constant 0 : index
    %c0_361 = arith.constant 0 : index
    %613 = vector.load %arg36[%c1_359, %c0_360, %c0_361] : memref<2x7x64xbf16, #tpu.memory_space<vmem>>, vector<1x7x64xbf16>
    %614 = vector.shape_cast %613 : vector<1x7x64xbf16> to vector<7x64xbf16>
    %615 = vector.extract_strided_slice %614 {offsets = [0, 0], sizes = [5, 64], strides = [1, 1]} : vector<7x64xbf16> to vector<5x64xbf16>
    %616 = vector.extract_strided_slice %614 {offsets = [1, 0], sizes = [5, 64], strides = [1, 1]} : vector<7x64xbf16> to vector<5x64xbf16>
    %617 = vector.extract_strided_slice %614 {offsets = [2, 0], sizes = [5, 64], strides = [1, 1]} : vector<7x64xbf16> to vector<5x64xbf16>
    %618 = tpu.concatenate %615, %616, %617 in 1 : vector<5x64xbf16>, vector<5x64xbf16>, vector<5x64xbf16> -> vector<5x192xbf16>
    %cst_362 = arith.constant dense<0.000000e+00> : vector<5x64xf32>
    %619 = tpu.matmul %618, %593, %cst_362 {dimension_numbers = #tpu.dot_dimension_numbers<[1], [0], [0], [1], [0, 0, 1, 1], [], []>} : vector<5x192xbf16>, vector<192x64xbf16>, vector<5x64xf32> -> vector<5x64xf32>
    %cst_363 = arith.constant dense<0.000000e+00> : vector<64xf32>
    %620 = vector.multi_reduction <add>, %619, %cst_363 [0] : vector<5x64xf32> to vector<64xf32>
    %621 = vector.shape_cast %620 : vector<64xf32> to vector<1x64xf32>
    %622 = arith.addf %605, %621 : vector<1x64xf32>
    %623 = arith.mulf %619, %619 : vector<5x64xf32>
    %cst_364 = arith.constant dense<0.000000e+00> : vector<64xf32>
    %624 = vector.multi_reduction <add>, %623, %cst_364 [0] : vector<5x64xf32> to vector<64xf32>
    %625 = vector.shape_cast %624 : vector<64xf32> to vector<1x64xf32>
    %626 = arith.addf %609, %625 : vector<1x64xf32>
    %c1_365 = arith.constant 1 : index
    %c0_366 = arith.constant 0 : index
    %c0_367 = arith.constant 0 : index
    %627 = vector.load %arg37[%c1_365, %c0_366, %c0_367] : memref<2x32x64xf32, #tpu.memory_space<vmem>>, vector<1x5x64xf32>
    %628 = vector.shape_cast %627 : vector<1x5x64xf32> to vector<5x64xf32>
    %629 = vector.shape_cast %619 : vector<5x64xf32> to vector<1x5x64xf32>
    tpu.vector_store %arg37[%c1_365, %c0_366, %c0_367], %629 {strides = array<i32>} : memref<2x32x64xf32, #tpu.memory_space<vmem>>, vector<1x5x64xf32>,
    %cst_368 = arith.constant 1.000000e-01 : f32
    %630 = vector.broadcast %cst_368 : f32 to vector<1x64xf32>
    %631 = arith.mulf %622, %630 : vector<1x64xf32>
    %cst_369 = arith.constant 1.000000e-01 : f32
    %632 = vector.broadcast %cst_369 : f32 to vector<1x64xf32>
    %633 = arith.mulf %626, %632 : vector<1x64xf32>
    %634 = arith.mulf %631, %631 : vector<1x64xf32>
    %635 = arith.subf %633, %634 : vector<1x64xf32>
    %cst_370 = arith.constant 0.000000e+00 : f32
    %636 = vector.broadcast %cst_370 : f32 to vector<1x64xf32>
    %637 = arith.maximumf %635, %636 : vector<1x64xf32>
    %c0_371 = arith.constant 0 : index
    %c0_372 = arith.constant 0 : index
    %638 = vector.load %arg26[%c0_371, %c0_372] : memref<1x64xf32, #tpu.memory_space<vmem>>, vector<1x64xf32>
    %cst_373 = arith.constant 9.99999974E-6 : f32
    %639 = vector.broadcast %cst_373 : f32 to vector<1x64xf32>
    %640 = arith.addf %637, %639 : vector<1x64xf32>
    %641 = math.rsqrt %640 : vector<1x64xf32>
    %642 = arith.mulf %638, %641 : vector<1x64xf32>
    %c0_374 = arith.constant 0 : index
    %c0_375 = arith.constant 0 : index
    %643 = vector.load %arg27[%c0_374, %c0_375] : memref<1x64xf32, #tpu.memory_space<vmem>>, vector<1x64xf32>
    %644 = arith.mulf %631, %642 : vector<1x64xf32>
    %645 = arith.subf %643, %644 : vector<1x64xf32>
    %c0_376 = arith.constant 0 : index
    %c0_377 = arith.constant 0 : index
    %646 = vector.load %arg28[%c0_376, %c0_377] : memref<32x64xbf16, #tpu.memory_space<vmem>>, vector<32x64xbf16>
    %c0_378 = arith.constant 0 : index
    %c0_379 = arith.constant 0 : index
    %647 = vector.load %arg29[%c0_378, %c0_379] : memref<1x64xf32, #tpu.memory_space<vmem>>, vector<1x64xf32>
    %c0_380 = arith.constant 0 : index
    %c1_381 = arith.constant 1 : index
    %c0_382 = arith.constant 0 : index
    %648 = vector.load %arg35[%c0_380, %c1_381, %c0_382] : memref<2x7x32xbf16, #tpu.memory_space<vmem>>, vector<1x5x32xbf16>
    %649 = vector.shape_cast %648 : vector<1x5x32xbf16> to vector<5x32xbf16>
    %cst_383 = arith.constant dense<0.000000e+00> : vector<5x64xf32>
    %650 = tpu.matmul %649, %646, %cst_383 {dimension_numbers = #tpu.dot_dimension_numbers<[1], [0], [0], [1], [0, 0, 1, 1], [], []>} : vector<5x32xbf16>, vector<32x64xbf16>, vector<5x64xf32> -> vector<5x64xf32>
    %651 = vector.broadcast %647 : vector<1x64xf32> to vector<5x64xf32>
    %652 = arith.addf %650, %651 : vector<5x64xf32>
    %c0_384 = arith.constant 0 : index
    %c0_385 = arith.constant 0 : index
    %c0_386 = arith.constant 0 : index
    %653 = vector.load %arg37[%c0_384, %c0_385, %c0_386] : memref<2x32x64xf32, #tpu.memory_space<vmem>>, vector<1x5x64xf32>
    %654 = vector.shape_cast %653 : vector<1x5x64xf32> to vector<5x64xf32>
    %655 = vector.broadcast %642 : vector<1x64xf32> to vector<5x64xf32>
    %656 = arith.mulf %654, %655 : vector<5x64xf32>
    %657 = vector.broadcast %645 : vector<1x64xf32> to vector<5x64xf32>
    %658 = arith.addf %656, %657 : vector<5x64xf32>
    %659 = arith.addf %658, %652 : vector<5x64xf32>
    %cst_387 = arith.constant 0.000000e+00 : f32
    %660 = vector.broadcast %cst_387 : f32 to vector<5x64xf32>
    %661 = arith.maximumf %659, %660 : vector<5x64xf32>
    %c0_388 = arith.constant 0 : index
    %c0_389 = arith.constant 0 : index
    %c0_390 = arith.constant 0 : index
    %662 = vector.load %arg30[%c0_388, %c0_389, %c0_390] : memref<2x5x64xf32, #tpu.memory_space<vmem>>, vector<1x5x64xf32>
    %663 = vector.shape_cast %662 : vector<1x5x64xf32> to vector<5x64xf32>
    %664 = vector.shape_cast %661 : vector<5x64xf32> to vector<1x5x64xf32>
    tpu.vector_store %arg30[%c0_388, %c0_389, %c0_390], %664 {strides = array<i32>} : memref<2x5x64xf32, #tpu.memory_space<vmem>>, vector<1x5x64xf32>,
    %c1_391 = arith.constant 1 : index
    %c1_392 = arith.constant 1 : index
    %c0_393 = arith.constant 0 : index
    %665 = vector.load %arg35[%c1_391, %c1_392, %c0_393] : memref<2x7x32xbf16, #tpu.memory_space<vmem>>, vector<1x5x32xbf16>
    %666 = vector.shape_cast %665 : vector<1x5x32xbf16> to vector<5x32xbf16>
    %cst_394 = arith.constant dense<0.000000e+00> : vector<5x64xf32>
    %667 = tpu.matmul %666, %646, %cst_394 {dimension_numbers = #tpu.dot_dimension_numbers<[1], [0], [0], [1], [0, 0, 1, 1], [], []>} : vector<5x32xbf16>, vector<32x64xbf16>, vector<5x64xf32> -> vector<5x64xf32>
    %668 = vector.broadcast %647 : vector<1x64xf32> to vector<5x64xf32>
    %669 = arith.addf %667, %668 : vector<5x64xf32>
    %c1_395 = arith.constant 1 : index
    %c0_396 = arith.constant 0 : index
    %c0_397 = arith.constant 0 : index
    %670 = vector.load %arg37[%c1_395, %c0_396, %c0_397] : memref<2x32x64xf32, #tpu.memory_space<vmem>>, vector<1x5x64xf32>
    %671 = vector.shape_cast %670 : vector<1x5x64xf32> to vector<5x64xf32>
    %672 = vector.broadcast %642 : vector<1x64xf32> to vector<5x64xf32>
    %673 = arith.mulf %671, %672 : vector<5x64xf32>
    %674 = vector.broadcast %645 : vector<1x64xf32> to vector<5x64xf32>
    %675 = arith.addf %673, %674 : vector<5x64xf32>
    %676 = arith.addf %675, %669 : vector<5x64xf32>
    %cst_398 = arith.constant 0.000000e+00 : f32
    %677 = vector.broadcast %cst_398 : f32 to vector<5x64xf32>
    %678 = arith.maximumf %676, %677 : vector<5x64xf32>
    %c1_399 = arith.constant 1 : index
    %c0_400 = arith.constant 0 : index
    %c0_401 = arith.constant 0 : index
    %679 = vector.load %arg30[%c1_399, %c0_400, %c0_401] : memref<2x5x64xf32, #tpu.memory_space<vmem>>, vector<1x5x64xf32>
    %680 = vector.shape_cast %679 : vector<1x5x64xf32> to vector<5x64xf32>
    %681 = vector.shape_cast %678 : vector<5x64xf32> to vector<1x5x64xf32>
    tpu.vector_store %arg30[%c1_399, %c0_400, %c0_401], %681 {strides = array<i32>} : memref<2x5x64xf32, #tpu.memory_space<vmem>>, vector<1x5x64xf32>,
    return
  }
  func.func @transform_0(%arg0: i32) -> (i32, i32, i32) {
    %c0_i32 = arith.constant 0 : i32
    %c0_i32_0 = arith.constant 0 : i32
    %c0_i32_1 = arith.constant 0 : i32
    %c0_i32_2 = arith.constant 0 : i32
    return %c0_i32, %c0_i32_0, %c0_i32_1 : i32, i32, i32
  }
  func.func @transform_1(%arg0: i32) -> (i32, i32) {
    %c0_i32 = arith.constant 0 : i32
    %c0_i32_0 = arith.constant 0 : i32
    %c0_i32_1 = arith.constant 0 : i32
    return %c0_i32, %c0_i32_0 : i32, i32
  }
  func.func @transform_2(%arg0: i32) -> (i32, i32) {
    %c0_i32 = arith.constant 0 : i32
    %c0_i32_0 = arith.constant 0 : i32
    %c0_i32_1 = arith.constant 0 : i32
    return %c0_i32, %c0_i32_0 : i32, i32
  }
  func.func @transform_3(%arg0: i32) -> (i32, i32) {
    %c0_i32 = arith.constant 0 : i32
    %c0_i32_0 = arith.constant 0 : i32
    %c0_i32_1 = arith.constant 0 : i32
    return %c0_i32, %c0_i32_0 : i32, i32
  }
  func.func @transform_4(%arg0: i32) -> (i32, i32) {
    %c0_i32 = arith.constant 0 : i32
    %c0_i32_0 = arith.constant 0 : i32
    %c0_i32_1 = arith.constant 0 : i32
    return %c0_i32, %c0_i32_0 : i32, i32
  }
  func.func @transform_5(%arg0: i32) -> (i32, i32) {
    %c0_i32 = arith.constant 0 : i32
    %c0_i32_0 = arith.constant 0 : i32
    %c0_i32_1 = arith.constant 0 : i32
    return %c0_i32, %c0_i32_0 : i32, i32
  }
  func.func @transform_6(%arg0: i32) -> (i32, i32) {
    %c0_i32 = arith.constant 0 : i32
    %c0_i32_0 = arith.constant 0 : i32
    %c0_i32_1 = arith.constant 0 : i32
    return %c0_i32, %c0_i32_0 : i32, i32
  }
  func.func @transform_7(%arg0: i32) -> (i32, i32) {
    %c0_i32 = arith.constant 0 : i32
    %c0_i32_0 = arith.constant 0 : i32
    %c0_i32_1 = arith.constant 0 : i32
    return %c0_i32, %c0_i32_0 : i32, i32
  }
  func.func @transform_8(%arg0: i32) -> (i32, i32) {
    %c0_i32 = arith.constant 0 : i32
    %c0_i32_0 = arith.constant 0 : i32
    %c0_i32_1 = arith.constant 0 : i32
    return %c0_i32, %c0_i32_0 : i32, i32
  }
  func.func @transform_9(%arg0: i32) -> (i32, i32) {
    %c0_i32 = arith.constant 0 : i32
    %c0_i32_0 = arith.constant 0 : i32
    %c0_i32_1 = arith.constant 0 : i32
    return %c0_i32, %c0_i32_0 : i32, i32
  }
  func.func @transform_10(%arg0: i32) -> (i32, i32) {
    %c0_i32 = arith.constant 0 : i32
    %c0_i32_0 = arith.constant 0 : i32
    %c0_i32_1 = arith.constant 0 : i32
    return %c0_i32, %c0_i32_0 : i32, i32
  }
  func.func @transform_11(%arg0: i32) -> (i32, i32) {
    %c0_i32 = arith.constant 0 : i32
    %c0_i32_0 = arith.constant 0 : i32
    %c0_i32_1 = arith.constant 0 : i32
    return %c0_i32, %c0_i32_0 : i32, i32
  }
  func.func @transform_12(%arg0: i32) -> (i32, i32) {
    %c0_i32 = arith.constant 0 : i32
    %c0_i32_0 = arith.constant 0 : i32
    %c0_i32_1 = arith.constant 0 : i32
    return %c0_i32, %c0_i32_0 : i32, i32
  }
  func.func @transform_13(%arg0: i32) -> (i32, i32) {
    %c0_i32 = arith.constant 0 : i32
    %c0_i32_0 = arith.constant 0 : i32
    %c0_i32_1 = arith.constant 0 : i32
    return %c0_i32, %c0_i32_0 : i32, i32
  }
  func.func @transform_14(%arg0: i32) -> (i32, i32) {
    %c0_i32 = arith.constant 0 : i32
    %c0_i32_0 = arith.constant 0 : i32
    %c0_i32_1 = arith.constant 0 : i32
    return %c0_i32, %c0_i32_0 : i32, i32
  }
  func.func @transform_15(%arg0: i32) -> (i32, i32) {
    %c0_i32 = arith.constant 0 : i32
    %c0_i32_0 = arith.constant 0 : i32
    %c0_i32_1 = arith.constant 0 : i32
    return %c0_i32, %c0_i32_0 : i32, i32
  }
  func.func @transform_16(%arg0: i32) -> (i32, i32) {
    %c0_i32 = arith.constant 0 : i32
    %c0_i32_0 = arith.constant 0 : i32
    %c0_i32_1 = arith.constant 0 : i32
    return %c0_i32, %c0_i32_0 : i32, i32
  }
  func.func @transform_17(%arg0: i32) -> (i32, i32) {
    %c0_i32 = arith.constant 0 : i32
    %c0_i32_0 = arith.constant 0 : i32
    %c0_i32_1 = arith.constant 0 : i32
    return %c0_i32, %c0_i32_0 : i32, i32
  }
  func.func @transform_18(%arg0: i32) -> (i32, i32) {
    %c0_i32 = arith.constant 0 : i32
    %c0_i32_0 = arith.constant 0 : i32
    %c0_i32_1 = arith.constant 0 : i32
    return %c0_i32, %c0_i32_0 : i32, i32
  }
  func.func @transform_19(%arg0: i32) -> (i32, i32) {
    %c0_i32 = arith.constant 0 : i32
    %c0_i32_0 = arith.constant 0 : i32
    %c0_i32_1 = arith.constant 0 : i32
    return %c0_i32, %c0_i32_0 : i32, i32
  }
  func.func @transform_20(%arg0: i32) -> (i32, i32) {
    %c0_i32 = arith.constant 0 : i32
    %c0_i32_0 = arith.constant 0 : i32
    %c0_i32_1 = arith.constant 0 : i32
    return %c0_i32, %c0_i32_0 : i32, i32
  }
  func.func @transform_21(%arg0: i32) -> (i32, i32) {
    %c0_i32 = arith.constant 0 : i32
    %c0_i32_0 = arith.constant 0 : i32
    %c0_i32_1 = arith.constant 0 : i32
    return %c0_i32, %c0_i32_0 : i32, i32
  }
  func.func @transform_22(%arg0: i32) -> (i32, i32) {
    %c0_i32 = arith.constant 0 : i32
    %c0_i32_0 = arith.constant 0 : i32
    %c0_i32_1 = arith.constant 0 : i32
    return %c0_i32, %c0_i32_0 : i32, i32
  }
  func.func @transform_23(%arg0: i32) -> (i32, i32) {
    %c0_i32 = arith.constant 0 : i32
    %c0_i32_0 = arith.constant 0 : i32
    %c0_i32_1 = arith.constant 0 : i32
    return %c0_i32, %c0_i32_0 : i32, i32
  }
  func.func @transform_24(%arg0: i32) -> (i32, i32) {
    %c0_i32 = arith.constant 0 : i32
    %c0_i32_0 = arith.constant 0 : i32
    %c0_i32_1 = arith.constant 0 : i32
    return %c0_i32, %c0_i32_0 : i32, i32
  }
  func.func @transform_25(%arg0: i32) -> (i32, i32) {
    %c0_i32 = arith.constant 0 : i32
    %c0_i32_0 = arith.constant 0 : i32
    %c0_i32_1 = arith.constant 0 : i32
    return %c0_i32, %c0_i32_0 : i32, i32
  }
  func.func @transform_26(%arg0: i32) -> (i32, i32) {
    %c0_i32 = arith.constant 0 : i32
    %c0_i32_0 = arith.constant 0 : i32
    %c0_i32_1 = arith.constant 0 : i32
    return %c0_i32, %c0_i32_0 : i32, i32
  }
  func.func @transform_27(%arg0: i32) -> (i32, i32) {
    %c0_i32 = arith.constant 0 : i32
    %c0_i32_0 = arith.constant 0 : i32
    %c0_i32_1 = arith.constant 0 : i32
    return %c0_i32, %c0_i32_0 : i32, i32
  }
  func.func @transform_28(%arg0: i32) -> (i32, i32) {
    %c0_i32 = arith.constant 0 : i32
    %c0_i32_0 = arith.constant 0 : i32
    %c0_i32_1 = arith.constant 0 : i32
    return %c0_i32, %c0_i32_0 : i32, i32
  }
  func.func @transform_29(%arg0: i32) -> (i32, i32, i32) {
    %c0_i32 = arith.constant 0 : i32
    %c0_i32_0 = arith.constant 0 : i32
    %c0_i32_1 = arith.constant 0 : i32
    %c0_i32_2 = arith.constant 0 : i32
    return %c0_i32, %c0_i32_0, %c0_i32_1 : i32, i32, i32
  }
}

</mosaic_0001>

<bundles_post_ra>
// kernel: resnet_forward.1
= control target key start
LH: loop header
LB: loop body
LE: loop exit
PB: predicated region body
PF: predicated region fallthrough
CT: control target
= control target key end

     0   :  { %vm123_vm0 = vcmask 57344   ;;  %v3467_v0 = vmov 0   ;;  %vm125_vm1 = vcmask 58369   ;;  %vm135_vm2 = vcmask 1040384   ;;  %s3468_s6 = smov 8   ;;  %s3469_s10 = smov 32   ;;  %s4253_s0 = inlined_call_operand.smem [shape: u32[30], index: -1, kind: input, shape index: {}] }
   0x1   :  { %s1_s5 = sld [smem:[%s4253_s0]]   ;;  %162 = vst.msk [vmem:[#allocation2 + $0x14] sm:$0x1] %vm123_vm0, %v3467_v0  ;;  %vm136_vm3 = vcmask 1044484   ;;  %vm154_vm4 = vcmask 60417   ;;  %vm156_vm6 = vcmask 60416   ;;  %vm302_vm7 = vcmask 1045504  }
   0x2   :  { %124 = vst.msk [vmem:[#allocation2] sm:$0x1] %vm123_vm0, %v3467_v0  ;;  %s3520_s9 = sld [smem:[%s4253_s0 + %s3468_s6]]   ;;  %vm3522_vm5 = vmor %vm135_vm2, %vm136_vm3  ;;  %vm274_vm8 = vcmask 1046528   ;;  %s3470_s11 = smov 16   ;;  %vm284_vm9 = vsmask.f32 6400 }
   0x3   :  { %126 = vst.msk [vmem:[#allocation2 + $0x10] sm:$0x2] %vm125_vm1, %v3467_v0  ;;  %s3471_s12 = smov 24   ;;  %vm249_vm10 = vsmask.f32 7424  ;;  %s3472_s13 = smov 1  }
   0x4   :  { %163 = vst.msk [vmem:[#allocation2 + $0x24] sm:$0x2] %vm125_vm1, %v3467_v0  ;;  %s2992_s16 = sld [smem:[%s4253_s0 + %s3472_s13]]   ;;  %vm352_vm11 = vcmask 1043456   ;;  %vm312_vm12 = vcmask 64512   ;;  %vm317_vm13 = vcmask 130048   ;;  %vm322_vm14 = vcmask 195584  }
   0x5   :  { %vm327_vm15 = vcmask 261120   ;;  %vm585_vm1 = vcmask 122880   ;;  %s3473_s17 = smov 2   ;;  %vm587_vm2 = vcmask 123905   ;;  %s3474_s21 = smov 3  }
   0x6   :  { %586 = vst.msk [vmem:[#allocation3] sm:$0x1] %vm585_vm1, %v3467_v0  ;;  %s2993_s20 = sld [smem:[%s4253_s0 + %s3473_s17]]   ;;  %s3475_s25 = smov 64  }
   0x7   :  { %v3021_v1 = vld [vmem:[%s1_s5 + $0x10] sm:$0xf]  ;;  %v3022_v2 = vld [vmem:[%s1_s5 + $0x14] sm:$0xf]  ;;  %v3023_v3 = vld [vmem:[%s1_s5 + $0x18] sm:$0xf]  ;;  %s2994_s24 = sld [smem:[%s4253_s0 + %s3474_s21]]  }
   0x8   :  { %v3024_v4 = vld [vmem:[%s1_s5 + $0x1c] sm:$0xf]  ;;  %v173_v5 = vrot.slane %v3021_v1, 7  ;;  %v175_v6 = vrot.slane %v3022_v2, 7  ;;  %v178_v7 = vrot.slane %v3023_v3, 7  ;;  %s3476_s26 = smov 48  }
   0x9   :  { %v181_v9 = vrot.slane %v3024_v4, 7  ;;  %v127_v10 = vld [vmem:[%s1_s5] sm:$0xf]  ;;  %v128_v11 = vld [vmem:[%s1_s5 + $0x4] sm:$0xf]  ;;  %s3477_s27 = smov 4  }
   0xa   :  { %v174_v12 = vrot.slane %v173_v5, 4  ;;  %v177_v13 = vrot.slane %v175_v6, 4  ;;  %v180_v14 = vrot.slane %v178_v7, 4  ;;  %189 = vst.msk [vmem:[#allocation2 + $0x14] sm:$0xe] %vm154_vm4, %v173_v5  ;;  %v138_v15 = vrot.slane %v127_v10, 7  ;;  %s2995_s30 = sld [smem:[%s4253_s0 + %s3477_s27]]  }
   0xb   :  { %v129_v16 = vld [vmem:[%s1_s5 + $0x8] sm:$0xf]  ;;  %v130_v17 = vld [vmem:[%s1_s5 + $0xc] sm:$0xf]  ;;  %v140_v18 = vrot.slane %v128_v11, 7  ;;  %v183_v30 = vrot.slane %v181_v9, 4 }
   0xc   :  { %v176_v19 = vsel %vm3522_vm5, %v174_v12, %v175_v6  ;;  %v179_v20 = vsel %vm3522_vm5, %v177_v13, %v178_v7  ;;  %v182_v21 = vsel %vm3522_vm5, %v180_v14, %v181_v9  ;;  %v139_v22 = vrot.slane %v138_v15, 4  ;;  %155 = vst.msk [vmem:[#allocation2] sm:$0xe] %vm154_vm4, %v138_v15  ;;  %s3478_s1 = smov 7   ;;  %s3479_s5 = smov 5  }
   0xd   :  { %190 = vst.msk [vmem:[#allocation2 + $0x18] sm:$0xf] %vm156_vm6, %v176_v19  ;;  %v142_v23 = vrot.slane %v140_v18, 4  ;;  %v143_v24 = vrot.slane %v129_v16, 7  ;;  %v146_v25 = vrot.slane %v130_v17, 7  ;;  %s2998_s4 = sld [smem:[%s4253_s0 + %s3478_s1]]   ;;  %s3480_s13 = smov 6  }
   0xe   :  { %191 = vst.msk [vmem:[#allocation2 + $0x1c] sm:$0xf] %vm156_vm6, %v179_v20  ;;  %v141_v29 = vsel %vm3522_vm5, %v139_v22, %v140_v18  ;;  %s2996_s8 = sld [smem:[%s4253_s0 + %s3479_s5]]   ;;  %s3485_s29 = smov 17  }
   0xf   :  { %192 = vst.msk [vmem:[#allocation2 + $0x20] sm:$0xf] %vm156_vm6, %v182_v21  ;;  %v144_v26 = vsel %vm3522_vm5, %v142_v23, %v143_v24  ;;  %v145_v27 = vrot.slane %v143_v24, 4  ;;  %v148_v28 = vrot.slane %v146_v25, 4  ;;  %s3008_s2 = sld [smem:[%s4253_s0 + %s3485_s29]]   ;;  %s3486_s3 = smov 18  }
  0x10   :  { %158 = vst.msk [vmem:[#allocation2 + $0x8] sm:$0xf] %vm156_vm6, %v144_v26  ;;  %s3487_s7 = smov 12   ;;  %s3488_s15 = smov 13  }
  0x11   :  { %v147_v31 = vsel %vm3522_vm5, %v145_v27, %v146_v25  ;;  %160 = vst.msk [vmem:[#allocation2 + $0x10] sm:$0x1] %vm123_vm0, %v148_v28  ;;  %s3003_s14 = sld [smem:[%s4253_s0 + %s3487_s7]]   ;;  %s3489_s18 = smov 14  }
  0x12   :  { %159 = vst.msk [vmem:[#allocation2 + $0xc] sm:$0xf] %vm156_vm6, %v147_v31  ;;  %s3004_s17 = sld [smem:[%s4253_s0 + %s3488_s15]]   ;;  %s3490_s22 = smov 15  }
  0x13   :  { %157 = vst.msk [vmem:[#allocation2 + $0x4] sm:$0xf] %vm156_vm6, %v141_v29  ;;  %s3005_s21 = sld [smem:[%s4253_s0 + %s3489_s18]]   ;;  %s3500_s5 = smov 26  }
  0x14   :  { %v3547_v32 = vld [vmem:[#allocation2 + $0x14] sm:$0xff]  ;;  %193 = vst.msk [vmem:[#allocation2 + $0x24] sm:$0x1] %vm123_vm0, %v183_v30  ;;  %vm347_vm0 = vcmask 326656   ;;  %s3007_s29 = sld [smem:[%s4253_s0 + %s3470_s11]]  }
  0x15   :  { %v479_v34 = vrot.slane %v3547_v32, 2  ;;  %v453_v35 = vrot.slane %v3547_v32, 1  ;;  %v430_v36 = vshrl.u32 %v3547_v32, 16  ;;  %v432_v37 = vshll.u32 %v3547_v32, 16  ;;  %643 = vst.msk [vmem:[#allocation3 + $0x14] sm:$0x1] %vm585_vm1, %v3467_v0 }
  0x16   :  { %v3550_v33 = vld [vmem:[#allocation2 + $0x1c] sm:$0xff]  ;;  %644 = vst.msk [vmem:[#allocation3 + $0x24] sm:$0x2] %vm587_vm2, %v3467_v0 }
  0x17   :  { %v480_v38 = vrot.slane %v3550_v33, 2  ;;  %v454_v39 = vrot.slane %v3550_v33, 1  ;;  %v437_v40 = vshll.u32 %v3550_v33, 16  ;;  %v441_v41 = vshrl.u32 %v3550_v33, 16  ;;  %588 = vst.msk [vmem:[#allocation3 + $0x10] sm:$0x2] %vm587_vm2, %v3467_v0 }
  0x18   :  { %v235_v42 = vld [vmem:[#allocation2 + $0x10] sm:$0x3]  ;;  %v462_v43 = vrot.slane %v430_v36, 1  ;;  %v463_v44 = vrot.slane %v432_v37, 2  ;;  %v434_v63 = vrot.slane %v432_v37, 1  ;;  %vm790_vm2 = vcmask 523264  }
  0x19   :  { %v3560_v45 = vld [vmem:[#allocation2 + $0x8] sm:$0xff]  ;;  %v247_v46 = vunpack.c.l.b16 %v235_v42  ;;  %v481_v47 = vsel %vm302_vm7, %v479_v34, %v480_v38  ;;  %v455_v48 = vsel %vm274_vm8, %v453_v35, %v454_v39  ;;  %v465_v49 = vrot.slane %v441_v41, 1 }
  0x1a   :  { %v466_v50 = vrot.slane %v437_v40, 2  ;;  %v3570_v51 = vld [vmem:[#allocation2] sm:$0xff]  ;;  %484 = vrot.lane.b32.xlu1 %v481_v47, %s3469_s10  ;;  %458 = vrot.lane.b32.xlu0 %v455_v48, %s3470_s11  ;;  %v464_v52 = vor.u32 %v463_v44, %v462_v43  ;;  %v304_v55 = vrot.slane %v3560_v45, 2  ;;  %v258_v59 = vshll.u32 %v3560_v45, 16 }
  0x1b   :  { %v248_v53 = vpack.c.b16 %v247_v46, %v247_v46  ;;  %v251_v56 = vshrl.u32 %v3570_v51, 16  ;;  %v253_v57 = vshll.u32 %v3570_v51, 16  ;;  %v262_v60 = vshrl.u32 %v3560_v45, 16  ;;  %v415_v16 = vld [vmem:[#allocation2 + $0x24] sm:$0x3] }
  0x1c   :  { %v3574_v54 = vor.u32 %v466_v50, %v465_v49  ;;  %v275_v61 = vrot.slane %v3570_v51, 1  ;;  %v276_v2 = vrot.slane %v3560_v45, 1  ;;  %v289_v6 = vrot.slane %v258_v59, 2 }
  0x1d   :  { %v306_v58 = vrot.slane %v248_v53, 2  ;;  %v285_v1 = vrot.slane %v251_v56, 1  ;;  %v286_v4 = vrot.slane %v253_v57, 2  ;;  %v288_v5 = vrot.slane %v262_v60, 1 }
  0x1e   :  { %v468_v62 = vsel %vm284_vm9, %v464_v52, %v3574_v54  ;;  %v277_v7 = vsel %vm274_vm8, %v275_v61, %v276_v2  ;;  %v435_v9 = vor.u32 %v434_v63, %v430_v36  ;;  %v439_v10 = vrot.slane %v437_v40, 1 }
  0x1f   :  { %v307_v3 = vsel %vm302_vm7, %v304_v55, %v306_v58  ;;  %280 = vrot.lane.b32.xlu2 %v277_v7, %s3470_s11  ;;  %v303_v11 = vrot.slane %v3570_v51, 2  ;;  %v287_v12 = vor.u32 %v286_v4, %v285_v1  ;;  %v290_v13 = vor.u32 %v289_v6, %v288_v5 }
  0x20   :  { %v266_v14 = vshll.u32 %v248_v53, 16  ;;  %v292_v15 = vshrl.u32 %v248_v53, 16  ;;  %v440_v17 = vsel %vm249_vm10, %v435_v9, %v439_v10  ;;  %v255_v18 = vrot.slane %v253_v57, 1 }
  0x21   :  { %v305_v19 = vsel %vm302_vm7, %v303_v11, %v304_v55  ;;  %v291_v20 = vsel %vm284_vm9, %v287_v12, %v290_v13  ;;  %v427_v23 = vunpack.c.l.b16 %v415_v16  ;;  %v278_v24 = vrot.slane %v248_v53, 1 }
  0x22   :  { %475 = vrot.lane.b32.xlu1 %v468_v62, %s3471_s12  ;;  %310 = vrot.lane.b32.xlu0 %v307_v3, %s3469_s10  ;;  %v294_v21 = vrot.slane %v292_v15, 1  ;;  %v295_v22 = vrot.slane %v266_v14, 2  ;;  %v256_v26 = vor.u32 %v255_v18, %v251_v56  ;;  %v260_v27 = vrot.slane %v258_v59, 1 }
  0x23   :  { %v428_v28 = vpack.c.b16 %v427_v23, %v427_v23  ;;  %v279_v29 = vsel %vm274_vm8, %v276_v2, %v278_v24  ;;  %v268_v36 = vrot.slane %v266_v14, 1  ;;  %v443_v40 = vor.u32 %v441_v41, %v439_v10 }
  0x24   :  { %v296_v25 = vor.u32 %v295_v22, %v294_v21  ;;  %v261_v31 = vsel %vm249_vm10, %v256_v26, %v260_v27  ;;  %v264_v35 = vor.u32 %v262_v60, %v260_v27 }
  0x25   :  { %v445_v34 = vshll.u32 %v428_v28, 16  ;;  %v469_v37 = vshrl.u32 %v428_v28, 16  ;;  %v456_v43 = vrot.slane %v428_v28, 1  ;;  %v482_v41 = vrot.slane %v428_v28, 2 }
  0x26   :  { %v297_v30 = vsel %vm284_vm9, %v290_v13, %v296_v25  ;;  %v269_v44 = vsel %vm249_vm10, %v264_v35, %v268_v36 }
  0x27   :  { %308 = vrot.lane.b32.xlu2 %v305_v19, %s3469_s10  ;;  %v447_v42 = vrot.slane %v445_v34, 1  ;;  %v471_v46 = vrot.slane %v469_v37, 1  ;;  %v472_v47 = vrot.slane %v445_v34, 2  ;;  %v457_v49 = vsel %vm274_vm8, %v454_v39, %v456_v43  ;;  %v230_v39 = vld [vmem:[%s2992_s16 + $0x10] sm:$0xf] }
  0x28   :  { %v483_v53 = vsel %vm302_vm7, %v480_v38, %v482_v41  ;;  %v341_v55 = vunpack.c.l.b16 %v230_v39  ;;  %v3357_v38 = vld [vmem:[%s2992_s16] sm:$0xff] }
  0x29   :  { %v448_v48 = vsel %vm249_vm10, %v443_v40, %v447_v42  ;;  %v473_v50 = vor.u32 %v472_v47, %v471_v46 }
  0x2a   :  { %449 = vrot.lane.b32.xlu0 %v440_v17, %s3468_s6  ;;  %298 = vrot.lane.b32.xlu1 %v291_v20, %s3471_s12  ;;  %v344_v56 = vpack.c.b16 %v341_v55, %v341_v55 }
  0x2b   :  { %v474_v52 = vsel %vm284_vm9, %v3574_v54, %v473_v50  ;;  %v3358_v54 = vld [vmem:[%s2992_s16 + $0x8] sm:$0xff]  ;;  %s2997_s16 = sld [smem:[%s4253_s0 + %s3480_s13]]   ;;  %s3501_s13 = smov 29  }
  0x2c   :  { %v354_v57 = vsel %vm352_vm11, %v344_v56, 0 }
  0x2d   :  { %513 = vmatpush.bf16.msra.mxu1 %v354_v57  ;;  %3412 = vmatpush.bf16.msra.mxu3 %v354_v57 }
  0x2e   :  { %361 = vmatpush.bf16.msra.mxu0 %v354_v57 }
  0x2f   :  { %282 = vrot.lane.b32.xlu2 %v279_v29, %s3470_s11 }
  0x31   :  { %514 = vmatpush.bf16.msra.mxu1 %v3358_v54  ;;  %3413 = vmatpush.bf16.msra.mxu3 %v3358_v54 }
  0x32   :  { %300 = vrot.lane.b32.xlu1 %v297_v30, %s3471_s12  ;;  %270 = vrot.lane.b32.xlu0 %v261_v31, %s3468_s6 }
  0x33   :  { %362 = vmatpush.bf16.msra.mxu0 %v3358_v54 }
  0x35   :  { %515 = vmatpush.bf16.msra.mxu1 %v3357_v38  ;;  %3414 = vmatpush.bf16.msra.mxu3 %v3357_v38 }
  0x37   :  { %272 = vrot.lane.b32.xlu2 %v269_v44, %s3468_s6  ;;  %363 = vmatpush.bf16.msra.mxu0 %v3357_v38 }
  0x3a   :  { %451 = vrot.lane.b32.xlu0 %v448_v48, %s3468_s6  ;;  %460 = vrot.lane.b32.xlu1 %v457_v49, %s3470_s11  ;;  %s4022_s6 = sld [smem:[%s4253_s0 + %s3486_s3]]  }
  0x3f   :  { %477 = vrot.lane.b32.xlu2 %v474_v52, %s3471_s12 }
  0x42   :  { %486 = vrot.lane.b32.xlu0 %v483_v53, %s3469_s10 }
  0x79   :  { %v281_v58 = vpop.permute.xlu2 %280 }
  0x81   :  { %v309_v59 = vpop.permute.xlu2 %308 }
  0x89   :  { %v283_v62 = vpop.permute.xlu2 %282 }
  0x8c   :  { %v485_v60 = vpop.permute.xlu1 %484  ;;  %v459_v61 = vpop.permute.xlu0 %458 }
  0x91   :  { %v273_v2 = vpop.permute.xlu2 %272 }
  0x92   :  { %v316_v9 = vsel %vm312_vm12, %v3560_v45, %v273_v2 }
  0x93   :  { %v321_v11 = vsel %vm317_vm13, %v316_v9, %v283_v62 }
  0x94   :  { %v476_v63 = vpop.permute.xlu1 %475  ;;  %v311_v1 = vpop.permute.xlu0 %310 }
  0x9c   :  { %v450_v3 = vpop.permute.xlu0 %449  ;;  %v299_v4 = vpop.permute.xlu1 %298 }
  0x9d   :  { %v489_v5 = vsel %vm312_vm12, %v3547_v32, %v450_v3 }
  0x9e   :  { %v493_v6 = vsel %vm317_vm13, %v489_v5, %v459_v61 }
  0x9f   :  { %v497_v7 = vsel %vm322_vm14, %v493_v6, %v476_v63 }
  0xa0   :  { %v501_v10 = vsel %vm327_vm15, %v497_v7, %v485_v60 }
  0xa1   :  { %3051 = vmatmul.msk.bf16.vlgmr.msra.gmra.mxu1 %vm347_vm0, %v501_v10 }
  0xa4   :  { %v301_v12 = vpop.permute.xlu1 %300  ;;  %v271_v13 = vpop.permute.xlu0 %270 }
  0xa5   :  { %v326_v14 = vsel %vm322_vm14, %v321_v11, %v301_v12  ;;  %v314_v32 = vsel %vm312_vm12, %v3570_v51, %v271_v13  ;;  %v478_v51 = vpop.permute.xlu2 %477 }
  0xa6   :  { %v319_v15 = vsel %vm317_vm13, %v314_v32, %v281_v58  ;;  %v331_v16 = vsel %vm327_vm15, %v326_v14, %v311_v1 }
  0xa7   :  { %3042 = vmatmul.msk.bf16.vlgmr.msra.gmra.mxu3 %vm347_vm0, %v331_v16  ;;  %v324_v45 = vsel %vm322_vm14, %v319_v15, %v299_v4 }
  0xa8   :  { %v329_v17 = vsel %vm327_vm15, %v324_v45, %v309_v59 }
  0xa9   :  { %3041 = vmatmul.msk.bf16.vlgmr.msra.gmra.mxu0 %vm347_vm0, %v329_v17 }
  0xac   :  { %v452_v18 = vpop.permute.xlu0 %451  ;;  %v461_v20 = vpop.permute.xlu1 %460 }
  0xad   :  { %v491_v19 = vsel %vm312_vm12, %v3550_v33, %v452_v18 }
  0xae   :  { %v495_v21 = vsel %vm317_vm13, %v491_v19, %v461_v20 }
  0xaf   :  { %v499_v22 = vsel %vm322_vm14, %v495_v21, %v478_v51  ;;  %vm635_vm14 = vcmask 125953  }
  0xb4   :  { %v487_v23 = vpop.permute.xlu0 %486 }
  0xb5   :  { %v503_v24 = vsel %vm327_vm15, %v499_v22, %v487_v23 }
  0xb6   :  { %3052 = vmatmul.msk.bf16.gmra.mxu1 %vm347_vm0, %v503_v24  ;;  %vm637_vm0 = vcmask 125952  }
 0x11e   :  { %v517_v25 = vpop.f32.mrf.mxu1 }
 0x11f   :  { %560 = vst.msk [vmem:[#allocation8 + $0x20] sm:$0xff] %vm317_vm13, %v517_v25  ;;  %v541_v39 = vmul.f32 %v517_v25, %v517_v25  ;;  %v527_v58 = vsel %vm317_vm13, %v517_v25, 0.0 }
 0x121   :  { %v545_v1 = vsel %vm317_vm13, %v541_v39, 0.0 }
 0x126   :  { %v365_v26 = vpop.f32.mrf.mxu0  ;;  %v519_v27 = vpop.f32.mrf.mxu1 }
 0x127   :  { %407 = vst.msk [vmem:[#allocation8] sm:$0xff] %vm317_vm13, %v365_v26  ;;  %v389_v28 = vmul.f32 %v365_v26, %v365_v26  ;;  %v375_v30 = vsel %vm317_vm13, %v365_v26, 0.0  ;;  %v542_v41 = vmul.f32 %v519_v27, %v519_v27  ;;  %v528_v56 = vsel %vm317_vm13, %v519_v27, 0.0 }
 0x128   :  { %561 = vst.msk [vmem:[#allocation8 + $0x28] sm:$0xff] %vm317_vm13, %v519_v27  ;;  %v529_v62 = vadd.f32 %v528_v56, %v527_v58  ;;  %v645_v56 = vld [vmem:[#allocation8 + $0x20] sm:$0xff] }
 0x129   :  { %v393_v37 = vsel %vm317_vm13, %v389_v28, 0.0  ;;  %v546_v59 = vsel %vm317_vm13, %v542_v41, 0.0 }
 0x12a   :  { %v370_v33 = vpop.f32.mrf.mxu3  ;;  %v547_v3 = vadd.f32 %v546_v59, %v545_v1 }
 0x12b   :  { %409 = vst.msk [vmem:[#allocation8 + $0x10] sm:$0xff] %vm317_vm13, %v370_v33  ;;  %v391_v31 = vmul.f32 %v370_v33, %v370_v33  ;;  %v378_v40 = vsel %vm317_vm13, %v370_v33, 0.0 }
 0x12d   :  { %v396_v47 = vsel %vm317_vm13, %v391_v31, 0.0 }
 0x12e   :  { %v367_v29 = vpop.f32.mrf.mxu0 }
 0x12f   :  { %v376_v34 = vsel %vm317_vm13, %v367_v29, 0.0  ;;  %v390_v35 = vmul.f32 %v367_v29, %v367_v29  ;;  %408 = vst.msk [vmem:[#allocation8 + $0x8] sm:$0xff] %vm317_vm13, %v367_v29  ;;  %v646_v0 = vld [vmem:[#allocation8 + $0x28] sm:$0xff] }
 0x130   :  { %v377_v36 = vadd.f32 %v376_v34, %v375_v30 }
 0x131   :  { %v394_v42 = vsel %vm317_vm13, %v390_v35, 0.0 }
 0x132   :  { %v395_v43 = vadd.f32 %v394_v42, %v393_v37  ;;  %v372_v44 = vpop.f32.mrf.mxu3  ;;  %v379_v46 = vadd.f32 %v378_v40, %v377_v36 }
 0x133   :  { %v380_v48 = vsel %vm317_vm13, %v372_v44, 0.0  ;;  %v392_v49 = vmul.f32 %v372_v44, %v372_v44  ;;  %410 = vst.msk [vmem:[#allocation8 + $0x18] sm:$0xff] %vm317_vm13, %v372_v44  ;;  %v522_v50 = vpop.f32.mrf.mxu1 }
 0x134   :  { %v381_v52 = vadd.f32 %v380_v48, %v379_v46  ;;  %v397_v53 = vadd.f32 %v396_v47, %v395_v43  ;;  %562 = vst.msk [vmem:[#allocation8 + $0x30] sm:$0xff] %vm317_vm13, %v522_v50  ;;  %v543_v38 = vmul.f32 %v522_v50, %v522_v50  ;;  %v530_v61 = vsel %vm317_vm13, %v522_v50, 0.0 }
 0x135   :  { %v398_v55 = vsel %vm317_vm13, %v392_v49, 0.0  ;;  %v531_v5 = vadd.f32 %v530_v61, %v529_v62  ;;  %v569_v49 = vld [vmem:[%s2993_s20] sm:$0x1]  ;;  %s3483_s20 = smov 10  }
 0x136   :  { %v382_v57 = vrot.slane %v381_v52, 4  ;;  %v399_v54 = vadd.f32 %v398_v55, %v397_v53  ;;  %v548_v2 = vsel %vm317_vm13, %v543_v38, 0.0  ;;  %v582_v53 = vld [vmem:[%s2994_s24] sm:$0x1]  ;;  %v591_v38 = vld [vmem:[#allocation8 + $0x10] sm:$0xff]  ;;  %v590_v58 = vld [vmem:[#allocation8 + $0x8] sm:$0xff]  ;;  %s3931_s23 = sld [smem:[%s4253_s0 + %s3483_s20]]  }
 0x137   :  { %v549_v11 = vadd.f32 %v548_v2, %v547_v3  ;;  %s3484_s24 = smov 11  }
 0x138   :  { %v400_v60 = vrot.slane %v399_v54, 4  ;;  %v383_v63 = vadd.f32 %v382_v57, %v381_v52  ;;  %v589_v57 = vld [vmem:[#allocation8] sm:$0xff]  ;;  %s3002_s28 = sld [smem:[%s4253_s0 + %s3484_s24]]   ;;  %s3497_s24 = smov 27  }
 0x13a   :  { %v401_v4 = vadd.f32 %v400_v60, %v399_v54  ;;  %v384_v10 = vrot.slane %v383_v63, 2  ;;  %v592_v59 = vld [vmem:[#allocation8 + $0x18] sm:$0xff] }
 0x13b   :  { %v524_v6 = vpop.f32.mrf.mxu1  ;;  %v647_v61 = vld [vmem:[#allocation8 + $0x30] sm:$0xff] }
 0x13c   :  { %v532_v7 = vsel %vm317_vm13, %v524_v6, 0.0  ;;  %v544_v9 = vmul.f32 %v524_v6, %v524_v6  ;;  %563 = vst.msk [vmem:[#allocation8 + $0x38] sm:$0xff] %vm317_vm13, %v524_v6  ;;  %v402_v14 = vrot.slane %v401_v4, 2  ;;  %v385_v16 = vadd.f32 %v384_v10, %v383_v63 }
 0x13d   :  { %v533_v12 = vadd.f32 %v532_v7, %v531_v5 }
 0x13e   :  { %v550_v13 = vsel %vm317_vm13, %v544_v9, 0.0  ;;  %v403_v18 = vadd.f32 %v402_v14, %v401_v4  ;;  %v386_v21 = vrot.slane %v385_v16, 1 }
 0x13f   :  { %v534_v32 = vrot.slane %v533_v12, 4  ;;  %v551_v15 = vadd.f32 %v550_v13, %v549_v11 }
 0x140   :  { %v404_v23 = vrot.slane %v403_v18, 1  ;;  %v387_v26 = vadd.f32 %v386_v21, %v385_v16 }
 0x141   :  { %v535_v45 = vadd.f32 %v534_v32, %v533_v12  ;;  %v552_v17 = vrot.slane %v551_v15, 4 }
 0x142   :  { %v405_v28 = vadd.f32 %v404_v23, %v403_v18 }
 0x143   :  { %v536_v19 = vrot.slane %v535_v45, 2  ;;  %v553_v20 = vadd.f32 %v552_v17, %v551_v15  ;;  %v648_v3 = vld [vmem:[#allocation8 + $0x38] sm:$0xff] }
 0x145   :  { %v537_v51 = vadd.f32 %v536_v19, %v535_v45  ;;  %v554_v22 = vrot.slane %v553_v20, 2 }
 0x147   :  { %v538_v24 = vrot.slane %v537_v51, 1  ;;  %v555_v25 = vadd.f32 %v554_v22, %v553_v20 }
 0x149   :  { %v539_v27 = vadd.f32 %v538_v24, %v537_v51  ;;  %v556_v33 = vrot.slane %v555_v25, 1 }
 0x14b   :  { %v540_v29 = vadd.f32 %v539_v27, %v387_v26  ;;  %v557_v30 = vadd.f32 %v556_v33, %v555_v25 }
 0x14d   :  { %v558_v31 = vadd.f32 %v557_v30, %v405_v28  ;;  %v564_v34 = vmul.f32 0.015625, %v540_v29 }
 0x14f   :  { %v565_v35 = vmul.f32 0.015625, %v558_v31  ;;  %v566_v36 = vmul.f32 %v564_v34, %v564_v34 }
 0x151   :  { %v567_v37 = vsub.f32 %v565_v35, %v566_v36 }
 0x153   :  { %v568_v40 = vmax.f32 %v567_v37, 0.0 }
 0x155   :  { %v570_v42 = vadd.f32 1e-05, %v568_v40 }
 0x157   :  { %3455 = vrsqrt.f32 %v570_v42  ;;  %vm577_vm4 = vweird.f32 %v570_v42 }
 0x15d   :  { %v3456_v43 = vpop.eup %3455 }
 0x15e   :  { %v572_v44 = vmul.f32 %v3456_v43, %v570_v42  ;;  %vm578_vm3 = vweird.f32 %v3456_v43 }
 0x15f   :  { %vm579_vm6 = vmor %vm577_vm4, %vm578_vm3  ;;  %vm825_vm3 = vcmask 654336  }
 0x160   :  { %v573_v46 = vmul.f32 %v3456_v43, %v572_v44 }
 0x162   :  { %v574_v47 = vmul.f32 0.5, %v573_v46 }
 0x164   :  { %v575_v48 = vsub.f32 1.5, %v574_v47 }
 0x166   :  { %v576_v50 = vmul.f32 %v3456_v43, %v575_v48 }
 0x168   :  { %v580_v41 = vsel %vm579_vm6, %v3456_v43, %v576_v50 }
 0x169   :  { %v581_v52 = vmul.f32 %v580_v41, %v569_v49 }
 0x16b   :  { %v583_v39 = vmul.f32 %v581_v52, %v564_v34  ;;  %v594_v55 = vperm.slane %v581_v52, 0 }
 0x16d   :  { %v584_v54 = vsub.f32 %v582_v53, %v583_v39  ;;  %v596_v60 = vmul.f32 %v594_v55, %v589_v57  ;;  %v597_v62 = vmul.f32 %v594_v55, %v590_v58  ;;  %v598_v63 = vmul.f32 %v594_v55, %v591_v38 }
 0x16e   :  { %v599_v1 = vmul.f32 %v594_v55, %v592_v59  ;;  %v649_v4 = vmul.f32 %v645_v56, %v594_v55  ;;  %v650_v5 = vmul.f32 %v646_v0, %v594_v55  ;;  %v651_v6 = vmul.f32 %v647_v61, %v594_v55 }
 0x16f   :  { %v601_v2 = vperm.slane %v584_v54, 0  ;;  %v652_v7 = vmul.f32 %v648_v3, %v594_v55 }
 0x171   :  { %v603_v9 = vadd.f32 %v601_v2, %v596_v60  ;;  %v604_v10 = vadd.f32 %v601_v2, %v597_v62  ;;  %v605_v11 = vadd.f32 %v601_v2, %v598_v63  ;;  %v606_v12 = vadd.f32 %v601_v2, %v599_v1 }
 0x172   :  { %v653_v13 = vadd.f32 %v649_v4, %v601_v2  ;;  %v654_v14 = vadd.f32 %v650_v5, %v601_v2  ;;  %v655_v32 = vadd.f32 %v651_v6, %v601_v2  ;;  %v656_v15 = vadd.f32 %v652_v7, %v601_v2 }
 0x173   :  { %v607_v16 = vmax.f32 %v603_v9, 0.0  ;;  %v608_v45 = vmax.f32 %v604_v10, 0.0  ;;  %v609_v17 = vmax.f32 %v605_v11, 0.0  ;;  %v610_v18 = vmax.f32 %v606_v12, 0.0 }
 0x174   :  { %v657_v19 = vmax.f32 %v653_v13, 0.0  ;;  %v658_v20 = vmax.f32 %v654_v14, 0.0  ;;  %v659_v21 = vmax.f32 %v655_v32, 0.0  ;;  %v660_v51 = vmax.f32 %v656_v15, 0.0 }
 0x175   :  { %v611_v22 = vpack.c.bf16 %v607_v16, %v607_v16  ;;  %v612_v23 = vpack.c.bf16 %v608_v45, %v608_v45  ;;  %v613_v24 = vpack.c.bf16 %v609_v17, %v609_v17  ;;  %v614_v25 = vpack.c.bf16 %v610_v18, %v610_v18 }
 0x176   :  { %v661_v26 = vpack.c.bf16 %v657_v19, %v657_v19  ;;  %v662_v27 = vpack.c.bf16 %v658_v20, %v658_v20  ;;  %v663_v33 = vpack.c.bf16 %v659_v21, %v659_v21  ;;  %v664_v28 = vpack.c.bf16 %v660_v51, %v660_v51 }
 0x177   :  { %v619_v29 = vrot.slane %v611_v22, 7  ;;  %v621_v30 = vrot.slane %v612_v23, 7  ;;  %v624_v31 = vrot.slane %v613_v24, 7  ;;  %v627_v34 = vrot.slane %v614_v25, 7 }
 0x178   :  { %v669_v35 = vrot.slane %v661_v26, 7  ;;  %v671_v36 = vrot.slane %v662_v27, 7  ;;  %v674_v37 = vrot.slane %v663_v33, 7  ;;  %v677_v40 = vrot.slane %v664_v28, 7 }
 0x179   :  { %v620_v42 = vrot.slane %v619_v29, 4  ;;  %v623_v43 = vrot.slane %v621_v30, 4  ;;  %636 = vst.msk [vmem:[#allocation3] sm:$0xe] %vm635_vm14, %v619_v29  ;;  %v629_v44 = vrot.slane %v627_v34, 4  ;;  %v626_v50 = vrot.slane %v624_v31, 4 }
 0x17a   :  { %v670_v46 = vrot.slane %v669_v35, 4  ;;  %v673_v47 = vrot.slane %v671_v36, 4  ;;  %v676_v48 = vrot.slane %v674_v37, 4  ;;  %v679_v49 = vrot.slane %v677_v40, 4  ;;  %685 = vst.msk [vmem:[#allocation3 + $0x14] sm:$0xe] %vm635_vm14, %v669_v35 }
 0x17b   :  { %641 = vst.msk [vmem:[#allocation3 + $0x10] sm:$0x1] %vm585_vm1, %v629_v44  ;;  %v622_v39 = vsel %vm3522_vm5, %v620_v42, %v621_v30  ;;  %v625_v55 = vsel %vm3522_vm5, %v623_v43, %v624_v31  ;;  %v628_v56 = vsel %vm3522_vm5, %v626_v50, %v627_v34  ;;  %vm1728_vm14 = vcmask 253952  }
 0x17c   :  { %v678_v41 = vsel %vm3522_vm5, %v676_v48, %v677_v40  ;;  %689 = vst.msk [vmem:[#allocation3 + $0x24] sm:$0x1] %vm585_vm1, %v679_v49  ;;  %v672_v52 = vsel %vm3522_vm5, %v670_v46, %v671_v36  ;;  %v675_v53 = vsel %vm3522_vm5, %v673_v47, %v674_v37  ;;  %vm785_vm5 = vcmask 392192  }
 0x17d   :  { %688 = vst.msk [vmem:[#allocation3 + $0x20] sm:$0xf] %vm637_vm0, %v678_v41 }
 0x17e   :  { %686 = vst.msk [vmem:[#allocation3 + $0x18] sm:$0xf] %vm637_vm0, %v672_v52 }
 0x17f   :  { %687 = vst.msk [vmem:[#allocation3 + $0x1c] sm:$0xf] %vm637_vm0, %v675_v53 }
 0x180   :  { %638 = vst.msk [vmem:[#allocation3 + $0x4] sm:$0xf] %vm637_vm0, %v622_v39 }
 0x181   :  { %639 = vst.msk [vmem:[#allocation3 + $0x8] sm:$0xf] %vm637_vm0, %v625_v55 }
 0x182   :  { %640 = vst.msk [vmem:[#allocation3 + $0xc] sm:$0xf] %vm637_vm0, %v628_v56  ;;  %v704_v28 = vld [vmem:[#allocation3 + $0x10] sm:$0x3] }
 0x183   :  { %v889_v15 = vld [vmem:[#allocation3 + $0x24] sm:$0x3]  ;;  %v716_v31 = vunpack.c.l.b16 %v704_v28 }
 0x184   :  { %v901_v21 = vunpack.c.l.b16 %v889_v15 }
 0x185   :  { %v3706_v57 = vld [vmem:[#allocation3 + $0x14] sm:$0xff]  ;;  %v717_v42 = vpack.c.b16 %v716_v31, %v716_v31 }
 0x186   :  { %v3708_v54 = vld [vmem:[#allocation3 + $0x1c] sm:$0xff]  ;;  %v953_v38 = vrot.slane %v3706_v57, 2  ;;  %v927_v58 = vrot.slane %v3706_v57, 1  ;;  %v906_v60 = vshll.u32 %v3706_v57, 16  ;;  %v904_v61 = vshrl.u32 %v3706_v57, 16 }
 0x187   :  { %v3712_v59 = vld [vmem:[#allocation3] sm:$0xff]  ;;  %v954_v8 = vrot.slane %v3708_v54, 2  ;;  %v928_v0 = vrot.slane %v3708_v54, 1  ;;  %v911_v2 = vshll.u32 %v3708_v54, 16  ;;  %v915_v3 = vshrl.u32 %v3708_v54, 16 }
 0x188   :  { %v742_v63 = vrot.slane %v3712_v59, 1  ;;  %v908_v1 = vrot.slane %v906_v60, 1  ;;  %v768_v7 = vrot.slane %v3712_v59, 2  ;;  %v936_v11 = vrot.slane %v904_v61, 1 }
 0x189   :  { %v3718_v62 = vld [vmem:[#allocation3 + $0x8] sm:$0xff]  ;;  %v955_v4 = vsel %vm302_vm7, %v953_v38, %v954_v8  ;;  %v929_v5 = vsel %vm274_vm8, %v927_v58, %v928_v0  ;;  %v937_v12 = vrot.slane %v906_v60, 2  ;;  %v939_v14 = vrot.slane %v915_v3, 1 }
 0x18a   :  { %958 = vrot.lane.b32.xlu2 %v955_v4, %s3475_s25  ;;  %932 = vrot.lane.b32.xlu1 %v929_v5, %s3469_s10  ;;  %v743_v6 = vrot.slane %v3718_v62, 1  ;;  %v909_v9 = vor.u32 %v908_v1, %v904_v61  ;;  %v769_v10 = vrot.slane %v3718_v62, 2  ;;  %v940_v32 = vrot.slane %v911_v2, 2 }
 0x18b   :  { %v719_v16 = vshrl.u32 %v3712_v59, 16  ;;  %v721_v45 = vshll.u32 %v3712_v59, 16  ;;  %v726_v17 = vshll.u32 %v3718_v62, 16  ;;  %v730_v18 = vshrl.u32 %v3718_v62, 16 }
 0x18c   :  { %v744_v13 = vsel %vm274_vm8, %v742_v63, %v743_v6  ;;  %v913_v19 = vrot.slane %v911_v2, 1  ;;  %v938_v20 = vor.u32 %v937_v12, %v936_v11  ;;  %v770_v22 = vsel %vm302_vm7, %v768_v7, %v769_v10  ;;  %v3367_v11 = vld [vmem:[%s2995_s30 + $0x20] sm:$0xff]  ;;  %v3366_v12 = vld [vmem:[%s2995_s30 + $0x18] sm:$0xff] }
 0x18d   :  { %747 = vrot.lane.b32.xlu0 %v744_v13, %s3469_s10  ;;  %v941_v23 = vor.u32 %v940_v32, %v939_v14  ;;  %v751_v24 = vrot.slane %v719_v16, 1  ;;  %v752_v25 = vrot.slane %v721_v45, 2  ;;  %v754_v26 = vrot.slane %v730_v18, 1  ;;  %985 = vmatpush.bf16.msrb.mxu3 %v3367_v11  ;;  %v3364_v13 = vld [vmem:[%s2995_s30 + $0x8] sm:$0xff]  ;;  %v3363_v14 = vld [vmem:[%s2995_s30] sm:$0xff] }
 0x18e   :  { %v914_v51 = vsel %vm249_vm10, %v909_v9, %v913_v19  ;;  %v755_v27 = vrot.slane %v726_v17, 2  ;;  %v723_v33 = vrot.slane %v721_v45, 1  ;;  %v902_v30 = vpack.c.b16 %v901_v21, %v901_v21  ;;  %833 = vmatpush.bf16.msra.mxu2 %v3367_v11 }
 0x18f   :  { %v942_v29 = vsel %vm284_vm9, %v938_v20, %v941_v23  ;;  %v753_v34 = vor.u32 %v752_v25, %v751_v24  ;;  %v728_v37 = vrot.slane %v726_v17, 1  ;;  %v734_v48 = vshll.u32 %v717_v42, 16  ;;  %v3372_v20 = vld [vmem:[#allocation2] sm:$0xf0] }
 0x190   :  { %v756_v35 = vor.u32 %v755_v27, %v754_v26  ;;  %v724_v36 = vor.u32 %v723_v33, %v719_v16  ;;  %v930_v40 = vrot.slane %v902_v30, 1  ;;  %v919_v46 = vshll.u32 %v902_v30, 16 }
 0x191   :  { %v745_v49 = vrot.slane %v717_v42, 1  ;;  %v917_v50 = vor.u32 %v915_v3, %v913_v19  ;;  %v943_v52 = vshrl.u32 %v902_v30, 16  ;;  %v758_v53 = vshrl.u32 %v717_v42, 16  ;;  %986 = vmatpush.bf16.msrb.mxu3 %v3366_v12  ;;  %v3095_v19 = vld [vmem:[#allocation2] sm:$0xe] }
 0x192   :  { %923 = vrot.lane.b32.xlu2 %v914_v51, %s3470_s11  ;;  %773 = vrot.lane.b32.xlu1 %v770_v22, %s3475_s25  ;;  %v757_v43 = vsel %vm284_vm9, %v753_v34, %v756_v35  ;;  %v729_v44 = vsel %vm249_vm10, %v724_v36, %v728_v37  ;;  %v931_v47 = vsel %vm274_vm8, %v928_v0, %v930_v40  ;;  %v921_v41 = vrot.slane %v919_v46, 1  ;;  %v1064_v40 = vld [vmem:[#allocation2 + $0x10] sm:$0x1] }
 0x193   :  { %v732_v39 = vor.u32 %v730_v18, %v728_v37  ;;  %v736_v55 = vrot.slane %v734_v48, 1  ;;  %v746_v56 = vsel %vm274_vm8, %v743_v6, %v745_v49  ;;  %v946_v38 = vrot.slane %v919_v46, 2  ;;  %834 = vmatpush.bf16.msra.mxu2 %v3366_v12  ;;  %v1058_v18 = vld [vmem:[%s2998_s4] sm:$0xf]  ;;  %s3493_s4 = smov 20  }
 0x194   :  { %v922_v58 = vsel %vm249_vm10, %v917_v50, %v921_v41  ;;  %v945_v60 = vrot.slane %v943_v52, 1  ;;  %v760_v61 = vrot.slane %v758_v53, 1  ;;  %v761_v63 = vrot.slane %v734_v48, 2  ;;  %s3011_s7 = sld [smem:[%s4253_s0 + %s3493_s4]]  }
 0x195   :  { %949 = vrot.lane.b32.xlu0 %v942_v29, %s3476_s26  ;;  %v737_v0 = vsel %vm249_vm10, %v732_v39, %v736_v55  ;;  %v771_v3 = vrot.slane %v717_v42, 2  ;;  %v956_v7 = vrot.slane %v902_v30, 2  ;;  %v1093_v22 = vsel %vm352_vm11, %v1058_v18, 0 }
 0x196   :  { %v947_v1 = vor.u32 %v946_v38, %v945_v60  ;;  %v762_v2 = vor.u32 %v761_v63, %v760_v61  ;;  %v3096_v24 = vor.u32 %v3372_v20, %v3095_v19  ;;  %1102 = vmatpush.bf16.msrb.mxu0 %v1093_v22  ;;  %v3129_v60 = vld [vmem:[#allocation2 + $0x14] sm:$0xe]  ;;  %v3374_v61 = vld [vmem:[#allocation2 + $0x14] sm:$0xf0] }
 0x197   :  { %v772_v6 = vsel %vm302_vm7, %v769_v10, %v771_v3  ;;  %v957_v9 = vsel %vm302_vm7, %v954_v8, %v956_v7  ;;  %v3365_v10 = vld [vmem:[%s2995_s30 + $0x10] sm:$0xff]  ;;  %v3130_v63 = vor.u32 %v3374_v61, %v3129_v60  ;;  %v1350_v3 = vld [vmem:[#allocation2 + $0x24] sm:$0x1]  ;;  %s3492_s30 = smov 19  }
 0x198   :  { %v948_v4 = vsel %vm284_vm9, %v941_v23, %v947_v1  ;;  %v763_v5 = vsel %vm284_vm9, %v756_v35, %v762_v2  ;;  %987 = vmatpush.bf16.msrb.mxu3 %v3365_v10  ;;  %835 = vmatpush.bf16.msra.mxu2 %v3365_v10  ;;  %v3373_v23 = vld [vmem:[#allocation2 + $0x8] sm:$0xff]  ;;  %v1081_v27 = vrot.slane %v3096_v24, 1  ;;  %s4116_s3 = sld [smem:[%s4253_s0 + %s3492_s30]]  }
 0x199   :  { %v1082_v33 = vrot.slane %v3373_v23, 1 }
 0x19a   :  { %764 = vrot.lane.b32.xlu2 %v757_v43, %s3476_s26  ;;  %738 = vrot.lane.b32.xlu1 %v729_v44, %s3470_s11  ;;  %v1077_v43 = vunpack.c.l.b16 %v1064_v40 }
 0x19c   :  { %988 = vmatpush.bf16.msrb.mxu3 %v3364_v13  ;;  %836 = vmatpush.bf16.msra.mxu2 %v3364_v13 }
 0x19d   :  { %934 = vrot.lane.b32.xlu0 %v931_v47, %s3469_s10  ;;  %v1080_v47 = vpack.c.b16 %v1077_v43, %v1077_v43 }
 0x1a0   :  { %989 = vmatpush.bf16.msrb.mxu3 %v3363_v14  ;;  %837 = vmatpush.bf16.msra.mxu2 %v3363_v14 }
 0x1a2   :  { %749 = vrot.lane.b32.xlu2 %v746_v56, %s3469_s10  ;;  %925 = vrot.lane.b32.xlu1 %v922_v58, %s3470_s11 }
 0x1a4   :  { %1382 = vmatpush.bf16.msra.mxu3 %v1093_v22 }
 0x1a5   :  { %740 = vrot.lane.b32.xlu0 %v737_v0, %s3470_s11  ;;  %v1364_v0 = vrot.slane %v3130_v63, 1 }
 0x1aa   :  { %951 = vrot.lane.b32.xlu2 %v948_v4, %s3476_s26  ;;  %766 = vrot.lane.b32.xlu1 %v763_v5, %s3476_s26  ;;  %v1360_v4 = vunpack.c.l.b16 %v1350_v3 }
 0x1ac   :  { %v1363_v5 = vpack.c.b16 %v1360_v4, %v1360_v4 }
 0x1ad   :  { %775 = vrot.lane.b32.xlu0 %v772_v6, %s3475_s25 }
 0x1ae   :  { %v1367_v6 = vrot.slane %v1363_v5, 1 }
 0x1b2   :  { %960 = vrot.lane.b32.xlu1 %v957_v9, %s3475_s25 }
 0x1e4   :  { %v959_v8 = vpop.permute.xlu2 %958 }
 0x1ec   :  { %v924_v16 = vpop.permute.xlu2 %923 }
 0x1ed   :  { %v963_v17 = vsel %vm317_vm13, %v3706_v57, %v924_v16  ;;  %v1083_v57 = vsel %vm274_vm8, %v1081_v27, %v1082_v33 }
 0x1ee   :  { %3101 = vmatmul.msk.bf16.vlgmr.msrb.gmra.mxu0 %vm312_vm12, %v1083_v57 }
 0x1f4   :  { %v765_v30 = vpop.permute.xlu2 %764 }
 0x1fc   :  { %v933_v32 = vpop.permute.xlu1 %932  ;;  %v750_v44 = vpop.permute.xlu2 %749 }
 0x1fd   :  { %v967_v21 = vsel %vm327_vm15, %v963_v17, %v933_v32 }
 0x1ff   :  { %v748_v15 = vpop.permute.xlu0 %747 }
 0x204   :  { %v774_v45 = vpop.permute.xlu1 %773 }
 0x207   :  { %v950_v51 = vpop.permute.xlu0 %949 }
 0x208   :  { %v971_v25 = vsel %vm785_vm5, %v967_v21, %v950_v51 }
 0x209   :  { %v975_v26 = vsel %vm790_vm2, %v971_v25, %v959_v8 }
 0x20a   :  { %3091 = vmatmul.msk.bf16.vlgmr.msrb.gmra.mxu3 %vm825_vm3, %v975_v26 }
 0x20c   :  { %v739_v28 = vpop.permute.xlu1 %738 }
 0x20d   :  { %v778_v29 = vsel %vm317_vm13, %v3712_v59, %v739_v28  ;;  %v1084_v59 = vrot.slane %v1080_v47, 1 }
 0x20e   :  { %v782_v31 = vsel %vm327_vm15, %v778_v29, %v748_v15 }
 0x20f   :  { %v935_v34 = vpop.permute.xlu0 %934  ;;  %v787_v35 = vsel %vm785_vm5, %v782_v31, %v765_v30  ;;  %v1085_v41 = vsel %vm274_vm8, %v1082_v33, %v1084_v59 }
 0x210   :  { %v792_v36 = vsel %vm790_vm2, %v787_v35, %v774_v45  ;;  %3102 = vmatmul.msk.bf16.gmra.mxu0 %vm312_vm12, %v1085_v41 }
 0x211   :  { %3081 = vmatmul.msk.bf16.vlgmr.msra.gmra.mxu2 %vm825_vm3, %v792_v36 }
 0x214   :  { %v926_v37 = vpop.permute.xlu1 %925 }
 0x215   :  { %v965_v52 = vsel %vm317_vm13, %v3708_v54, %v926_v37  ;;  %v3375_v54 = vld [vmem:[#allocation2 + $0x1c] sm:$0xff] }
 0x216   :  { %v969_v55 = vsel %vm327_vm15, %v965_v52, %v935_v34  ;;  %v1365_v1 = vrot.slane %v3375_v54, 1 }
 0x217   :  { %v741_v42 = vpop.permute.xlu0 %740 }
 0x218   :  { %v780_v46 = vsel %vm317_vm13, %v3718_v62, %v741_v42  ;;  %v952_v62 = vpop.permute.xlu2 %951  ;;  %v1366_v2 = vsel %vm274_vm8, %v1364_v0, %v1365_v1  ;;  %v1368_v7 = vsel %vm274_vm8, %v1365_v1, %v1367_v6 }
 0x219   :  { %v784_v48 = vsel %vm327_vm15, %v780_v46, %v750_v44  ;;  %v973_v38 = vsel %vm785_vm5, %v969_v55, %v952_v62 }
 0x21c   :  { %v767_v49 = vpop.permute.xlu1 %766 }
 0x21d   :  { %v789_v50 = vsel %vm785_vm5, %v784_v48, %v767_v49 }
 0x21f   :  { %v776_v53 = vpop.permute.xlu0 %775 }
 0x220   :  { %v794_v39 = vsel %vm790_vm2, %v789_v50, %v776_v53 }
 0x221   :  { %3082 = vmatmul.msk.bf16.gmra.mxu2 %vm825_vm3, %v794_v39 }
 0x224   :  { %v961_v56 = vpop.permute.xlu1 %960 }
 0x225   :  { %v977_v58 = vsel %vm790_vm2, %v973_v38, %v961_v56 }
 0x226   :  { %3092 = vmatmul.msk.bf16.gmra.mxu3 %vm825_vm3, %v977_v58 }
 0x236   :  { %3135 = vmatmul.msk.bf16.vlgmr.msra.gmra.mxu3 %vm312_vm12, %v1366_v2 }
 0x246   :  { %3136 = vmatmul.msk.bf16.gmra.mxu3 %vm312_vm12, %v1368_v7 }
 0x28d   :  { %v991_v9 = vpop.f32.mrf.mxu3 }
 0x28e   :  { %1033 = vst.msk [vmem:[#allocation8 + $0x20] sm:$0xff] %vm317_vm13, %v991_v9  ;;  %v1015_v21 = vmul.f32 %v991_v9, %v991_v9  ;;  %v1001_v33 = vsel %vm317_vm13, %v991_v9, 0.0 }
 0x290   :  { %v1019_v37 = vsel %vm317_vm13, %v1015_v21, 0.0 }
 0x294   :  { %v839_v11 = vpop.f32.mrf.mxu2 }
 0x295   :  { %v993_v12 = vpop.f32.mrf.mxu3  ;;  %881 = vst.msk [vmem:[#allocation8] sm:$0xff] %vm317_vm13, %v839_v11  ;;  %v863_v8 = vmul.f32 %v839_v11, %v839_v11  ;;  %v849_v16 = vsel %vm317_vm13, %v839_v11, 0.0 }
 0x296   :  { %1034 = vst.msk [vmem:[#allocation8 + $0x28] sm:$0xff] %vm317_vm13, %v993_v12  ;;  %v1016_v19 = vmul.f32 %v993_v12, %v993_v12  ;;  %v1002_v23 = vsel %vm317_vm13, %v993_v12, 0.0 }
 0x297   :  { %v867_v51 = vsel %vm317_vm13, %v863_v8, 0.0  ;;  %v1003_v35 = vadd.f32 %v1002_v23, %v1001_v33  ;;  %v1042_v33 = vld [vmem:[%s2996_s8] sm:$0x1]  ;;  %s3494_s8 = smov 21  }
 0x298   :  { %v1020_v29 = vsel %vm317_vm13, %v1016_v19, 0.0  ;;  %s4163_s15 = sld [smem:[%s4253_s0 + %s3494_s8]]  }
 0x299   :  { %v1021_v44 = vadd.f32 %v1020_v29, %v1019_v37  ;;  %s3017_s8 = sld [smem:[%s4253_s0 + %s3500_s5]]  }
 0x29c   :  { %v841_v10 = vpop.f32.mrf.mxu2 }
 0x29d   :  { %882 = vst.msk [vmem:[#allocation8 + $0x8] sm:$0xff] %vm317_vm13, %v841_v10  ;;  %v864_v14 = vmul.f32 %v841_v10, %v841_v10  ;;  %v850_v32 = vsel %vm317_vm13, %v841_v10, 0.0 }
 0x29e   :  { %v851_v20 = vadd.f32 %v850_v32, %v849_v16 }
 0x29f   :  { %v868_v45 = vsel %vm317_vm13, %v864_v14, 0.0 }
 0x2a0   :  { %v869_v24 = vadd.f32 %v868_v45, %v867_v51 }
 0x2a4   :  { %v844_v13 = vpop.f32.mrf.mxu2 }
 0x2a5   :  { %883 = vst.msk [vmem:[#allocation8 + $0x10] sm:$0xff] %vm317_vm13, %v844_v13  ;;  %v865_v15 = vmul.f32 %v844_v13, %v844_v13  ;;  %v852_v17 = vsel %vm317_vm13, %v844_v13, 0.0 }
 0x2a6   :  { %v853_v25 = vadd.f32 %v852_v17, %v851_v20  ;;  %v1104_v17 = vpop.f32.mrf.mxu0 }
 0x2a7   :  { %v870_v22 = vsel %vm317_vm13, %v865_v15, 0.0 }
 0x2a8   :  { %v871_v30 = vadd.f32 %v870_v22, %v869_v24 }
 0x2a9   :  { %v996_v18 = vpop.f32.mrf.mxu3 }
 0x2aa   :  { %1035 = vst.msk [vmem:[#allocation8 + $0x30] sm:$0xff] %vm317_vm13, %v996_v18  ;;  %v1017_v26 = vmul.f32 %v996_v18, %v996_v18  ;;  %v1004_v31 = vsel %vm317_vm13, %v996_v18, 0.0 }
 0x2ab   :  { %v1005_v46 = vadd.f32 %v1004_v31, %v1003_v35  ;;  %v1055_v31 = vld [vmem:[%s2997_s16] sm:$0x1] }
 0x2ac   :  { %v846_v27 = vpop.f32.mrf.mxu2  ;;  %v1022_v40 = vsel %vm317_vm13, %v1017_v26, 0.0 }
 0x2ad   :  { %v854_v57 = vsel %vm317_vm13, %v846_v27, 0.0  ;;  %v866_v28 = vmul.f32 %v846_v27, %v846_v27  ;;  %884 = vst.msk [vmem:[#allocation8 + $0x18] sm:$0xff] %vm317_vm13, %v846_v27  ;;  %v1023_v41 = vadd.f32 %v1022_v40, %v1021_v44  ;;  %v1115_v44 = vld [vmem:[#allocation8 + $0x8] sm:$0xff] }
 0x2ae   :  { %v855_v34 = vadd.f32 %v854_v57, %v853_v25  ;;  %v1106_v21 = vpop.f32.mrf.mxu0 }
 0x2af   :  { %v872_v36 = vsel %vm317_vm13, %v866_v28, 0.0 }
 0x2b0   :  { %v856_v42 = vrot.slane %v855_v34, 4  ;;  %v873_v43 = vadd.f32 %v872_v36, %v871_v30  ;;  %v3450_v30 = vld [vmem:[%s3520_s9] ss:$0 sm:$0xff]  ;;  %s3481_s9 = smov 9  }
 0x2b1   :  { %v998_v47 = vpop.f32.mrf.mxu3  ;;  %v1105_v40 = vadd.f32 %v3450_v30, %v1104_v17  ;;  %s3897_s19 = sld [smem:[%s4253_s0 + %s3481_s9]]  }
 0x2b2   :  { %v857_v59 = vadd.f32 %v856_v42, %v855_v34  ;;  %v874_v48 = vrot.slane %v873_v43, 4  ;;  %v1006_v49 = vsel %vm317_vm13, %v998_v47, 0.0  ;;  %v1018_v50 = vmul.f32 %v998_v47, %v998_v47  ;;  %1036 = vst.msk [vmem:[#allocation8 + $0x38] sm:$0xff] %vm317_vm13, %v998_v47  ;;  %v1114_v42 = vld [vmem:[#allocation8] sm:$0xff]  ;;  %s4192_s9 = sld [smem:[%s4253_s0 + %s3471_s12]]  }
 0x2b3   :  { %v1007_v52 = vadd.f32 %v1006_v49, %v1005_v46  ;;  %v1116_v46 = vld [vmem:[#allocation8 + $0x10] sm:$0xff] }
 0x2b4   :  { %v858_v53 = vrot.slane %v857_v59, 2  ;;  %v875_v39 = vadd.f32 %v874_v48, %v873_v43  ;;  %v1024_v55 = vsel %vm317_vm13, %v1018_v50, 0.0  ;;  %v1107_v43 = vadd.f32 %v3450_v30, %v1106_v21 }
 0x2b5   :  { %v1008_v62 = vrot.slane %v1007_v52, 4  ;;  %v1025_v56 = vadd.f32 %v1024_v55, %v1023_v41 }
 0x2b6   :  { %v876_v38 = vrot.slane %v875_v39, 2  ;;  %v859_v58 = vadd.f32 %v858_v53, %v857_v59  ;;  %v1109_v27 = vpop.f32.mrf.mxu0  ;;  %v1396_v53 = vld [vmem:[#allocation8 + $0x30] sm:$0xff] }
 0x2b7   :  { %v1009_v60 = vadd.f32 %v1008_v62, %v1007_v52  ;;  %v1026_v61 = vrot.slane %v1025_v56, 4  ;;  %v1117_v52 = vld [vmem:[#allocation8 + $0x18] sm:$0xff] }
 0x2b8   :  { %v877_v54 = vadd.f32 %v876_v38, %v875_v39  ;;  %v860_v1 = vrot.slane %v859_v58, 1 }
 0x2b9   :  { %v1010_v63 = vrot.slane %v1009_v60, 2  ;;  %v1027_v0 = vadd.f32 %v1026_v61, %v1025_v56  ;;  %v3833_v16 = vpop.f32.mrf.mxu3  ;;  %v1397_v39 = vld [vmem:[#allocation8 + $0x38] sm:$0xff]  ;;  %v1110_v61 = vadd.f32 %v3450_v30, %v1109_v27 }
 0x2ba   :  { %v878_v4 = vrot.slane %v877_v54, 1  ;;  %v861_v7 = vadd.f32 %v860_v1, %v859_v58 }
 0x2bb   :  { %v1011_v2 = vadd.f32 %v1010_v63, %v1009_v60  ;;  %v1028_v3 = vrot.slane %v1027_v0, 2 }
 0x2bc   :  { %v879_v12 = vadd.f32 %v878_v4, %v877_v54 }
 0x2bd   :  { %v1012_v5 = vrot.slane %v1011_v2, 1  ;;  %v1029_v6 = vadd.f32 %v1028_v3, %v1027_v0 }
 0x2be   :  { %v1111_v41 = vpop.f32.mrf.mxu0 }
 0x2bf   :  { %v1013_v9 = vadd.f32 %v1012_v5, %v1011_v2  ;;  %v1030_v11 = vrot.slane %v1029_v6, 1  ;;  %v1112_v63 = vadd.f32 %v3450_v30, %v1111_v41 }
 0x2c1   :  { %v1014_v10 = vadd.f32 %v1013_v9, %v861_v7  ;;  %v1031_v13 = vadd.f32 %v1030_v11, %v1029_v6  ;;  %v3835_v20 = vpop.f32.mrf.mxu3 }
 0x2c3   :  { %v1032_v14 = vadd.f32 %v1031_v13, %v879_v12  ;;  %v1037_v8 = vmul.f32 0.015625, %v1014_v10  ;;  %v1394_v10 = vld [vmem:[#allocation8 + $0x20] sm:$0xff] }
 0x2c5   :  { %v1038_v32 = vmul.f32 0.015625, %v1032_v14  ;;  %v1039_v15 = vmul.f32 %v1037_v8, %v1037_v8 }
 0x2c7   :  { %v1040_v45 = vsub.f32 %v1038_v32, %v1039_v15 }
 0x2c9   :  { %v1041_v18 = vmax.f32 %v1040_v45, 0.0  ;;  %v1389_v25 = vpop.f32.mrf.mxu3 }
 0x2ca   :  { %v1390_v47 = vadd.f32 %v3450_v30, %v1389_v25 }
 0x2cb   :  { %v1043_v19 = vadd.f32 1e-05, %v1041_v18  ;;  %v1395_v18 = vld [vmem:[#allocation8 + $0x28] sm:$0xff] }
 0x2cd   :  { %3457 = vrsqrt.f32 %v1043_v19  ;;  %vm1050_vm12 = vweird.f32 %v1043_v19 }
 0x2d1   :  { %v1391_v37 = vpop.f32.mrf.mxu3 }
 0x2d2   :  { %v1392_v56 = vadd.f32 %v3450_v30, %v1391_v37 }
 0x2d3   :  { %v3458_v51 = vpop.eup %3457 }
 0x2d4   :  { %v1045_v22 = vmul.f32 %v3458_v51, %v1043_v19  ;;  %vm1051_vm11 = vweird.f32 %v3458_v51 }
 0x2d5   :  { %vm1052_vm4 = vmor %vm1050_vm12, %vm1051_vm11  ;;  %vm1308_vm12 = vsmask.f32 7950 }
 0x2d6   :  { %v1046_v23 = vmul.f32 %v3458_v51, %v1045_v22 }
 0x2d8   :  { %v1047_v24 = vmul.f32 0.5, %v1046_v23 }
 0x2da   :  { %v1048_v26 = vsub.f32 1.5, %v1047_v24 }
 0x2dc   :  { %v1049_v57 = vmul.f32 %v3458_v51, %v1048_v26 }
 0x2de   :  { %v1053_v28 = vsel %vm1052_vm4, %v3458_v51, %v1049_v57  ;;  %v1385_v57 = vadd.f32 %v3450_v30, %v3833_v16 }
 0x2df   :  { %v1054_v29 = vmul.f32 %v1053_v28, %v1042_v33 }
 0x2e1   :  { %v1056_v34 = vmul.f32 %v1054_v29, %v1037_v8  ;;  %v1119_v35 = vperm.slane %v1054_v29, 0 }
 0x2e3   :  { %v1057_v36 = vsub.f32 %v1055_v31, %v1056_v34  ;;  %v1121_v48 = vmul.f32 %v1119_v35, %v1114_v42  ;;  %v1122_v49 = vmul.f32 %v1119_v35, %v1115_v44  ;;  %v1123_v50 = vmul.f32 %v1119_v35, %v1116_v46 }
 0x2e4   :  { %v1124_v55 = vmul.f32 %v1119_v35, %v1117_v52  ;;  %v1400_v62 = vmul.f32 %v1396_v53, %v1119_v35  ;;  %v1401_v38 = vmul.f32 %v1397_v39, %v1119_v35  ;;  %v1398_v14 = vmul.f32 %v1394_v10, %v1119_v35 }
 0x2e5   :  { %v1126_v59 = vperm.slane %v1057_v36, 0  ;;  %v1399_v21 = vmul.f32 %v1395_v18, %v1119_v35  ;;  %v1387_v31 = vadd.f32 %v3450_v30, %v3835_v20 }
 0x2e7   :  { %v1128_v58 = vadd.f32 %v1126_v59, %v1121_v48  ;;  %v1129_v60 = vadd.f32 %v1126_v59, %v1122_v49  ;;  %v1130_v54 = vadd.f32 %v1126_v59, %v1123_v50  ;;  %v1131_v0 = vadd.f32 %v1126_v59, %v1124_v55 }
 0x2e8   :  { %v1404_v1 = vadd.f32 %v1400_v62, %v1126_v59  ;;  %v1405_v2 = vadd.f32 %v1401_v38, %v1126_v59  ;;  %v1402_v24 = vadd.f32 %v1398_v14, %v1126_v59  ;;  %v1403_v26 = vadd.f32 %v1399_v21, %v1126_v59 }
 0x2e9   :  { %v1132_v3 = vadd.f32 %v1128_v58, %v1105_v40  ;;  %v1133_v4 = vadd.f32 %v1129_v60, %v1107_v43  ;;  %v1134_v5 = vadd.f32 %v1130_v54, %v1110_v61  ;;  %v1135_v6 = vadd.f32 %v1131_v0, %v1112_v63 }
 0x2ea   :  { %v1408_v7 = vadd.f32 %v1404_v1, %v1390_v47  ;;  %v1409_v9 = vadd.f32 %v1405_v2, %v1392_v56  ;;  %v1406_v36 = vadd.f32 %v1402_v24, %v1385_v57  ;;  %v1407_v40 = vadd.f32 %v1403_v26, %v1387_v31 }
 0x2eb   :  { %v1136_v11 = vmax.f32 %v1132_v3, 0.0  ;;  %v1137_v12 = vmax.f32 %v1133_v4, 0.0  ;;  %v1138_v13 = vmax.f32 %v1134_v5, 0.0  ;;  %v1139_v8 = vmax.f32 %v1135_v6, 0.0 }
 0x2ec   :  { %v1412_v32 = vmax.f32 %v1408_v7, 0.0  ;;  %v1413_v19 = vmax.f32 %v1409_v9, 0.0  ;;  %v1410_v48 = vmax.f32 %v1406_v36, 0.0  ;;  %v1411_v49 = vmax.f32 %v1407_v40, 0.0 }
 0x2ed   :  { %v1140_v15 = vpack.c.bf16 %v1136_v11, %v1136_v11  ;;  %v1141_v45 = vpack.c.bf16 %v1137_v12, %v1137_v12  ;;  %v1142_v17 = vpack.c.bf16 %v1138_v13, %v1138_v13  ;;  %v1143_v51 = vpack.c.bf16 %v1139_v8, %v1139_v8 }
 0x2ee   :  { %v1416_v28 = vpack.c.bf16 %v1412_v32, %v1412_v32  ;;  %v1417_v29 = vpack.c.bf16 %v1413_v19, %v1413_v19  ;;  %v1414_v55 = vpack.c.bf16 %v1410_v48, %v1410_v48  ;;  %v1415_v62 = vpack.c.bf16 %v1411_v49, %v1411_v49 }
 0x2ef   :  { %v1148_v22 = vunpack.c.l.b16 %v1140_v15  ;;  %v1149_v23 = vunpack.c.l.b16 %v1141_v45  ;;  %v1150_v25 = vunpack.c.l.b16 %v1142_v17  ;;  %v1151_v27 = vunpack.c.l.b16 %v1143_v51 }
 0x2f0   :  { %v1424_v46 = vunpack.c.l.b16 %v1416_v28  ;;  %v1425_v16 = vunpack.c.l.b16 %v1417_v29  ;;  %v1422_v63 = vunpack.c.l.b16 %v1414_v55  ;;  %v1423_v0 = vunpack.c.l.b16 %v1415_v62 }
 0x2f1   :  { %v3844_v33 = vpack.c.b16 %v1149_v23, %v1148_v22  ;;  %v3848_v34 = vpack.c.b16 %v1151_v27, %v1150_v25  ;;  %v1215_v57 = vlaneseq }
 0x2f2   :  { %v3861_v41 = vpack.c.b16 %v1425_v16, %v1424_v46  ;;  %v3870_v5 = vpack.c.b16 %v1423_v0, %v1422_v63 }
 0x2f3   :  { %v1173_v35 = vrot.slane %v3844_v33, 1  ;;  %v1157_v37 = vshll.u32 %v3844_v33, 16  ;;  %v1192_v42 = vrot.slane %v3848_v34, 2  ;;  %v1174_v43 = vrot.slane %v3848_v34, 1 }
 0x2f4   :  { %v1162_v44 = vshll.u32 %v3848_v34, 16  ;;  %v1166_v47 = vshrl.u32 %v3848_v34, 16  ;;  %v1155_v30 = vshrl.u32 %v3844_v33, 16  ;;  %v1436_v54 = vshll.u32 %v3861_v41, 16 }
 0x2f5   :  { %v1159_v59 = vrot.slane %v1157_v37, 1  ;;  %1196 = vrot.lane.b32.xlu2 %v1192_v42, %s3475_s25  ;;  %1178 = vrot.lane.b32.xlu0 %v1174_v43, %s3469_s10  ;;  %v1175_v20 = vsel %vm274_vm8, %v1173_v35, %v1174_v43  ;;  %v1181_v61 = vrot.slane %v1157_v37, 2  ;;  %v1191_v2 = vrot.slane %v3844_v33, 2  ;;  %v3346_v43 = vld [vmem:[%s3897_s19 + $0x20] sm:$0xff] }
 0x2f6   :  { %1176 = vrot.lane.b32.xlu1 %v1175_v20, %s3469_s10  ;;  %v1164_v50 = vrot.slane %v1162_v44, 1  ;;  %v1183_v53 = vrot.slane %v1166_v47, 1  ;;  %v1184_v39 = vrot.slane %v1162_v44, 2  ;;  %v1180_v38 = vrot.slane %v1155_v30, 1  ;;  %1290 = vmatpush.bf16.msrb.mxu2 %v3346_v43 }
 0x2f7   :  { %v1160_v52 = vor.u32 %v1159_v59, %v1155_v30  ;;  %v1438_v3 = vrot.slane %v1436_v54, 1  ;;  %v1440_v4 = vshrl.u32 %v3861_v41, 16  ;;  %v1193_v7 = vsel %vm302_vm7, %v1191_v2, %v1192_v42  ;;  %v3345_v59 = vld [vmem:[%s3897_s19 + $0x18] sm:$0xff] }
 0x2f8   :  { %v1168_v56 = vor.u32 %v1166_v47, %v1164_v50  ;;  %v1185_v60 = vor.u32 %v1184_v39, %v1183_v53  ;;  %v1182_v1 = vor.u32 %v1181_v61, %v1180_v38  ;;  %v1458_v12 = vrot.slane %v1436_v54, 2 }
 0x2f9   :  { %v1165_v58 = vsel %vm249_vm10, %v1160_v52, %v1164_v50  ;;  %v1442_v9 = vor.u32 %v1440_v4, %v1438_v3  ;;  %v1457_v11 = vrot.slane %v1440_v4, 1  ;;  %v1431_v10 = vshll.u32 %v3870_v5, 16 }
 0x2fa   :  { %v1186_v6 = vsel %vm284_vm9, %v1182_v1, %v1185_v60  ;;  %v1429_v13 = vshrl.u32 %v3870_v5, 16  ;;  %v1448_v14 = vrot.slane %v3861_v41, 1  ;;  %v1466_v32 = vrot.slane %v3861_v41, 2  ;;  %1291 = vmatpush.bf16.msrb.mxu2 %v3345_v59 }
 0x2fb   :  { %v1459_v8 = vor.u32 %v1458_v12, %v1457_v11  ;;  %v1433_v15 = vrot.slane %v1431_v10, 1  ;;  %v1455_v17 = vrot.slane %v1431_v10, 2  ;;  %v1447_v19 = vrot.slane %v3870_v5, 1  ;;  %v3344_v12 = vld [vmem:[%s3897_s19 + $0x10] sm:$0xff]  ;;  %v3342_v10 = vld [vmem:[%s3897_s19] sm:$0xff] }
 0x2fc   :  { %v1454_v45 = vrot.slane %v1429_v13, 1  ;;  %v1465_v24 = vrot.slane %v3870_v5, 2  ;;  %v1216_v28 = vshrl.u32 %v1215_v57, 7  ;;  %v1219_v37 = vand.u32 127, %v1215_v57 }
 0x2fd   :  { %1171 = vrot.lane.b32.xlu2 %v1168_v56, %s3470_s11  ;;  %1169 = vrot.lane.b32.xlu0 %v1165_v58, %s3470_s11  ;;  %v1434_v18 = vor.u32 %v1433_v15, %v1429_v13  ;;  %v1449_v22 = vsel %vm274_vm8, %v1447_v19, %v1448_v14  ;;  %v3482_v52 = vmov 0.0  }
 0x2fe   :  { %1189 = vrot.lane.b32.xlu1 %v1185_v60, %s3476_s26  ;;  %v1456_v21 = vor.u32 %v1455_v17, %v1454_v45  ;;  %v1467_v25 = vsel %vm302_vm7, %v1465_v24, %v1466_v32  ;;  %v1217_v36 = vadd.s32 8, %v1216_v28  ;;  %v1220_v40 = vmul.u32 2, %v1216_v28  ;;  %1292 = vmatpush.bf16.msrb.mxu2 %v3344_v12  ;;  %v1304_v17 = vld [vmem:[#allocation4] sm:$0x1]  ;;  %v2626_v24 = vld [vmem:[#allocation7 + $0x4] sm:$0x1] }
 0x2ff   :  { %v1439_v51 = vsel %vm249_vm10, %v1434_v18, %v1438_v3  ;;  %vm1229_vm10 = vcmask 228352  }
 0x300   :  { %v1460_v23 = vsel %vm284_vm9, %v1456_v21, %v1459_v8  ;;  %v1221_v42 = vmul.u32 2, %v1217_v36  ;;  %vm1222_vm8 = vcmp.eq.s32.totalorder %v1219_v37, %v1220_v40  ;;  %v1730_v21 = vld [vmem:[#allocation5] sm:$0x1]  ;;  %v1735_v36 = vld [vmem:[#allocation5 + $0x4] sm:$0x8] }
 0x301   :  { %v3910_v53 = vsel %vm1222_vm8, 1.0, %v3482_v52  ;;  %v2398_v40 = vld [vmem:[#allocation6 + $0x4] sm:$0x8] }
 0x302   :  { %vm1223_vm9 = vcmp.eq.s32.totalorder %v1219_v37, %v1221_v42  ;;  %v2243_v37 = vld [vmem:[#allocation6] sm:$0x8] }
 0x303   :  { %v3104_v39 = vsel %vm1223_vm9, 1.0, %v3482_v52  ;;  %vm1733_vm9 = vcmask 257027  }
 0x304   :  { %v1228_v38 = vpack.c.bf16 %v3104_v39, %v3910_v53 }
 0x305   :  { %1187 = vrot.lane.b32.xlu2 %v1186_v6, %s3476_s26  ;;  %1194 = vrot.lane.b32.xlu0 %v1193_v7, %s3475_s25 }
 0x306   :  { %1445 = vrot.lane.b32.xlu1 %v1442_v9, %s3470_s11 }
 0x30d   :  { %1452 = vrot.lane.b32.xlu2 %v1448_v14, %s3469_s10  ;;  %1463 = vrot.lane.b32.xlu0 %v1459_v8, %s3476_s26 }
 0x30e   :  { %1470 = vrot.lane.b32.xlu1 %v1466_v32, %s3475_s25 }
 0x315   :  { %1443 = vrot.lane.b32.xlu2 %v1439_v51, %s3470_s11  ;;  %1450 = vrot.lane.b32.xlu0 %v1449_v22, %s3469_s10  ;;  %v1782_v51 = vld [vmem:[#allocation5 + $0x8] sm:$0x1] }
 0x316   :  { %1461 = vrot.lane.b32.xlu1 %v1460_v23, %s3476_s26  ;;  %v2593_v23 = vld [vmem:[#allocation7] sm:$0x1]  ;;  %s3006_s26 = sld [smem:[%s4253_s0 + %s3490_s22]]  }
 0x31d   :  { %1468 = vrot.lane.b32.xlu2 %v1467_v25, %s3475_s25 }
 0x34f   :  { %v1197_v26 = vpop.permute.xlu2 %1196 }
 0x357   :  { %v1172_v27 = vpop.permute.xlu2 %1171 }
 0x358   :  { %v1201_v44 = vsel %vm317_vm13, %v3848_v34, %v1172_v27  ;;  %v1310_v27 = vld [vmem:[#allocation4 + $0x4] sm:$0x8] }
 0x35f   :  { %v1188_v35 = vpop.permute.xlu2 %1187 }
 0x367   :  { %v1179_v29 = vpop.permute.xlu0 %1178  ;;  %v1453_v34 = vpop.permute.xlu2 %1452 }
 0x368   :  { %v1177_v31 = vpop.permute.xlu1 %1176  ;;  %v1205_v16 = vsel %vm327_vm15, %v1201_v44, %v1179_v29  ;;  %v2598_v44 = vld [vmem:[#allocation7] sm:$0x8] }
 0x36f   :  { %v1170_v46 = vpop.permute.xlu0 %1169  ;;  %v1444_v60 = vpop.permute.xlu2 %1443 }
 0x370   :  { %v1190_v47 = vpop.permute.xlu1 %1189  ;;  %v1199_v20 = vsel %vm317_vm13, %v3844_v33, %v1170_v46  ;;  %v2629_v46 = vld [vmem:[#allocation7 + $0x4] sm:$0x8] }
 0x371   :  { %v1209_v30 = vsel %vm785_vm5, %v1205_v16, %v1190_v47  ;;  %v1203_v50 = vsel %vm327_vm15, %v1199_v20, %v1177_v31 }
 0x372   :  { %v1214_v48 = vsel %vm790_vm2, %v1209_v30, %v1197_v26  ;;  %v1207_v33 = vsel %vm785_vm5, %v1203_v50, %v1188_v35  ;;  %v1785_v35 = vld [vmem:[#allocation5 + $0xc] sm:$0x8]  ;;  %v1527_v50 = vld [vmem:[#allocation4 + $0xc] sm:$0x8] }
 0x373   :  { %v1234_v49 = vsel %vm302_vm7, %v1214_v48, 0 }
 0x374   :  { %1242 = vmatpush.bf16.msrb.mxu1 %v1234_v49  ;;  %v3451_v49 = vld [vmem:[%s3931_s23] ss:$0 sm:$0xff] }
 0x377   :  { %v1195_v55 = vpop.permute.xlu0 %1194  ;;  %v1469_v7 = vpop.permute.xlu2 %1468 }
 0x378   :  { %v1446_v62 = vpop.permute.xlu1 %1445  ;;  %v1211_v56 = vsel %vm790_vm2, %v1207_v33, %v1195_v55 }
 0x379   :  { %1243 = vmatpush.bf16.msrb.mxu1 %v1211_v56  ;;  %v1475_v58 = vsel %vm317_vm13, %v3861_v41, %v1446_v62  ;;  %v1473_v41 = vsel %vm317_vm13, %v3870_v5, %v1444_v60  ;;  %v3343_v5 = vld [vmem:[%s3897_s19 + $0x8] sm:$0xff] }
 0x37a   :  { %v1479_v61 = vsel %vm327_vm15, %v1475_v58, %v1453_v34  ;;  %1293 = vmatpush.bf16.msrb.mxu2 %v3343_v5 }
 0x37c   :  { %3105 = vmatmul.msk.bf16.vlgmr.msrb.gmra.mxu1 %vm1229_vm10, %v1228_v38 }
 0x37e   :  { %1294 = vmatpush.bf16.msrb.mxu2 %v3342_v10 }
 0x37f   :  { %v1464_v54 = vpop.permute.xlu0 %1463 }
 0x380   :  { %v1483_v63 = vsel %vm785_vm5, %v1479_v61, %v1464_v54  ;;  %v1471_v0 = vpop.permute.xlu1 %1470 }
 0x381   :  { %v1488_v1 = vsel %vm790_vm2, %v1483_v63, %v1471_v0 }
 0x382   :  { %v1489_v2 = vsel %vm302_vm7, %v1488_v1, 0  ;;  %1512 = vmatpush.bf16.msra.mxu2 %v3346_v43  ;;  %vm1302_vm7 = vsmask.f32 256 }
 0x383   :  { %1497 = vmatpush.bf16.msra.mxu1 %v1489_v2  ;;  %vm3940_vm6 = vmand %vm585_vm1, %vm1302_vm7  ;;  %vm1307_vm1 = vcmask 125955  }
 0x384   :  { %v1305_v19 = vsel %vm3940_vm6, 0, %v1304_v17  ;;  %vm3947_vm11 = vmand %vm1728_vm14, %vm1302_vm7  ;;  %vm1341_vm14 = vsmask.f32 3328 }
 0x385   :  { %1306 = vst [vmem:[#allocation4] sm:$0x1] %v1305_v19  ;;  %v1731_v25 = vsel %vm3947_vm11, 0, %v1730_v21  ;;  %v1783_v26 = vsel %vm3947_vm11, 0, %v1782_v51  ;;  %vm3957_vm8 = vmand %vm1307_vm1, %vm1308_vm12 }
 0x386   :  { %1513 = vmatpush.bf16.msra.mxu2 %v3345_v59  ;;  %1732 = vst [vmem:[#allocation5] sm:$0x1] %v1731_v25  ;;  %v1311_v31 = vsel %vm3957_vm8, 0, %v1310_v27  ;;  %vm2242_vm1 = vmand %vm1733_vm9, %vm1341_vm14  ;;  %v1524_v59 = vld [vmem:[#allocation4 + $0x8] sm:$0x1]  ;;  %v1528_v34 = vsel %vm3957_vm8, 0, %v1527_v50 }
 0x387   :  { %v1451_v3 = vpop.permute.xlu0 %1450  ;;  %1784 = vst [vmem:[#allocation5 + $0x8] sm:$0x1] %v1783_v26  ;;  %v2244_v16 = vsel %vm2242_vm1, 0, %v2243_v37  ;;  %v2399_v47 = vsel %vm2242_vm1, 0, %v2398_v40  ;;  %v1525_v48 = vsel %vm3940_vm6, 0, %v1524_v59  ;;  %v3378_v59 = vld [vmem:[%s3002_s28 + $0x10] sm:$0xff] }
 0x388   :  { %v1477_v4 = vsel %vm327_vm15, %v1473_v41, %v1451_v3  ;;  %v1462_v6 = vpop.permute.xlu1 %1461  ;;  %1312 = vst [vmem:[#allocation4 + $0x4] sm:$0x8] %v1311_v31  ;;  %vm1315_vm6 = vsmask.f32 4368  ;;  %1610 = vmatpush.bf16.msra.mxu0 %v3378_v59  ;;  %vm1772_vm1 = vcmask 257024  }
 0x389   :  { %v1481_v9 = vsel %vm785_vm5, %v1477_v4, %v1462_v6  ;;  %2245 = vst [vmem:[#allocation6] sm:$0x8] %v2244_v16  ;;  %vm3980_vm8 = vmor %vm1302_vm7, %vm1315_vm6 }
 0x38a   :  { %v1485_v11 = vsel %vm790_vm2, %v1481_v9, %v1469_v7  ;;  %1514 = vmatpush.bf16.msra.mxu2 %v3344_v12  ;;  %2400 = vst [vmem:[#allocation6 + $0x4] sm:$0x8] %v2399_v47 }
 0x38b   :  { %1498 = vmatpush.bf16.msra.mxu1 %v1485_v11  ;;  %1526 = vst [vmem:[#allocation4 + $0x8] sm:$0x1] %v1525_v48  ;;  %v4010_v48 = vld [vmem:[%s3008_s2] sm:$0xff] }
 0x38c   :  { %1529 = vst [vmem:[#allocation4 + $0xc] sm:$0x8] %v1528_v34  ;;  %v1338_v58 = vld [vmem:[#allocation4] sm:$0xf] }
 0x38e   :  { %3137 = vmatmul.msk.bf16.vlgmr.msra.gmra.mxu1 %vm1229_vm10, %v1228_v38  ;;  %1515 = vmatpush.bf16.msra.mxu2 %v3343_v5  ;;  %vm2596_vm10 = vcmask 519171  }
 0x38f   :  { %v1343_v9 = vld [vmem:[#allocation4 + $0x4] sm:$0xf]  ;;  %1674 = vmatpush.bf16.msrb.mxu1 %v3378_v59 }
 0x392   :  { %1516 = vmatpush.bf16.msra.mxu2 %v3342_v10 }
 0x3f9   :  { %v1245_v13 = vpop.f32.mrf.mxu1 }
 0x401   :  { %v1247_v14 = vpop.f32.mrf.mxu1 }
 0x402   :  { %v1250_v8 = vpack.c.bf16 %v1247_v14, %v1245_v13 }
 0x404   :  { %3126 = vmatmul.msk.bf16.vlgmr.msrb.gmra.mxu2 %vm825_vm3, %v1250_v8 }
 0x40b   :  { %v1500_v32 = vpop.f32.mrf.mxu1 }
 0x413   :  { %v1502_v15 = vpop.f32.mrf.mxu1 }
 0x414   :  { %v1505_v45 = vpack.c.bf16 %v1502_v15, %v1500_v32  ;;  %v1550_v15 = vld [vmem:[#allocation4 + $0x8] sm:$0xf] }
 0x416   :  { %3138 = vmatmul.msk.bf16.vlgmr.msra.gmra.mxu2 %vm825_vm3, %v1505_v45  ;;  %vm2591_vm3 = vcmask 516096  }
 0x417   :  { %vm2592_vm4 = vmand %vm2591_vm3, %vm1302_vm7 }
 0x418   :  { %v2594_v57 = vsel %vm2592_vm4, 0, %v2593_v23  ;;  %v2627_v28 = vsel %vm2592_vm4, 0, %v2626_v24  ;;  %vm1734_vm3 = vmand %vm1733_vm9, %vm1308_vm12  ;;  %vm1336_vm12 = vsmask.f32 7938 }
 0x419   :  { %2595 = vst [vmem:[#allocation7] sm:$0x1] %v2594_v57  ;;  %v1736_v42 = vsel %vm1734_vm3, 0, %v1735_v36  ;;  %v1786_v43 = vsel %vm1734_vm3, 0, %v1785_v35  ;;  %vm2597_vm4 = vmand %vm2596_vm10, %vm1341_vm14  ;;  %v1553_v35 = vld [vmem:[#allocation4 + $0xc] sm:$0xf] }
 0x41a   :  { %2628 = vst [vmem:[#allocation7 + $0x4] sm:$0x1] %v2627_v28  ;;  %v2599_v20 = vsel %vm2597_vm4, 0, %v2598_v44  ;;  %v2630_v30 = vsel %vm2597_vm4, 0, %v2629_v46  ;;  %vm3973_vm9 = vmand %vm637_vm0, %vm1336_vm12 }
 0x41b   :  { %1737 = vst [vmem:[#allocation5 + $0x4] sm:$0x8] %v1736_v42  ;;  %vm3986_vm10 = vmand %vm637_vm0, %vm1341_vm14  ;;  %vm1620_vm0 = vcmask 259072  }
 0x41c   :  { %1787 = vst [vmem:[#allocation5 + $0xc] sm:$0x8] %v1786_v43  ;;  %vm4045_vm4 = vmand %vm1772_vm1, %vm1336_vm12 }
 0x41d   :  { %2600 = vst [vmem:[#allocation7] sm:$0x8] %v2599_v20  ;;  %v3377_v20 = vld [vmem:[%s3002_s28 + $0x8] sm:$0xff] }
 0x41e   :  { %2631 = vst [vmem:[#allocation7 + $0x4] sm:$0x8] %v2630_v30  ;;  %1611 = vmatpush.bf16.msra.mxu0 %v3377_v20  ;;  %v3376_v30 = vld [vmem:[%s3002_s28] sm:$0xff]  ;;  %1675 = vmatpush.bf16.msrb.mxu1 %v3377_v20  ;;  %s3018_s28 = sld [smem:[%s4253_s0 + %s3497_s24]]  }
 0x422   :  { %1612 = vmatpush.bf16.msra.mxu0 %v3376_v30  ;;  %1676 = vmatpush.bf16.msrb.mxu1 %v3376_v30 }
 0x426   :  { %2054 = vmatpush.bf16.msrb.mxu0 %v4010_v48 }
 0x487   :  { %v1296_v52 = vpop.f32.mrf.mxu2 }
 0x488   :  { %v1297_v39 = vadd.f32 %v3451_v49, %v1296_v52 }
 0x48a   :  { %v1313_v55 = vpack.c.bf16 %v1297_v39, %v1297_v39 }
 0x48c   :  { %v1318_v33 = vshrl.u32 %v1313_v55, 16  ;;  %v1321_v56 = vshll.u32 %v1313_v55, 16 }
 0x48e   :  { %v1320_v62 = vrot.slane %v1318_v33, 7 }
 0x48f   :  { %v1298_v60 = vpop.f32.mrf.mxu2 }
 0x490   :  { %v1323_v61 = vor.u32 %v1321_v56, %v1320_v62  ;;  %v1299_v54 = vadd.f32 %v3451_v49, %v1298_v60  ;;  %v1324_v4 = vrot.slane %v1320_v62, 4 }
 0x492   :  { %v1339_v63 = vsel %vm3973_vm9, %v1323_v61, %v1338_v58  ;;  %v1314_v0 = vpack.c.bf16 %v1299_v54, %v1299_v54 }
 0x493   :  { %1340 = vst [vmem:[#allocation4] sm:$0xf] %v1339_v63 }
 0x494   :  { %v1326_v1 = vshrl.u32 %v1314_v0, 16  ;;  %v1329_v41 = vshll.u32 %v1314_v0, 16 }
 0x496   :  { %v1328_v2 = vrot.slane %v1326_v1, 7 }
 0x498   :  { %v1331_v6 = vor.u32 %v1329_v41, %v1328_v2 }
 0x499   :  { %v1518_v11 = vpop.f32.mrf.mxu2 }
 0x49a   :  { %v1332_v12 = vsel %vm3980_vm8, %v1324_v4, %v1331_v6  ;;  %v1519_v5 = vadd.f32 %v3451_v49, %v1518_v11 }
 0x49b   :  { %v1344_v10 = vsel %vm3986_vm10, %v1332_v12, %v1343_v9 }
 0x49c   :  { %1345 = vst [vmem:[#allocation4 + $0x4] sm:$0xf] %v1344_v10  ;;  %v1530_v13 = vpack.c.bf16 %v1519_v5, %v1519_v5 }
 0x49e   :  { %v1533_v14 = vshrl.u32 %v1530_v13, 16  ;;  %v1536_v32 = vshll.u32 %v1530_v13, 16 }
 0x4a0   :  { %v1535_v8 = vrot.slane %v1533_v14, 7 }
 0x4a1   :  { %v1520_v45 = vpop.f32.mrf.mxu2 }
 0x4a2   :  { %v1538_v17 = vor.u32 %v1536_v32, %v1535_v8  ;;  %v1521_v18 = vadd.f32 %v3451_v49, %v1520_v45  ;;  %v1539_v31 = vrot.slane %v1535_v8, 4 }
 0x4a3   :  { %v3379_v19 = vld [vmem:[#allocation4] sm:$0xff] }
 0x4a4   :  { %v1551_v21 = vsel %vm3973_vm9, %v1538_v17, %v1550_v15  ;;  %v1531_v51 = vpack.c.bf16 %v1521_v18, %v1521_v18  ;;  %v1578_v23 = vrot.slane %v3379_v19, 1  ;;  %v1572_v24 = vshll.u32 %v3379_v19, 16  ;;  %v3390_v39 = vld [vmem:[#allocation4] sm:$0xff]  ;;  %vm4051_vm9 = vmand %vm1772_vm1, %vm1341_vm14 }
 0x4a5   :  { %1552 = vst [vmem:[#allocation4 + $0x8] sm:$0xf] %v1551_v21  ;;  %v1570_v26 = vshrl.u32 %v3379_v19, 16  ;;  %v2034_v55 = vshll.u32 %v3390_v39, 16  ;;  %v2032_v62 = vshrl.u32 %v3390_v39, 16  ;;  %vm1893_vm14 = vcmask 785408  }
 0x4a6   :  { %v1541_v25 = vshrl.u32 %v1531_v51, 16  ;;  %1579 = vrot.lane.b32.xlu2 %v1578_v23, %s3469_s10  ;;  %v1574_v27 = vrot.slane %v1572_v24, 1  ;;  %v1544_v28 = vshll.u32 %v1531_v51, 16 }
 0x4a7   :  { %v2036_v33 = vrot.slane %v2034_v55, 1 }
 0x4a8   :  { %v1543_v57 = vrot.slane %v1541_v25, 7  ;;  %v1575_v29 = vor.u32 %v1574_v27, %v1570_v26 }
 0x4a9   :  { %v2037_v56 = vor.u32 %v2036_v33, %v2032_v62 }
 0x4aa   :  { %v1546_v36 = vor.u32 %v1544_v28, %v1543_v57  ;;  %1576 = vrot.lane.b32.xlu0 %v1575_v29, %s3470_s11 }
 0x4ac   :  { %v1547_v37 = vsel %vm3980_vm8, %v1539_v31, %v1546_v36 }
 0x4ad   :  { %v1554_v40 = vsel %vm3986_vm10, %v1547_v37, %v1553_v35  ;;  %vm2113_vm10 = vcmask 1044480  }
 0x4ae   :  { %1555 = vst [vmem:[#allocation4 + $0xc] sm:$0xf] %v1554_v40 }
 0x4b5   :  { %v3380_v42 = vld [vmem:[#allocation4 + $0x8] sm:$0xff] }
 0x4b6   :  { %v1660_v43 = vrot.slane %v3380_v42, 1  ;;  %v1654_v44 = vshll.u32 %v3380_v42, 16  ;;  %v1652_v46 = vshrl.u32 %v3380_v42, 16 }
 0x4b8   :  { %1661 = vrot.lane.b32.xlu0 %v1660_v43, %s3469_s10  ;;  %v1656_v16 = vrot.slane %v1654_v44, 1 }
 0x4ba   :  { %v1657_v47 = vor.u32 %v1656_v16, %v1652_v46 }
 0x4bc   :  { %1658 = vrot.lane.b32.xlu1 %v1657_v47, %s3470_s11  ;;  %s3491_s11 = smov 96  }
 0x500   :  { %v1580_v50 = vpop.permute.xlu2 %1579 }
 0x51c   :  { %v1577_v49 = vpop.permute.xlu0 %1576 }
 0x51d   :  { %v1582_v34 = vsel %vm317_vm13, %v3379_v19, %v1577_v49 }
 0x51e   :  { %v1584_v52 = vsel %vm327_vm15, %v1582_v34, %v1580_v50 }
 0x51f   :  { %3155 = vmatmul.msk.bf16.vlgmr.msra.gmra.mxu0 %vm785_vm5, %v1584_v52 }
 0x52a   :  { %v1662_v58 = vpop.permute.xlu0 %1661 }
 0x52e   :  { %v1659_v38 = vpop.permute.xlu1 %1658 }
 0x52f   :  { %v1664_v60 = vsel %vm317_vm13, %v3380_v42, %v1659_v38  ;;  %3203 = vmatmul.msk.bf16.vlgmr.msrb.gmra.mxu0 %vm317_vm13, %v2037_v56 }
 0x530   :  { %v1666_v61 = vsel %vm327_vm15, %v1664_v60, %v1662_v58  ;;  %v1712_v58 = vld [vmem:[%s3003_s14] sm:$0x1] }
 0x531   :  { %3160 = vmatmul.msk.bf16.vlgmr.msrb.gmra.mxu1 %vm785_vm5, %v1666_v61 }
 0x59c   :  { %v1614_v54 = vpop.f32.mrf.mxu0 }
 0x59d   :  { %1642 = vst.msk [vmem:[#allocation8] sm:$0xff] %vm327_vm15, %v1614_v54  ;;  %v1630_v1 = vmul.f32 %v1614_v54, %v1614_v54  ;;  %v1619_v41 = vsel %vm327_vm15, %v1614_v54, 0.0 }
 0x59f   :  { %v1632_v7 = vsel %vm327_vm15, %v1630_v1, 0.0 }
 0x5a4   :  { %v1616_v63 = vpop.f32.mrf.mxu0 }
 0x5a5   :  { %1643 = vst.msk [vmem:[#allocation8 + $0x8] sm:$0x3f] %vm1620_vm0, %v1616_v63  ;;  %v1631_v0 = vmul.f32 %v1616_v63, %v1616_v63  ;;  %v1621_v2 = vsel %vm1620_vm0, %v1616_v63, 0.0  ;;  %v1725_v63 = vld [vmem:[%s3004_s17] sm:$0x1]  ;;  %s3495_s17 = smov 22  }
 0x5a6   :  { %v1622_v6 = vadd.f32 %v1621_v2, %v1619_v41  ;;  %v1738_v41 = vld [vmem:[#allocation8] sm:$0xff]  ;;  %s3013_s20 = sld [smem:[%s4253_s0 + %s3495_s17]]  }
 0x5a7   :  { %v1633_v4 = vsel %vm1620_vm0, %v1631_v0, 0.0 }
 0x5a8   :  { %v1634_v9 = vadd.f32 %v1633_v4, %v1632_v7  ;;  %v1623_v12 = vrot.slane %v1622_v6, 4 }
 0x5aa   :  { %v1635_v5 = vrot.slane %v1634_v9, 4  ;;  %v1624_v10 = vadd.f32 %v1623_v12, %v1622_v6 }
 0x5ac   :  { %v1636_v14 = vadd.f32 %v1635_v5, %v1634_v9  ;;  %v1625_v17 = vrot.slane %v1624_v10, 2  ;;  %v1739_v4 = vld [vmem:[#allocation8 + $0x8] sm:$0x3f] }
 0x5ae   :  { %v1678_v11 = vpop.f32.mrf.mxu1  ;;  %v1637_v51 = vrot.slane %v1636_v14, 2  ;;  %v1626_v25 = vadd.f32 %v1625_v17, %v1624_v10 }
 0x5af   :  { %1705 = vst.msk [vmem:[#allocation8 + $0x20] sm:$0xff] %vm327_vm15, %v1678_v11  ;;  %v1693_v13 = vmul.f32 %v1678_v11, %v1678_v11  ;;  %v1683_v32 = vsel %vm327_vm15, %v1678_v11, 0.0 }
 0x5b0   :  { %v1638_v57 = vadd.f32 %v1637_v51, %v1636_v14  ;;  %v1627_v31 = vrot.slane %v1626_v25, 1 }
 0x5b1   :  { %v1695_v19 = vsel %vm327_vm15, %v1693_v13, 0.0 }
 0x5b2   :  { %v1639_v37 = vrot.slane %v1638_v57, 1  ;;  %v1628_v43 = vadd.f32 %v1627_v31, %v1626_v25 }
 0x5b4   :  { %v1640_v16 = vadd.f32 %v1639_v37, %v1638_v57 }
 0x5b6   :  { %v1680_v8 = vpop.f32.mrf.mxu1  ;;  %v1788_v7 = vld [vmem:[#allocation8 + $0x20] sm:$0xff] }
 0x5b7   :  { %v1684_v15 = vsel %vm1620_vm0, %v1680_v8, 0.0  ;;  %v1694_v45 = vmul.f32 %v1680_v8, %v1680_v8  ;;  %1706 = vst.msk [vmem:[#allocation8 + $0x28] sm:$0x3f] %vm1620_vm0, %v1680_v8 }
 0x5b8   :  { %v1685_v18 = vadd.f32 %v1684_v15, %v1683_v32 }
 0x5b9   :  { %v1696_v21 = vsel %vm1620_vm0, %v1694_v45, 0.0 }
 0x5ba   :  { %v1686_v23 = vrot.slane %v1685_v18, 4  ;;  %v1697_v24 = vadd.f32 %v1696_v21, %v1695_v19 }
 0x5bc   :  { %v1687_v26 = vadd.f32 %v1686_v23, %v1685_v18  ;;  %v1698_v27 = vrot.slane %v1697_v24, 4 }
 0x5be   :  { %v1688_v28 = vrot.slane %v1687_v26, 2  ;;  %v1699_v29 = vadd.f32 %v1698_v27, %v1697_v24  ;;  %v1789_v9 = vld [vmem:[#allocation8 + $0x28] sm:$0x3f] }
 0x5c0   :  { %v1689_v36 = vadd.f32 %v1688_v28, %v1687_v26  ;;  %v1700_v35 = vrot.slane %v1699_v29, 2 }
 0x5c2   :  { %v1690_v40 = vrot.slane %v1689_v36, 1  ;;  %v1701_v42 = vadd.f32 %v1700_v35, %v1699_v29  ;;  %v1774_v35 = vld [vmem:[#allocation5] sm:$0xf] }
 0x5c4   :  { %v1691_v44 = vadd.f32 %v1690_v40, %v1689_v36  ;;  %v1702_v46 = vrot.slane %v1701_v42, 1 }
 0x5c6   :  { %v1692_v47 = vadd.f32 %v1691_v44, %v1628_v43  ;;  %v1703_v59 = vadd.f32 %v1702_v46, %v1701_v42 }
 0x5c8   :  { %v1704_v20 = vadd.f32 %v1703_v59, %v1640_v16  ;;  %v1707_v30 = vmul.f32 0.035714287, %v1692_v47  ;;  %v1778_v59 = vld [vmem:[#allocation5 + $0x4] sm:$0xf] }
 0x5ca   :  { %v1708_v49 = vmul.f32 0.035714287, %v1704_v20  ;;  %v1709_v50 = vmul.f32 %v1707_v30, %v1707_v30  ;;  %v1816_v20 = vld [vmem:[#allocation5 + $0x8] sm:$0xf] }
 0x5cc   :  { %v1710_v34 = vsub.f32 %v1708_v49, %v1709_v50 }
 0x5ce   :  { %v1711_v52 = vmax.f32 %v1710_v34, 0.0  ;;  %v1819_v34 = vld [vmem:[#allocation5 + $0xc] sm:$0xf] }
 0x5d0   :  { %v1713_v39 = vadd.f32 1e-05, %v1711_v52 }
 0x5d2   :  { %3459 = vrsqrt.f32 %v1713_v39  ;;  %vm1720_vm7 = vweird.f32 %v1713_v39 }
 0x5d8   :  { %v3460_v55 = vpop.eup %3459 }
 0x5d9   :  { %v1715_v33 = vmul.f32 %v3460_v55, %v1713_v39  ;;  %vm1721_vm5 = vweird.f32 %v3460_v55 }
 0x5da   :  { %vm1722_vm3 = vmor %vm1720_vm7, %vm1721_vm5  ;;  %vm2255_vm5 = vcmask 256000  }
 0x5db   :  { %v1716_v62 = vmul.f32 %v3460_v55, %v1715_v33  ;;  %vm4153_vm7 = vmand %vm2255_vm5, %vm1336_vm12 }
 0x5dd   :  { %v1717_v56 = vmul.f32 0.5, %v1716_v62 }
 0x5df   :  { %v1718_v38 = vsub.f32 1.5, %v1717_v56 }
 0x5e1   :  { %v1719_v60 = vmul.f32 %v3460_v55, %v1718_v38 }
 0x5e3   :  { %v1723_v61 = vsel %vm1722_vm3, %v3460_v55, %v1719_v60 }
 0x5e4   :  { %v1724_v54 = vmul.f32 %v1723_v61, %v1712_v58 }
 0x5e6   :  { %v1726_v0 = vmul.f32 %v1724_v54, %v1707_v30  ;;  %v1741_v1 = vperm.slane %v1724_v54, 0 }
 0x5e8   :  { %v1727_v2 = vsub.f32 %v1725_v63, %v1726_v0  ;;  %v1743_v6 = vmul.f32 %v1741_v1, %v1738_v41  ;;  %v1744_v11 = vmul.f32 %v1741_v1, %v1739_v4  ;;  %v1790_v5 = vmul.f32 %v1788_v7, %v1741_v1  ;;  %v3385_v7 = vld [vmem:[%s3005_s21 + $0x20] sm:$0xff] }
 0x5e9   :  { %v1791_v10 = vmul.f32 %v1789_v9, %v1741_v1  ;;  %v3384_v9 = vld [vmem:[%s3005_s21 + $0x18] sm:$0xff] }
 0x5ea   :  { %v1746_v12 = vperm.slane %v1727_v2, 0 }
 0x5ec   :  { %v1748_v13 = vadd.f32 %v1746_v12, %v1743_v6  ;;  %v1749_v14 = vadd.f32 %v1746_v12, %v1744_v11  ;;  %v1792_v8 = vadd.f32 %v1790_v5, %v1746_v12  ;;  %v1793_v32 = vadd.f32 %v1791_v10, %v1746_v12  ;;  %v3386_v6 = vld [vmem:[%s3005_s21 + $0x28] sm:$0xff]  ;;  %v3383_v11 = vld [vmem:[%s3005_s21 + $0x10] sm:$0xff]  ;;  %v3381_v5 = vld [vmem:[%s3005_s21] sm:$0xff] }
 0x5ed   :  { %1898 = vmatpush.bf16.msrb.mxu3 %v3386_v6  ;;  %1961 = vmatpush.bf16.msrb.mxu2 %v3386_v6  ;;  %v3382_v12 = vld [vmem:[%s3005_s21 + $0x8] sm:$0xff]  ;;  %s3496_s21 = smov 23  }
 0x5ee   :  { %v1750_v15 = vmax.f32 %v1748_v13, 0.0  ;;  %v1751_v45 = vmax.f32 %v1749_v14, 0.0  ;;  %v1794_v17 = vmax.f32 %v1792_v8, 0.0  ;;  %v1795_v18 = vmax.f32 %v1793_v32, 0.0  ;;  %s3014_s23 = sld [smem:[%s4253_s0 + %s3496_s21]]  }
 0x5f0   :  { %v1752_v19 = vpack.c.bf16 %v1750_v15, %v1750_v15  ;;  %v1753_v21 = vpack.c.bf16 %v1751_v45, %v1751_v45  ;;  %v1796_v51 = vpack.c.bf16 %v1794_v17, %v1794_v17  ;;  %v1797_v23 = vpack.c.bf16 %v1795_v18, %v1795_v18  ;;  %v3391_v18 = vld [vmem:[#allocation4 + $0x8] sm:$0xff] }
 0x5f1   :  { %1899 = vmatpush.bf16.msrb.mxu3 %v3385_v7  ;;  %1962 = vmatpush.bf16.msrb.mxu2 %v3385_v7 }
 0x5f2   :  { %v1755_v24 = vshrl.u32 %v1752_v19, 16  ;;  %v1763_v25 = vshrl.u32 %v1753_v21, 16  ;;  %v1799_v26 = vshrl.u32 %v1796_v51, 16  ;;  %v1807_v27 = vshrl.u32 %v1797_v23, 16 }
 0x5f3   :  { %v1758_v28 = vshll.u32 %v1752_v19, 16  ;;  %v1766_v31 = vshll.u32 %v1753_v21, 16  ;;  %v1802_v40 = vshll.u32 %v1796_v51, 16  ;;  %v1810_v43 = vshll.u32 %v1797_v23, 16 }
 0x5f4   :  { %v1757_v57 = vrot.slane %v1755_v24, 7  ;;  %v1765_v29 = vrot.slane %v1763_v25, 7  ;;  %v1801_v37 = vrot.slane %v1799_v26, 7  ;;  %v1809_v42 = vrot.slane %v1807_v27, 7 }
 0x5f5   :  { %1900 = vmatpush.bf16.msrb.mxu3 %v3384_v9  ;;  %1963 = vmatpush.bf16.msrb.mxu2 %v3384_v9  ;;  %v2270_v19 = vshll.u32 %v3391_v18, 16  ;;  %v2268_v21 = vshrl.u32 %v3391_v18, 16 }
 0x5f6   :  { %v1760_v46 = vor.u32 %v1758_v28, %v1757_v57  ;;  %v1761_v16 = vrot.slane %v1757_v57, 4  ;;  %v1768_v47 = vor.u32 %v1766_v31, %v1765_v29  ;;  %v1804_v30 = vor.u32 %v1802_v40, %v1801_v37 }
 0x5f7   :  { %v1805_v49 = vrot.slane %v1801_v37, 4  ;;  %v1812_v50 = vor.u32 %v1810_v43, %v1809_v42 }
 0x5f8   :  { %v1769_v52 = vsel %vm3980_vm8, %v1761_v16, %v1768_v47  ;;  %v1775_v39 = vsel %vm4045_vm4, %v1760_v46, %v1774_v35  ;;  %v1817_v62 = vsel %vm4045_vm4, %v1804_v30, %v1816_v20 }
 0x5f9   :  { %1776 = vst [vmem:[#allocation5] sm:$0xf] %v1775_v39  ;;  %v1779_v55 = vsel %vm4051_vm9, %v1769_v52, %v1778_v59  ;;  %v1813_v33 = vsel %vm3980_vm8, %v1805_v49, %v1812_v50  ;;  %1901 = vmatpush.bf16.msrb.mxu3 %v3383_v11  ;;  %1964 = vmatpush.bf16.msrb.mxu2 %v3383_v11 }
 0x5fa   :  { %1780 = vst [vmem:[#allocation5 + $0x4] sm:$0xf] %v1779_v55  ;;  %v1820_v56 = vsel %vm4051_vm9, %v1813_v33, %v1819_v34  ;;  %vm2620_vm9 = vcmask 518144  }
 0x5fb   :  { %1818 = vst [vmem:[#allocation5 + $0x8] sm:$0xf] %v1817_v62 }
 0x5fc   :  { %1821 = vst [vmem:[#allocation5 + $0xc] sm:$0xf] %v1820_v56 }
 0x5fd   :  { %1902 = vmatpush.bf16.msrb.mxu3 %v3382_v12  ;;  %1965 = vmatpush.bf16.msrb.mxu2 %v3382_v12 }
 0x601   :  { %v3387_v38 = vld [vmem:[#allocation5] sm:$0xff]  ;;  %1903 = vmatpush.bf16.msrb.mxu3 %v3381_v5  ;;  %1966 = vmatpush.bf16.msrb.mxu2 %v3381_v5 }
 0x602   :  { %v1850_v58 = vrot.slane %v3387_v38, 1  ;;  %v1844_v61 = vshll.u32 %v3387_v38, 16  ;;  %v1842_v63 = vshrl.u32 %v3387_v38, 16 }
 0x603   :  { %v3388_v60 = vld [vmem:[#allocation5 + $0x8] sm:$0xff] }
 0x604   :  { %1851 = vrot.lane.b32.xlu0 %v1850_v58, %s3475_s25  ;;  %v1944_v54 = vshll.u32 %v3388_v60, 16  ;;  %v1846_v0 = vrot.slane %v1844_v61, 1  ;;  %v1942_v3 = vshrl.u32 %v3388_v60, 16  ;;  %v1950_v4 = vrot.slane %v3388_v60, 1 }
 0x605   :  { %2284 = vmatpush.bf16.msra.mxu2 %v4010_v48  ;;  %v2272_v48 = vrot.slane %v2270_v19, 1 }
 0x606   :  { %v1946_v1 = vrot.slane %v1944_v54, 1  ;;  %v1847_v2 = vor.u32 %v1846_v0, %v1842_v63 }
 0x607   :  { %v2273_v51 = vor.u32 %v2272_v48, %v2268_v21  ;;  %v2002_v48 = vld [vmem:[%s3006_s26] sm:$0x1] }
 0x608   :  { %v1947_v41 = vor.u32 %v1946_v1, %v1942_v3  ;;  %1848 = vrot.lane.b32.xlu1 %v1847_v2, %s3469_s10 }
 0x60a   :  { %1948 = vrot.lane.b32.xlu2 %v1947_v41, %s3469_s10 }
 0x610   :  { %1951 = vrot.lane.b32.xlu1 %v1950_v4, %s3475_s25 }
 0x664   :  { %v1949_v32 = vpop.permute.xlu2 %1948 }
 0x665   :  { %v1954_v15 = vsel %vm327_vm15, %v3388_v60, %v1949_v32 }
 0x676   :  { %v1852_v13 = vpop.permute.xlu0 %1851 }
 0x67a   :  { %v1849_v10 = vpop.permute.xlu1 %1848 }
 0x67b   :  { %v1854_v14 = vsel %vm327_vm15, %v3387_v38, %v1849_v10 }
 0x67c   :  { %v1856_v8 = vsel %vm790_vm2, %v1854_v14, %v1852_v13 }
 0x67d   :  { %3189 = vmatmul.msk.bf16.vlgmr.msrb.gmra.mxu3 %vm1893_vm14, %v1856_v8 }
 0x682   :  { %v1952_v45 = vpop.permute.xlu1 %1951 }
 0x683   :  { %v1956_v17 = vsel %vm790_vm2, %v1954_v15, %v1952_v45 }
 0x684   :  { %3194 = vmatmul.msk.bf16.vlgmr.msrb.gmra.mxu2 %vm1893_vm14, %v1956_v17  ;;  %v2056_v17 = vpop.f32.mrf.mxu0 }
 0x694   :  { %3251 = vmatmul.msk.bf16.vlgmr.msra.gmra.mxu2 %vm317_vm13, %v2273_v51 }
 0x700   :  { %v1905_v23 = vpop.f32.mrf.mxu3 }
 0x701   :  { %1932 = vst.msk [vmem:[#allocation8] sm:$0xff] %vm327_vm15, %v1905_v23  ;;  %v1920_v24 = vmul.f32 %v1905_v23, %v1905_v23  ;;  %v1910_v27 = vsel %vm327_vm15, %v1905_v23, 0.0 }
 0x703   :  { %v1922_v31 = vsel %vm327_vm15, %v1920_v24, 0.0  ;;  %v2015_v24 = vld [vmem:[%s3007_s29] sm:$0x1]  ;;  %s3498_s29 = smov 28  }
 0x704   :  { %s4223_s1 = sld [smem:[%s4253_s0 + %s3498_s29]]  }
 0x707   :  { %v1968_v25 = vpop.f32.mrf.mxu2 }
 0x708   :  { %1995 = vst.msk [vmem:[#allocation8 + $0x20] sm:$0xff] %vm327_vm15, %v1968_v25  ;;  %v1907_v26 = vpop.f32.mrf.mxu3  ;;  %v1983_v40 = vmul.f32 %v1968_v25, %v1968_v25  ;;  %v1973_v46 = vsel %vm327_vm15, %v1968_v25, 0.0 }
 0x709   :  { %v1911_v57 = vsel %vm1620_vm0, %v1907_v26, 0.0  ;;  %v1921_v28 = vmul.f32 %v1907_v26, %v1907_v26  ;;  %1933 = vst.msk [vmem:[#allocation8 + $0x8] sm:$0x3f] %vm1620_vm0, %v1907_v26 }
 0x70a   :  { %v1912_v29 = vadd.f32 %v1911_v57, %v1910_v27  ;;  %v1985_v49 = vsel %vm327_vm15, %v1983_v40, 0.0  ;;  %v3452_v27 = vld [vmem:[%s4022_s6] ss:$0 sm:$0xff]  ;;  %v2058_v57 = vpop.f32.mrf.mxu0 }
 0x70b   :  { %v1923_v36 = vsel %vm1620_vm0, %v1921_v28, 0.0 }
 0x70c   :  { %v1913_v35 = vrot.slane %v1912_v29, 4  ;;  %v1924_v37 = vadd.f32 %v1923_v36, %v1922_v31 }
 0x70e   :  { %v1914_v42 = vadd.f32 %v1913_v35, %v1912_v29  ;;  %v1925_v43 = vrot.slane %v1924_v37, 4  ;;  %v2061_v29 = vld [vmem:[#allocation8] sm:$0xff] }
 0x70f   :  { %v1970_v44 = vpop.f32.mrf.mxu2 }
 0x710   :  { %v1926_v16 = vadd.f32 %v1925_v43, %v1924_v37  ;;  %v1974_v47 = vsel %vm1620_vm0, %v1970_v44, 0.0  ;;  %v1984_v59 = vmul.f32 %v1970_v44, %v1970_v44  ;;  %1996 = vst.msk [vmem:[#allocation8 + $0x28] sm:$0x3f] %vm1620_vm0, %v1970_v44  ;;  %v1915_v20 = vrot.slane %v1914_v42, 2  ;;  %v2062_v36 = vld [vmem:[#allocation8 + $0x8] sm:$0x3f] }
 0x711   :  { %v1975_v30 = vadd.f32 %v1974_v47, %v1973_v46  ;;  %v2291_v37 = vld [vmem:[#allocation8 + $0x20] sm:$0xff]  ;;  %v2059_v47 = vadd.f32 %v3452_v27, %v2058_v57 }
 0x712   :  { %v1986_v50 = vsel %vm1620_vm0, %v1984_v59, 0.0  ;;  %v1927_v34 = vrot.slane %v1926_v16, 2  ;;  %v1916_v55 = vadd.f32 %v1915_v20, %v1914_v42  ;;  %vm2109_vm0 = vcmask 80896  }
 0x713   :  { %v1976_v52 = vrot.slane %v1975_v30, 4  ;;  %v1987_v39 = vadd.f32 %v1986_v50, %v1985_v49 }
 0x714   :  { %v1928_v56 = vadd.f32 %v1927_v34, %v1926_v16  ;;  %v1917_v60 = vrot.slane %v1916_v55, 1  ;;  %v2057_v16 = vadd.f32 %v3452_v27, %v2056_v17 }
 0x715   :  { %v1977_v33 = vadd.f32 %v1976_v52, %v1975_v30  ;;  %v1988_v62 = vrot.slane %v1987_v39, 4 }
 0x716   :  { %v1929_v63 = vrot.slane %v1928_v56, 1  ;;  %v1918_v1 = vadd.f32 %v1917_v60, %v1916_v55 }
 0x717   :  { %v1978_v38 = vrot.slane %v1977_v33, 2  ;;  %v1989_v58 = vadd.f32 %v1988_v62, %v1987_v39  ;;  %v2286_v18 = vpop.f32.mrf.mxu2  ;;  %v2292_v40 = vld [vmem:[#allocation8 + $0x28] sm:$0x3f] }
 0x718   :  { %v1930_v4 = vadd.f32 %v1929_v63, %v1928_v56  ;;  %v2287_v59 = vadd.f32 %v3452_v27, %v2286_v18 }
 0x719   :  { %v1979_v61 = vadd.f32 %v1978_v38, %v1977_v33  ;;  %v1990_v54 = vrot.slane %v1989_v58, 2 }
 0x71b   :  { %v1980_v0 = vrot.slane %v1979_v61, 1  ;;  %v1991_v3 = vadd.f32 %v1990_v54, %v1989_v58 }
 0x71d   :  { %v1981_v2 = vadd.f32 %v1980_v0, %v1979_v61  ;;  %v1992_v41 = vrot.slane %v1991_v3, 1 }
 0x71f   :  { %v1982_v6 = vadd.f32 %v1981_v2, %v1918_v1  ;;  %v1993_v7 = vadd.f32 %v1992_v41, %v1991_v3  ;;  %v2288_v31 = vpop.f32.mrf.mxu2 }
 0x720   :  { %v2289_v20 = vadd.f32 %v3452_v27, %v2288_v31  ;;  %v3356_v27 = vld [vmem:[%s4116_s3 + $0x48] sm:$0xff]  ;;  %v3355_v31 = vld [vmem:[%s4116_s3 + $0x40] sm:$0xff] }
 0x721   :  { %v1994_v9 = vadd.f32 %v1993_v7, %v1930_v4  ;;  %v1997_v11 = vmul.f32 0.035714287, %v1982_v6 }
 0x723   :  { %v1998_v12 = vmul.f32 0.035714287, %v1994_v9  ;;  %v1999_v5 = vmul.f32 %v1997_v11, %v1997_v11 }
 0x725   :  { %v2000_v10 = vsub.f32 %v1998_v12, %v1999_v5 }
 0x727   :  { %v2001_v13 = vmax.f32 %v2000_v10, 0.0 }
 0x729   :  { %v2003_v14 = vadd.f32 1e-05, %v2001_v13 }
 0x72b   :  { %3461 = vrsqrt.f32 %v2003_v14  ;;  %vm2010_vm6 = vweird.f32 %v2003_v14 }
 0x731   :  { %v3462_v8 = vpop.eup %3461 }
 0x732   :  { %v2005_v32 = vmul.f32 %v3462_v8, %v2003_v14  ;;  %vm2011_vm13 = vweird.f32 %v3462_v8  ;;  %v4106_v14 = vpack.c.bf16 %v3910_v53, %v3910_v53 }
 0x733   :  { %vm2012_vm8 = vmor %vm2010_vm6, %vm2011_vm13 }
 0x734   :  { %v2006_v15 = vmul.f32 %v3462_v8, %v2005_v32 }
 0x736   :  { %v2007_v45 = vmul.f32 0.5, %v2006_v15 }
 0x738   :  { %v2008_v19 = vsub.f32 1.5, %v2007_v45 }
 0x73a   :  { %v2009_v21 = vmul.f32 %v3462_v8, %v2008_v19 }
 0x73c   :  { %v2013_v51 = vsel %vm2012_vm8, %v3462_v8, %v2009_v21 }
 0x73d   :  { %v2014_v23 = vmul.f32 %v2013_v51, %v2002_v48 }
 0x73f   :  { %v2016_v25 = vmul.f32 %v2014_v23, %v1997_v11  ;;  %v2064_v26 = vperm.slane %v2014_v23, 0 }
 0x741   :  { %v2017_v28 = vsub.f32 %v2015_v24, %v2016_v25  ;;  %v2066_v35 = vmul.f32 %v2064_v26, %v2061_v29  ;;  %v2067_v42 = vmul.f32 %v2064_v26, %v2062_v36  ;;  %v2293_v44 = vmul.f32 %v2291_v37, %v2064_v26  ;;  %v3354_v37 = vld [vmem:[%s4116_s3 + $0x38] sm:$0xff] }
 0x742   :  { %v2294_v46 = vmul.f32 %v2292_v40, %v2064_v26  ;;  %2213 = vmatpush.bf16.msra.mxu0 %v3354_v37  ;;  %2368 = vmatpush.bf16.msrb.mxu2 %v3354_v37 }
 0x743   :  { %v2069_v43 = vperm.slane %v2017_v28, 0 }
 0x745   :  { %v2071_v30 = vadd.f32 %v2069_v43, %v2066_v35  ;;  %v2072_v49 = vadd.f32 %v2069_v43, %v2067_v42  ;;  %v2295_v50 = vadd.f32 %v2293_v44, %v2069_v43  ;;  %v2296_v34 = vadd.f32 %v2294_v46, %v2069_v43  ;;  %v3353_v46 = vld [vmem:[%s4116_s3 + $0x30] sm:$0xff] }
 0x746   :  { %2214 = vmatpush.bf16.msra.mxu0 %v3353_v46  ;;  %2369 = vmatpush.bf16.msrb.mxu2 %v3353_v46 }
 0x747   :  { %v2297_v52 = vadd.f32 %v2295_v50, %v2287_v59  ;;  %v2298_v39 = vadd.f32 %v2296_v34, %v2289_v20  ;;  %v2073_v55 = vadd.f32 %v2071_v30, %v2057_v16  ;;  %v2074_v33 = vadd.f32 %v2072_v49, %v2059_v47  ;;  %v3352_v59 = vld [vmem:[%s4116_s3 + $0x28] sm:$0xff]  ;;  %v3351_v20 = vld [vmem:[%s4116_s3 + $0x20] sm:$0xff]  ;;  %v3350_v50 = vld [vmem:[%s4116_s3 + $0x18] sm:$0xff] }
 0x748   :  { %v3349_v34 = vld [vmem:[%s4116_s3 + $0x10] sm:$0xff] }
 0x749   :  { %v2299_v62 = vmax.f32 %v2297_v52, 0.0  ;;  %v2300_v56 = vmax.f32 %v2298_v39, 0.0  ;;  %v2075_v38 = vmax.f32 %v2073_v55, 0.0  ;;  %v2076_v58 = vmax.f32 %v2074_v33, 0.0  ;;  %v3348_v39 = vld [vmem:[%s4116_s3 + $0x8] sm:$0xff]  ;;  %v3347_v55 = vld [vmem:[%s4116_s3] sm:$0xff] }
 0x74a   :  { %2215 = vmatpush.bf16.msra.mxu0 %v3352_v59  ;;  %2370 = vmatpush.bf16.msrb.mxu2 %v3352_v59 }
 0x74b   :  { %v2301_v60 = vpack.c.bf16 %v2299_v62, %v2299_v62  ;;  %v2302_v61 = vpack.c.bf16 %v2300_v56, %v2300_v56  ;;  %v2077_v54 = vpack.c.bf16 %v2075_v38, %v2075_v38  ;;  %v2078_v63 = vpack.c.bf16 %v2076_v58, %v2076_v58 }
 0x74d   :  { %v2305_v0 = vunpack.c.l.b16 %v2301_v60  ;;  %v2306_v3 = vunpack.c.l.b16 %v2302_v61  ;;  %v2081_v1 = vunpack.c.l.b16 %v2077_v54  ;;  %v2082_v2 = vunpack.c.l.b16 %v2078_v63 }
 0x74e   :  { %2216 = vmatpush.bf16.msra.mxu0 %v3351_v20  ;;  %2371 = vmatpush.bf16.msrb.mxu2 %v3351_v20 }
 0x74f   :  { %v2083_v41 = vpack.c.b16 %v2082_v2, %v2081_v1  ;;  %v2307_v4 = vpack.c.b16 %v2306_v3, %v2305_v0  ;;  %v2239_v1 = vld [vmem:[#allocation6] sm:$0x1] }
 0x750   :  { %v2240_v2 = vsel %vm3947_vm11, 0, %v2239_v1 }
 0x751   :  { %v2093_v6 = vrot.slane %v2083_v41, 1  ;;  %v2101_v7 = vrot.slane %v2083_v41, 2  ;;  %v2085_v9 = vshrl.u32 %v2083_v41, 16  ;;  %v2087_v11 = vshll.u32 %v2083_v41, 16  ;;  %2241 = vst [vmem:[#allocation6] sm:$0x1] %v2240_v2 }
 0x752   :  { %v2309_v15 = vshrl.u32 %v2307_v4, 16  ;;  %v2311_v45 = vshll.u32 %v2307_v4, 16  ;;  %v2317_v17 = vrot.slane %v2307_v4, 1  ;;  %v2325_v36 = vrot.slane %v2307_v4, 2  ;;  %2217 = vmatpush.bf16.msra.mxu0 %v3350_v50  ;;  %2372 = vmatpush.bf16.msrb.mxu2 %v3350_v50  ;;  %v3395_v50 = vld [vmem:[%s4163_s15 + $0x18] sm:$0xff] }
 0x753   :  { %2094 = vrot.lane.b32.xlu0 %v2093_v6, %s3475_s25  ;;  %v2117_v12 = vsel %vm2113_vm10, %v2101_v7, 0  ;;  %v2096_v5 = vrot.slane %v2085_v9, 1  ;;  %v2097_v10 = vrot.slane %v2087_v11, 2  ;;  %v2089_v13 = vrot.slane %v2087_v11, 1 }
 0x754   :  { %2139 = vmatpush.bf16.msra.mxu3 %v2117_v12  ;;  %v2320_v18 = vrot.slane %v2309_v15, 1  ;;  %v2321_v19 = vrot.slane %v2311_v45, 2  ;;  %v2313_v48 = vrot.slane %v2311_v45, 1  ;;  %v2335_v44 = vsel %vm2113_vm10, %v2325_v36, 0  ;;  %v2395_v12 = vld [vmem:[#allocation6 + $0x4] sm:$0x1] }
 0x755   :  { %v2098_v8 = vor.u32 %v2097_v10, %v2096_v5  ;;  %v2090_v32 = vor.u32 %v2089_v13, %v2085_v9  ;;  %v2396_v10 = vsel %vm3947_vm11, 0, %v2395_v12  ;;  %vm2497_vm11 = vcmask 520192  }
 0x756   :  { %v2322_v53 = vor.u32 %v2321_v19, %v2320_v18  ;;  %v2314_v21 = vor.u32 %v2313_v48, %v2309_v15  ;;  %2218 = vmatpush.bf16.msra.mxu0 %v3349_v34  ;;  %2373 = vmatpush.bf16.msrb.mxu2 %v3349_v34  ;;  %2397 = vst [vmem:[#allocation6 + $0x4] sm:$0x1] %v2396_v10  ;;  %v3394_v34 = vld [vmem:[%s4163_s15 + $0x10] sm:$0xff] }
 0x757   :  { %2099 = vrot.lane.b32.xlu1 %v2098_v8, %s3491_s11  ;;  %2091 = vrot.lane.b32.xlu2 %v2090_v32, %s3469_s10 }
 0x758   :  { %3205 = vmatmul.msk.bf16.vlgmr.msra.gmra.mxu3 %vm2109_vm0, %v4106_v14  ;;  %v2257_v32 = vld [vmem:[#allocation6] sm:$0x7] }
 0x75a   :  { %2219 = vmatpush.bf16.msra.mxu0 %v3348_v39  ;;  %2374 = vmatpush.bf16.msrb.mxu2 %v3348_v39  ;;  %v3392_v39 = vld [vmem:[%s4163_s15] sm:$0xff] }
 0x75b   :  { %2318 = vrot.lane.b32.xlu0 %v2317_v17, %s3475_s25 }
 0x75e   :  { %2220 = vmatpush.bf16.msra.mxu0 %v3347_v55  ;;  %2375 = vmatpush.bf16.msrb.mxu2 %v3347_v55 }
 0x75f   :  { %2323 = vrot.lane.b32.xlu1 %v2322_v53, %s3491_s11  ;;  %2315 = vrot.lane.b32.xlu2 %v2314_v21, %s3469_s10 }
 0x7b1   :  { %v2092_v51 = vpop.permute.xlu2 %2091 }
 0x7b2   :  { %v2103_v24 = vsel %vm327_vm15, %v2083_v41, %v2092_v51  ;;  %v3453_v41 = vld [vmem:[%s3011_s7] ss:$0 sm:$0xff] }
 0x7b9   :  { %v2316_v29 = vpop.permute.xlu2 %2315 }
 0x7ba   :  { %v2327_v40 = vsel %vm327_vm15, %v2307_v4, %v2316_v29 }
 0x7c5   :  { %v2095_v23 = vpop.permute.xlu0 %2094 }
 0x7c6   :  { %v2105_v25 = vsel %vm790_vm2, %v2103_v24, %v2095_v23 }
 0x7c9   :  { %v2100_v26 = vpop.permute.xlu1 %2099 }
 0x7ca   :  { %v2107_v57 = vsel %vm1893_vm14, %v2105_v25, %v2100_v26  ;;  %v3397_v26 = vld [vmem:[%s4163_s15 + $0x28] sm:$0xff] }
 0x7cb   :  { %v2114_v28 = vsel %vm2113_vm10, %v2107_v57, 0  ;;  %2486 = vmatpush.bf16.msrb.mxu0 %v3397_v26 }
 0x7cc   :  { %2126 = vmatpush.bf16.msra.mxu1 %v2114_v28 }
 0x7cd   :  { %v2319_v35 = vpop.permute.xlu0 %2318 }
 0x7ce   :  { %v2329_v42 = vsel %vm790_vm2, %v2327_v40, %v2319_v35  ;;  %v2410_v35 = vld [vmem:[#allocation6 + $0x4] sm:$0x7] }
 0x7cf   :  { %3204 = vmatmul.msk.bf16.vlgmr.msra.gmra.mxu1 %vm2109_vm0, %v4106_v14 }
 0x7d0   :  { %2232 = vmatpush.bf16.msrb.mxu1 %v3356_v27 }
 0x7d1   :  { %v2324_v43 = vpop.permute.xlu1 %2323 }
 0x7d2   :  { %v2331_v16 = vsel %vm1893_vm14, %v2329_v42, %v2324_v43 }
 0x7d3   :  { %v2332_v47 = vsel %vm2113_vm10, %v2331_v16, 0 }
 0x7d4   :  { %2233 = vmatpush.bf16.msrb.mxu1 %v3355_v31  ;;  %2344 = vmatpush.bf16.msrb.mxu3 %v2332_v47 }
 0x7d7   :  { %3252 = vmatmul.msk.bf16.vlgmr.msrb.gmra.mxu3 %vm2109_vm0, %v4106_v14 }
 0x7d8   :  { %2357 = vmatpush.bf16.msra.mxu1 %v2335_v44  ;;  %2387 = vmatpush.bf16.msra.mxu3 %v3356_v27 }
 0x7db   :  { %v2141_v30 = vpop.f32.mrf.mxu3 }
 0x7dc   :  { %2388 = vmatpush.bf16.msra.mxu3 %v3355_v31  ;;  %v2146_v49 = vpack.c.bf16 %v2141_v30, %v2141_v30 }
 0x7df   :  { %3246 = vmatmul.msk.bf16.vlgmr.msrb.gmra.mxu1 %vm327_vm15, %v2146_v49  ;;  %v3396_v49 = vld [vmem:[%s4163_s15 + $0x20] sm:$0xff] }
 0x7e0   :  { %2541 = vmatpush.bf16.msrb.mxu1 %v3397_v26  ;;  %2487 = vmatpush.bf16.msrb.mxu0 %v3396_v49 }
 0x7e3   :  { %v2143_v52 = vpop.f32.mrf.mxu3 }
 0x7e4   :  { %2542 = vmatpush.bf16.msrb.mxu1 %v3396_v49  ;;  %2488 = vmatpush.bf16.msrb.mxu0 %v3395_v50  ;;  %v3393_v52 = vld [vmem:[%s4163_s15 + $0x8] sm:$0xff] }
 0x7e8   :  { %2543 = vmatpush.bf16.msrb.mxu1 %v3395_v50  ;;  %2489 = vmatpush.bf16.msrb.mxu0 %v3394_v34 }
 0x7ec   :  { %2544 = vmatpush.bf16.msrb.mxu1 %v3394_v34  ;;  %2490 = vmatpush.bf16.msrb.mxu0 %v3393_v52 }
 0x7ef   :  { %3253 = vmatmul.msk.bf16.vlgmr.msra.gmra.mxu1 %vm2109_vm0, %v4106_v14 }
 0x7f0   :  { %2545 = vmatpush.bf16.msrb.mxu1 %v3393_v52  ;;  %2491 = vmatpush.bf16.msrb.mxu0 %v3392_v39  ;;  %v3406_v52 = vld [vmem:[%s4192_s9 + $0x40] sm:$0xff] }
 0x7f4   :  { %2546 = vmatpush.bf16.msrb.mxu1 %v3392_v39  ;;  %v2588_v39 = vld [vmem:[%s3014_s23] sm:$0x1] }
 0x84c   :  { %v2128_v33 = vpop.f32.mrf.mxu1 }
 0x84d   :  { %v2145_v62 = vpack.c.bf16 %v2128_v33, %v2128_v33 }
 0x84f   :  { %2221 = vmatmul.bf16.vlgmr.msra.gmra.mxu0 %v2145_v62 }
 0x854   :  { %v2130_v56 = vpop.f32.mrf.mxu1 }
 0x85a   :  { %v2346_v38 = vpop.f32.mrf.mxu3 }
 0x85b   :  { %v2363_v58 = vpack.c.bf16 %v2346_v38, %v2346_v38 }
 0x85c   :  { %v2235_v60 = vpop.f32.mrf.mxu1 }
 0x85d   :  { %2376 = vmatmul.bf16.vlgmr.msrb.gmra.mxu2 %v2363_v58 }
 0x862   :  { %v2348_v61 = vpop.f32.mrf.mxu3 }
 0x864   :  { %v2237_v54 = vpop.f32.mrf.mxu1 }
 0x86c   :  { %v2359_v63 = vpop.f32.mrf.mxu1 }
 0x86d   :  { %v2364_v0 = vpack.c.bf16 %v2359_v63, %v2359_v63 }
 0x86f   :  { %3254 = vmatmul.msk.bf16.vlgmr.msra.gmra.mxu3 %vm327_vm15, %v2364_v0 }
 0x874   :  { %v2361_v3 = vpop.f32.mrf.mxu1 }
 0x8cc   :  { %v2222_v4 = vpop.f32.mrf.mxu0 }
 0x8cd   :  { %v2223_v6 = vadd.f32 %v3453_v41, %v2222_v4 }
 0x8cf   :  { %v2236_v7 = vadd.f32 %v2235_v60, %v2223_v6 }
 0x8d1   :  { %v2246_v9 = vpack.c.bf16 %v2236_v7, %v2236_v7 }
 0x8d3   :  { %v2248_v11 = vshrl.u32 %v2246_v9, 16  ;;  %v2251_v14 = vshll.u32 %v2246_v9, 16 }
 0x8d4   :  { %v2224_v5 = vpop.f32.mrf.mxu0 }
 0x8d5   :  { %v2250_v13 = vrot.slane %v2248_v11, 7 }
 0x8d7   :  { %v2253_v15 = vor.u32 %v2251_v14, %v2250_v13 }
 0x8d9   :  { %v2258_v45 = vsel %vm4153_vm7, %v2253_v15, %v2257_v32 }
 0x8da   :  { %2259 = vst [vmem:[#allocation6] sm:$0x7] %v2258_v45 }
 0x8e0   :  { %v2377_v17 = vpop.f32.mrf.mxu2 }
 0x8e1   :  { %v2425_v18 = vld [vmem:[#allocation6] sm:$0xf]  ;;  %v2378_v25 = vadd.f32 %v3453_v41, %v2377_v17 }
 0x8e2   :  { %v2427_v19 = vunpack.c.l.b16 %v2425_v18 }
 0x8e4   :  { %v2428_v48 = vpack.c.b16 %v2427_v19, %v2427_v19 }
 0x8e6   :  { %v2438_v22 = vrot.slane %v2428_v48, 1  ;;  %v2432_v53 = vshll.u32 %v2428_v48, 16  ;;  %v2430_v21 = vshrl.u32 %v2428_v48, 16 }
 0x8e8   :  { %2439 = vrot.lane.b32.xlu1 %v2438_v22, %s3475_s25  ;;  %v2434_v51 = vrot.slane %v2432_v53, 1  ;;  %v2379_v23 = vpop.f32.mrf.mxu2 }
 0x8ea   :  { %v2435_v24 = vor.u32 %v2434_v51, %v2430_v21 }
 0x8ec   :  { %2436 = vrot.lane.b32.xlu2 %v2435_v24, %s3469_s10 }
 0x8f2   :  { %v2390_v27 = vpop.f32.mrf.mxu3 }
 0x8f3   :  { %v2391_v57 = vadd.f32 %v2390_v27, %v2378_v25 }
 0x8f5   :  { %v2401_v28 = vpack.c.bf16 %v2391_v57, %v2391_v57 }
 0x8f7   :  { %v2403_v29 = vshrl.u32 %v2401_v28, 16  ;;  %v2406_v36 = vshll.u32 %v2401_v28, 16 }
 0x8f9   :  { %v2405_v31 = vrot.slane %v2403_v29, 7 }
 0x8fa   :  { %v2392_v37 = vpop.f32.mrf.mxu3 }
 0x8fb   :  { %v2408_v40 = vor.u32 %v2406_v36, %v2405_v31 }
 0x8fd   :  { %v2411_v42 = vsel %vm4153_vm7, %v2408_v40, %v2410_v35 }
 0x8fe   :  { %2412 = vst [vmem:[#allocation6 + $0x4] sm:$0x7] %v2411_v42 }
 0x905   :  { %v2516_v43 = vld [vmem:[#allocation6 + $0x4] sm:$0xf] }
 0x906   :  { %v2518_v44 = vunpack.c.l.b16 %v2516_v43 }
 0x908   :  { %v2519_v46 = vpack.c.b16 %v2518_v44, %v2518_v44  ;;  %v3409_v44 = vld [vmem:[%s4192_s9 + $0x58] sm:$0xff] }
 0x909   :  { %2782 = vmatpush.bf16.msra.mxu2 %v3409_v44  ;;  %2847 = vmatpush.bf16.msra.mxu1 %v3409_v44 }
 0x90a   :  { %v2523_v16 = vshll.u32 %v2519_v46, 16  ;;  %v2529_v47 = vrot.slane %v2519_v46, 1  ;;  %v2521_v59 = vshrl.u32 %v2519_v46, 16 }
 0x90c   :  { %v2525_v20 = vrot.slane %v2523_v16, 1  ;;  %2530 = vrot.lane.b32.xlu2 %v2529_v47, %s3475_s25  ;;  %v3408_v16 = vld [vmem:[%s4192_s9 + $0x50] sm:$0xff] }
 0x90d   :  { %2783 = vmatpush.bf16.msra.mxu2 %v3408_v16  ;;  %2848 = vmatpush.bf16.msra.mxu1 %v3408_v16 }
 0x90e   :  { %v2526_v30 = vor.u32 %v2525_v20, %v2521_v59  ;;  %v3407_v20 = vld [vmem:[%s4192_s9 + $0x48] sm:$0xff] }
 0x910   :  { %2527 = vrot.lane.b32.xlu0 %v2526_v30, %s3469_s10  ;;  %v2575_v30 = vld [vmem:[%s3013_s20] sm:$0x1]  ;;  %s3020_s10 = sld [smem:[%s4253_s0 + %s3501_s13]]  }
 0x911   :  { %2784 = vmatpush.bf16.msra.mxu2 %v3407_v20  ;;  %2849 = vmatpush.bf16.msra.mxu1 %v3407_v20 }
 0x915   :  { %2785 = vmatpush.bf16.msra.mxu2 %v3406_v52  ;;  %2850 = vmatpush.bf16.msra.mxu1 %v3406_v52 }
 0x946   :  { %v2437_v55 = vpop.permute.xlu2 %2436 }
 0x947   :  { %v2443_v33 = vsel %vm327_vm15, %v2425_v18, %v2437_v55 }
 0x95a   :  { %v2440_v62 = vpop.permute.xlu1 %2439 }
 0x95b   :  { %v2445_v56 = vsel %vm790_vm2, %v2443_v33, %v2440_v62 }
 0x95c   :  { %3279 = vmatmul.msk.bf16.vlgmr.msrb.gmra.mxu0 %vm1893_vm14, %v2445_v56 }
 0x966   :  { %v2531_v58 = vpop.permute.xlu2 %2530 }
 0x982   :  { %v2528_v38 = vpop.permute.xlu0 %2527 }
 0x983   :  { %v2534_v60 = vsel %vm327_vm15, %v2516_v43, %v2528_v38 }
 0x984   :  { %v2536_v61 = vsel %vm790_vm2, %v2534_v60, %v2531_v58 }
 0x985   :  { %3280 = vmatmul.msk.bf16.vlgmr.msrb.gmra.mxu1 %vm1893_vm14, %v2536_v61  ;;  %vm2621_vm14 = vmand %vm2620_vm9, %vm1336_vm12 }
 0x9d9   :  { %v2493_v54 = vpop.f32.mrf.mxu0 }
 0x9da   :  { %2515 = vst.msk [vmem:[#allocation8] sm:$0x1f] %vm2497_vm11, %v2493_v54  ;;  %v2506_v0 = vmul.f32 %v2493_v54, %v2493_v54  ;;  %v2498_v3 = vsel %vm2497_vm11, %v2493_v54, 0.0 }
 0x9db   :  { %v2499_v2 = vrot.slane %v2498_v3, 4 }
 0x9dc   :  { %v2507_v1 = vsel %vm2497_vm11, %v2506_v0, 0.0  ;;  %v3411_v0 = vld [vmem:[%s3018_s28 + $0x8] sm:$0xff] }
 0x9dd   :  { %v2508_v41 = vrot.slane %v2507_v1, 4  ;;  %v2500_v4 = vadd.f32 %v2499_v2, %v2498_v3  ;;  %2935 = vmatpush.bf16.msrb.mxu2 %v3411_v0  ;;  %2974 = vmatpush.bf16.msrb.mxu1 %v3411_v0  ;;  %v3410_v2 = vld [vmem:[%s3018_s28] sm:$0xff] }
 0x9df   :  { %v2509_v6 = vadd.f32 %v2508_v41, %v2507_v1  ;;  %v2501_v7 = vrot.slane %v2500_v4, 2 }
 0x9e1   :  { %v2495_v63 = vpop.f32.mrf.mxu0  ;;  %v2510_v5 = vrot.slane %v2509_v6, 2  ;;  %v2502_v14 = vadd.f32 %v2501_v7, %v2500_v4  ;;  %v2601_v56 = vld [vmem:[#allocation8] sm:$0x1f]  ;;  %2936 = vmatpush.bf16.msrb.mxu2 %v3410_v2  ;;  %2975 = vmatpush.bf16.msrb.mxu1 %v3410_v2 }
 0x9e3   :  { %v2511_v15 = vadd.f32 %v2510_v5, %v2509_v6  ;;  %v2503_v18 = vrot.slane %v2502_v14, 1 }
 0x9e5   :  { %v2512_v53 = vrot.slane %v2511_v15, 1  ;;  %v2504_v23 = vadd.f32 %v2503_v18, %v2502_v14  ;;  %v3403_v18 = vld [vmem:[%s4192_s9 + $0x28] sm:$0xff] }
 0x9e7   :  { %v2513_v26 = vadd.f32 %v2512_v53, %v2511_v15 }
 0xa02   :  { %v2548_v9 = vpop.f32.mrf.mxu1 }
 0xa03   :  { %v2552_v11 = vsel %vm2497_vm11, %v2548_v9, 0.0  ;;  %v2560_v12 = vmul.f32 %v2548_v9, %v2548_v9  ;;  %2569 = vst.msk [vmem:[#allocation8 + $0x20] sm:$0x1f] %vm2497_vm11, %v2548_v9 }
 0xa04   :  { %v2553_v10 = vrot.slane %v2552_v11, 4 }
 0xa05   :  { %v2561_v13 = vsel %vm2497_vm11, %v2560_v12, 0.0 }
 0xa06   :  { %v2554_v8 = vadd.f32 %v2553_v10, %v2552_v11  ;;  %v2562_v32 = vrot.slane %v2561_v13, 4  ;;  %v2622_v10 = vld [vmem:[#allocation7] sm:$0x7] }
 0xa08   :  { %v2555_v45 = vrot.slane %v2554_v8, 2  ;;  %v2563_v17 = vadd.f32 %v2562_v32, %v2561_v13  ;;  %v2645_v13 = vld [vmem:[#allocation7 + $0x4] sm:$0x7] }
 0xa0a   :  { %v2556_v19 = vadd.f32 %v2555_v45, %v2554_v8  ;;  %v2564_v48 = vrot.slane %v2563_v17, 2  ;;  %v2550_v22 = vpop.f32.mrf.mxu1  ;;  %v2632_v38 = vld [vmem:[#allocation8 + $0x20] sm:$0x1f]  ;;  %v3405_v45 = vld [vmem:[%s4192_s9 + $0x38] sm:$0xff] }
 0xa0b   :  { %2765 = vmatpush.bf16.msrb.mxu3 %v3405_v45  ;;  %2830 = vmatpush.bf16.msra.mxu0 %v3405_v45 }
 0xa0c   :  { %v2557_v21 = vrot.slane %v2556_v19, 1  ;;  %v2565_v51 = vadd.f32 %v2564_v48, %v2563_v17  ;;  %v3404_v17 = vld [vmem:[%s4192_s9 + $0x30] sm:$0xff] }
 0xa0e   :  { %v2558_v24 = vadd.f32 %v2557_v21, %v2556_v19  ;;  %v2566_v25 = vrot.slane %v2565_v51, 1  ;;  %v2900_v21 = vld [vmem:[#allocation6] sm:$0x7] }
 0xa0f   :  { %2766 = vmatpush.bf16.msrb.mxu3 %v3404_v17  ;;  %2831 = vmatpush.bf16.msra.mxu0 %v3404_v17 }
 0xa10   :  { %v2559_v27 = vadd.f32 %v2558_v24, %v2504_v23  ;;  %v2567_v57 = vadd.f32 %v2566_v25, %v2565_v51  ;;  %v3402_v51 = vld [vmem:[%s4192_s9 + $0x20] sm:$0xff]  ;;  %v2954_v24 = vld [vmem:[#allocation6 + $0x4] sm:$0x7] }
 0xa12   :  { %v2568_v28 = vadd.f32 %v2567_v57, %v2513_v26  ;;  %v2570_v29 = vmul.f32 0.1, %v2559_v27  ;;  %v2905_v57 = vunpack.c.l.b16 %v2900_v21 }
 0xa13   :  { %2767 = vmatpush.bf16.msrb.mxu3 %v3403_v18  ;;  %2832 = vmatpush.bf16.msra.mxu0 %v3403_v18 }
 0xa14   :  { %v2571_v31 = vmul.f32 0.1, %v2568_v28  ;;  %v2572_v36 = vmul.f32 %v2570_v29, %v2570_v29  ;;  %v2906_v44 = vpack.c.b16 %v2905_v57, %v2905_v57 }
 0xa16   :  { %v2573_v35 = vsub.f32 %v2571_v31, %v2572_v36  ;;  %v2956_v31 = vunpack.c.l.b16 %v2954_v24  ;;  %v3401_v36 = vld [vmem:[%s4192_s9 + $0x18] sm:$0xff]  ;;  %v2908_v52 = vshrl.u32 %v2906_v44, 16 }
 0xa17   :  { %2768 = vmatpush.bf16.msrb.mxu3 %v3402_v51  ;;  %2833 = vmatpush.bf16.msra.mxu0 %v3402_v51 }
 0xa18   :  { %v2574_v37 = vmax.f32 %v2573_v35, 0.0  ;;  %v2957_v16 = vpack.c.b16 %v2956_v31, %v2956_v31 }
 0xa1a   :  { %v2576_v40 = vadd.f32 1e-05, %v2574_v37  ;;  %v2961_v20 = vshll.u32 %v2957_v16, 16 }
 0xa1b   :  { %2769 = vmatpush.bf16.msrb.mxu3 %v3401_v36  ;;  %2834 = vmatpush.bf16.msra.mxu0 %v3401_v36 }
 0xa1c   :  { %3463 = vrsqrt.f32 %v2576_v40  ;;  %vm2583_vm1 = vweird.f32 %v2576_v40 }
 0xa22   :  { %v3464_v42 = vpop.eup %3463 }
 0xa23   :  { %v2578_v43 = vmul.f32 %v3464_v42, %v2576_v40  ;;  %vm2584_vm3 = vweird.f32 %v3464_v42 }
 0xa24   :  { %vm2585_vm4 = vmor %vm2583_vm1, %vm2584_vm3 }
 0xa25   :  { %v2579_v46 = vmul.f32 %v3464_v42, %v2578_v43 }
 0xa27   :  { %v2580_v47 = vmul.f32 0.5, %v2579_v46 }
 0xa29   :  { %v2581_v59 = vsub.f32 1.5, %v2580_v47  ;;  %v3400_v47 = vld [vmem:[%s4192_s9 + $0x10] sm:$0xff] }
 0xa2a   :  { %2770 = vmatpush.bf16.msrb.mxu3 %v3400_v47  ;;  %2835 = vmatpush.bf16.msra.mxu0 %v3400_v47 }
 0xa2b   :  { %v2582_v49 = vmul.f32 %v3464_v42, %v2581_v59  ;;  %v2910_v59 = vshll.u32 %v2906_v44, 16 }
 0xa2d   :  { %v2586_v50 = vsel %vm2585_vm4, %v3464_v42, %v2582_v49  ;;  %v2912_v49 = vrot.slane %v2910_v59, 1 }
 0xa2e   :  { %v2587_v34 = vmul.f32 %v2586_v50, %v2575_v30  ;;  %v3399_v30 = vld [vmem:[%s4192_s9 + $0x8] sm:$0xff]  ;;  %v2963_v50 = vrot.slane %v2961_v20, 1 }
 0xa2f   :  { %2771 = vmatpush.bf16.msrb.mxu3 %v3399_v30  ;;  %2836 = vmatpush.bf16.msra.mxu0 %v3399_v30 }
 0xa30   :  { %v2589_v55 = vmul.f32 %v2587_v34, %v2570_v29  ;;  %v2603_v33 = vperm.slane %v2587_v34, 0  ;;  %v3398_v34 = vld [vmem:[%s4192_s9] sm:$0xff] }
 0xa32   :  { %v2590_v62 = vsub.f32 %v2588_v39, %v2589_v55  ;;  %v2605_v58 = vmul.f32 %v2603_v33, %v2601_v56  ;;  %v2633_v61 = vmul.f32 %v2632_v38, %v2603_v33  ;;  %v2959_v39 = vshrl.u32 %v2957_v16, 16 }
 0xa33   :  { %v2913_v55 = vor.u32 %v2912_v49, %v2908_v52  ;;  %2772 = vmatpush.bf16.msrb.mxu3 %v3398_v34  ;;  %2837 = vmatpush.bf16.msra.mxu0 %v3398_v34 }
 0xa34   :  { %v2607_v60 = vperm.slane %v2590_v62, 0  ;;  %v2964_v33 = vor.u32 %v2963_v50, %v2959_v39 }
 0xa36   :  { %v2609_v54 = vadd.f32 %v2607_v60, %v2605_v58  ;;  %v2634_v63 = vadd.f32 %v2633_v61, %v2607_v60 }
 0xa38   :  { %v2610_v3 = vmax.f32 %v2609_v54, 0.0  ;;  %v2635_v1 = vmax.f32 %v2634_v63, 0.0 }
 0xa3a   :  { %v2611_v41 = vpack.c.bf16 %v2610_v3, %v2610_v3  ;;  %v2636_v4 = vpack.c.bf16 %v2635_v1, %v2635_v1 }
 0xa3c   :  { %v2613_v6 = vshrl.u32 %v2611_v41, 16  ;;  %v2638_v7 = vshrl.u32 %v2636_v4, 16  ;;  %v2616_v11 = vshll.u32 %v2611_v41, 16  ;;  %v2641_v5 = vshll.u32 %v2636_v4, 16 }
 0xa3e   :  { %v2615_v9 = vrot.slane %v2613_v6, 7  ;;  %v2640_v12 = vrot.slane %v2638_v7, 7 }
 0xa40   :  { %v2618_v14 = vor.u32 %v2616_v11, %v2615_v9  ;;  %v2643_v8 = vor.u32 %v2641_v5, %v2640_v12 }
 0xa42   :  { %v2623_v32 = vsel %vm2621_vm14, %v2618_v14, %v2622_v10  ;;  %v2646_v15 = vsel %vm2621_vm14, %v2643_v8, %v2645_v13 }
 0xa43   :  { %2624 = vst [vmem:[#allocation7] sm:$0x7] %v2623_v32 }
 0xa44   :  { %2647 = vst [vmem:[#allocation7 + $0x4] sm:$0x7] %v2646_v15 }
 0xa4a   :  { %v2672_v19 = vld [vmem:[#allocation7] sm:$0xf] }
 0xa4b   :  { %v2674_v48 = vunpack.c.l.b16 %v2672_v19  ;;  %v2809_v22 = vld [vmem:[#allocation7 + $0x4] sm:$0xf] }
 0xa4c   :  { %v2811_v53 = vunpack.c.l.b16 %v2809_v22 }
 0xa4d   :  { %v2675_v23 = vpack.c.b16 %v2674_v48, %v2674_v48 }
 0xa4e   :  { %v2812_v25 = vpack.c.b16 %v2811_v53, %v2811_v53 }
 0xa4f   :  { %v2685_v26 = vrot.slane %v2675_v23, 1  ;;  %v2679_v27 = vshll.u32 %v2675_v23, 16  ;;  %v2677_v35 = vshrl.u32 %v2675_v23, 16 }
 0xa50   :  { %v2822_v28 = vrot.slane %v2812_v25, 1  ;;  %v2816_v29 = vshll.u32 %v2812_v25, 16  ;;  %v2814_v40 = vshrl.u32 %v2812_v25, 16 }
 0xa51   :  { %3329 = vmatmul.msk.bf16.vlgmr.msra.gmra.mxu2 %vm790_vm2, %v2685_v26  ;;  %v2681_v37 = vrot.slane %v2679_v27, 1 }
 0xa52   :  { %3330 = vmatmul.msk.bf16.vlgmr.msra.gmra.mxu1 %vm790_vm2, %v2822_v28  ;;  %v2818_v42 = vrot.slane %v2816_v29, 1 }
 0xa53   :  { %v2682_v43 = vor.u32 %v2681_v37, %v2677_v35 }
 0xa54   :  { %v2819_v46 = vor.u32 %v2818_v42, %v2814_v40 }
 0xa55   :  { %2683 = vrot.lane.b32.xlu0 %v2682_v43, %s3475_s25 }
 0xa56   :  { %2820 = vrot.lane.b32.xlu1 %v2819_v46, %s3475_s25  ;;  %s3499_s25 = smov 25  }
 0xa57   :  { %s3016_s4 = sld [smem:[%s4253_s0 + %s3499_s25]]  }
 0xa5d   :  { %v2879_v39 = vld [vmem:[%s3016_s4] sm:$0x1] }
 0xa61   :  { %3339 = vmatmul.msk.bf16.vlgmr.msrb.gmra.mxu2 %vm327_vm15, %v2913_v55 }
 0xa62   :  { %3340 = vmatmul.msk.bf16.vlgmr.msrb.gmra.mxu1 %vm327_vm15, %v2964_v33 }
 0xac7   :  { %v2684_v62 = vpop.permute.xlu0 %2683 }
 0xac8   :  { %v2821_v56 = vpop.permute.xlu1 %2820  ;;  %v2688_v38 = vsel %vm790_vm2, %v2672_v19, %v2684_v62 }
 0xac9   :  { %v2825_v58 = vsel %vm790_vm2, %v2809_v22, %v2821_v56  ;;  %2773 = vmatmul.bf16.vlgmr.msrb.gmra.mxu3 %v2688_v38  ;;  %v2892_v56 = vld [vmem:[%s3017_s8] sm:$0x1] }
 0xaca   :  { %2838 = vmatmul.bf16.vlgmr.msra.gmra.mxu0 %v2825_v58 }
 0xacf   :  { %v2852_v60 = vpop.f32.mrf.mxu1 }
 0xad4   :  { %v2787_v61 = vpop.f32.mrf.mxu2 }
 0xad7   :  { %v2854_v54 = vpop.f32.mrf.mxu1 }
 0xadc   :  { %v2789_v63 = vpop.f32.mrf.mxu2 }
 0xadf   :  { %v4229_v0 = vpop.f32.mrf.mxu1 }
 0xae4   :  { %v4231_v3 = vpop.f32.mrf.mxu2 }
 0xae7   :  { %v2979_v1 = vpop.f32.mrf.mxu1 }
 0xaec   :  { %v2940_v2 = vpop.f32.mrf.mxu2 }
 0xb47   :  { %v2839_v41 = vpop.f32.mrf.mxu0 }
 0xb48   :  { %v2853_v4 = vadd.f32 %v2852_v60, %v2839_v41  ;;  %v3454_v60 = vld [vmem:[%s4223_s1] ss:$0 sm:$0xff] }
 0xb4a   :  { %v2856_v6 = vsel %vm2497_vm11, %v2853_v4, 0.0  ;;  %v2864_v7 = vmul.f32 %v2853_v4, %v2853_v4  ;;  %2873 = vst.msk [vmem:[#allocation8 + $0x20] sm:$0x1f] %vm2497_vm11, %v2853_v4  ;;  %v2978_v4 = vadd.f32 %v3454_v60, %v4229_v0 }
 0xb4b   :  { %v2857_v9 = vrot.slane %v2856_v6, 4 }
 0xb4c   :  { %v2865_v11 = vsel %vm2497_vm11, %v2864_v7, 0.0  ;;  %v2774_v12 = vpop.f32.mrf.mxu3 }
 0xb4d   :  { %v2858_v5 = vadd.f32 %v2857_v9, %v2856_v6  ;;  %v2866_v10 = vrot.slane %v2865_v11, 4  ;;  %v2788_v13 = vadd.f32 %v2787_v61, %v2774_v12  ;;  %v2939_v6 = vadd.f32 %v3454_v60, %v4231_v3 }
 0xb4f   :  { %v2859_v14 = vrot.slane %v2858_v5, 2  ;;  %v2867_v8 = vadd.f32 %v2866_v10, %v2865_v11  ;;  %v2791_v32 = vsel %vm2497_vm11, %v2788_v13, 0.0  ;;  %v2799_v15 = vmul.f32 %v2788_v13, %v2788_v13  ;;  %2808 = vst.msk [vmem:[#allocation8] sm:$0x1f] %vm2497_vm11, %v2788_v13  ;;  %v2841_v45 = vpop.f32.mrf.mxu0 }
 0xb50   :  { %v2792_v17 = vrot.slane %v2791_v32, 4 }
 0xb51   :  { %v2868_v18 = vrot.slane %v2867_v8, 2  ;;  %v2800_v19 = vsel %vm2497_vm11, %v2799_v15, 0.0  ;;  %v2860_v48 = vadd.f32 %v2859_v14, %v2858_v5  ;;  %v2981_v63 = vld [vmem:[#allocation8 + $0x20] sm:$0x1f] }
 0xb52   :  { %v2793_v22 = vadd.f32 %v2792_v17, %v2791_v32  ;;  %v2801_v53 = vrot.slane %v2800_v19, 4 }
 0xb53   :  { %v2869_v21 = vadd.f32 %v2868_v18, %v2867_v8  ;;  %v2861_v25 = vrot.slane %v2860_v48, 1 }
 0xb54   :  { %v2794_v51 = vrot.slane %v2793_v22, 2  ;;  %v2802_v23 = vadd.f32 %v2801_v53, %v2800_v19  ;;  %v2776_v24 = vpop.f32.mrf.mxu3 }
 0xb55   :  { %v2870_v57 = vrot.slane %v2869_v21, 1  ;;  %v2862_v31 = vadd.f32 %v2861_v25, %v2860_v48 }
 0xb56   :  { %v2795_v26 = vadd.f32 %v2794_v51, %v2793_v22  ;;  %v2803_v27 = vrot.slane %v2802_v23, 2  ;;  %v2942_v54 = vld [vmem:[#allocation8] sm:$0x1f] }
 0xb57   :  { %v2871_v37 = vadd.f32 %v2870_v57, %v2869_v21 }
 0xb58   :  { %v2796_v28 = vrot.slane %v2795_v26, 1  ;;  %v2804_v29 = vadd.f32 %v2803_v27, %v2802_v23 }
 0xb5a   :  { %v2797_v36 = vadd.f32 %v2796_v28, %v2795_v26  ;;  %v2805_v35 = vrot.slane %v2804_v29, 1 }
 0xb5c   :  { %v2806_v40 = vadd.f32 %v2805_v35, %v2804_v29  ;;  %v2863_v42 = vadd.f32 %v2862_v31, %v2797_v36 }
 0xb5e   :  { %v2872_v43 = vadd.f32 %v2871_v37, %v2806_v40  ;;  %v2874_v44 = vmul.f32 0.1, %v2863_v42 }
 0xb60   :  { %v2875_v46 = vmul.f32 0.1, %v2872_v43  ;;  %v2876_v16 = vmul.f32 %v2874_v44, %v2874_v44 }
 0xb62   :  { %v2877_v47 = vsub.f32 %v2875_v46, %v2876_v16 }
 0xb64   :  { %v2878_v59 = vmax.f32 %v2877_v47, 0.0 }
 0xb66   :  { %v2880_v20 = vadd.f32 1e-05, %v2878_v59 }
 0xb68   :  { %3465 = vrsqrt.f32 %v2880_v20  ;;  %vm2887_vm2 = vweird.f32 %v2880_v20 }
 0xb6e   :  { %v3466_v30 = vpop.eup %3465 }
 0xb6f   :  { %v2882_v49 = vmul.f32 %v3466_v30, %v2880_v20  ;;  %vm2888_vm15 = vweird.f32 %v3466_v30 }
 0xb70   :  { %vm2889_vm12 = vmor %vm2887_vm2, %vm2888_vm15 }
 0xb71   :  { %v2883_v50 = vmul.f32 %v3466_v30, %v2882_v49 }
 0xb73   :  { %v2884_v34 = vmul.f32 0.5, %v2883_v50 }
 0xb75   :  { %v2885_v52 = vsub.f32 1.5, %v2884_v34 }
 0xb77   :  { %v2886_v55 = vmul.f32 %v3466_v30, %v2885_v52 }
 0xb79   :  { %v2890_v33 = vsel %vm2889_vm12, %v3466_v30, %v2886_v55 }
 0xb7a   :  { %v2891_v62 = vmul.f32 %v2890_v33, %v2879_v39 }
 0xb7c   :  { %v2893_v38 = vmul.f32 %v2891_v62, %v2874_v44  ;;  %v2944_v58 = vperm.slane %v2891_v62, 0 }
 0xb7e   :  { %v2894_v61 = vsub.f32 %v2892_v56, %v2893_v38  ;;  %v2946_v1 = vmul.f32 %v2944_v58, %v2942_v54  ;;  %v2982_v41 = vmul.f32 %v2981_v63, %v2944_v58 }
 0xb80   :  { %v2948_v2 = vperm.slane %v2894_v61, 0 }
 0xb82   :  { %v2950_v7 = vadd.f32 %v2948_v2, %v2946_v1  ;;  %v2983_v9 = vadd.f32 %v2982_v41, %v2948_v2 }
 0xb84   :  { %v2951_v11 = vadd.f32 %v2950_v7, %v2939_v6  ;;  %v2984_v12 = vadd.f32 %v2983_v9, %v2978_v4 }
 0xb86   :  { %v2952_v5 = vmax.f32 %v2951_v11, 0.0  ;;  %v2985_v10 = vmax.f32 %v2984_v12, 0.0 }
 0xb88   :  { %2953 = vst.msk [vmem:[%s3020_s10] sm:$0x1f] %vm2497_vm11, %v2952_v5 }
 0xb89   :  { %3341 = vst.msk [vmem:[%s3020_s10 + $0x8] sm:$0x1f] %vm2497_vm11, %v2985_v10 }

</bundles_post_ra>
